<compile_context>
chip_gen: v7x
topology: tpu7x:2x2x1
jax: 0.10.0
libtpu: 0.0.40
codegen_flags: <defaults>
</compile_context>

<pallas_src>
import functools
import math

import jax
import jax.numpy as jnp
from jax.experimental import pallas as pl
from jax.experimental.pallas import tpu as pltpu

_NEG_BIG = -1e30


def caamil_kernel(ht_ref, w1t_ref, b1_ref, w2_ref, wp_ref, misc_ref,
                  seg_ref, segt_ref,
                  attn_ref, scal_ref,
                  m_sc, l_sc, acc_sc, s_sc,
                  *, tile_n, m_cl, n_rows, nc_rows):
    f32 = jnp.float32
    hp = jax.lax.Precision.HIGHEST
    b = pl.program_id(0)          # 0 = patch branch, 1 = cluster branch
    t = pl.program_id(1)          # instance tile (reduction axis, "arbitrary")
    num_t = pl.num_programs(1)
    nb = tile_n // 128            # lane blocks per tile (static)
    L = acc_sc.shape[0]
    l_chunk = 128 if L % 128 == 0 else L

    @pl.when(t == 0)
    def _init():
        m_sc[...] = jnp.full_like(m_sc, _NEG_BIG)
        l_sc[...] = jnp.zeros_like(l_sc)
        acc_sc[...] = jnp.zeros_like(acc_sc)

    w1t = w1t_ref[0]                     # (D, L)
    b1 = b1_ref[0]                       # (D, 1)
    w2r = w2_ref[0]                      # (1, D)
    b2 = misc_ref[0, :, 0:1]             # (1, 1)

    ht = ht_ref[0]                       # (L, tile_n) feature-major instance tile
    # hidden = tanh(W1 @ x + b1), instances on the lane axis (MXU matmul).
    hid = jnp.tanh(jnp.dot(w1t, ht, precision=hp,
                           preferred_element_type=f32) + b1)          # (D, tile_n)
    # attention logit per instance: w2 . hidden as a 1-row MXU matvec (frees the
    # VPU/XLU sublane-reduce; the MXU has slack here).
    s_raw = jnp.dot(w2r, hid, precision=hp,
                    preferred_element_type=f32) + b2                  # (1, tile_n)

    # Cluster branch only: replace each instance logit with its cluster mean.
    # seg/seg_t are precomputed, VMEM-resident 0/1 matrices (exactness of the
    # mean is preserved; default matmul precision is fine here).
    s_sc[...] = s_raw

    @pl.when(b == 1)
    def _cluster_mean():
        seg_sum = jnp.dot(s_raw, seg_ref[...],
                          preferred_element_type=f32)                 # (1, tile_k)
        s_sc[...] = jnp.dot(seg_sum, segt_ref[...],
                            preferred_element_type=f32) * (1.0 / m_cl)

    # valid-instance mask (rows beyond N / Nc are zero padding); clusters never
    # straddle tiles nor the valid/padding boundary (tile_n % m == 0, Nc % m == 0).
    n_valid = jnp.where(b == 0, n_rows, nc_rows)
    inst = t * tile_n + jax.lax.broadcasted_iota(jnp.int32, (1, tile_n), 1)
    s_eff = jnp.where(inst < n_valid, s_sc[...], _NEG_BIG)            # (1, tile_n)

    # Store raw masked logits; the wrapper turns them into softmax weights using
    # the (max, exp-sum) packed into the scalar output at finalize.
    col = pl.multiple_of(t * tile_n, 128)
    attn_ref[:, :, pl.ds(col, tile_n)] = s_eff[None]

    # ---- lane-dense online softmax update (per-lane-column state) ----
    s_blk = [s_eff[:, i * 128:(i + 1) * 128] for i in range(nb)]      # free vreg selects
    m_tile = s_blk[0]
    for sb in s_blk[1:]:
        m_tile = jnp.maximum(m_tile, sb)
    m_prev = m_sc[...]                                                # (1, 128)
    m_new = jnp.maximum(m_prev, m_tile)
    alpha = jnp.exp(m_prev - m_new)                                   # (1, 128)
    p_blk = [jnp.exp(sb - m_new) for sb in s_blk]                     # nb x (1, 128)

    l_new = alpha * l_sc[...]
    for pb in p_blk:
        l_new = l_new + pb
    l_sc[...] = l_new
    m_sc[...] = m_new

    # Weighted aggregate accumulator, chunked over L so each chunk's working set
    # (acc chunk + one ht block + p rows) fits comfortably in vregs.
    for l0 in range(0, L, l_chunk):
        c = min(l_chunk, L - l0)
        a = alpha * acc_sc[l0:l0 + c, :]                              # (c, 128)
        for i in range(nb):
            a = a + ht_ref[0, l0:l0 + c, i * 128:(i + 1) * 128] * p_blk[i]
        acc_sc[l0:l0 + c, :] = a

    @pl.when(t == num_t - 1)
    def _finalize():
        # One-time 128 -> 1 cross-lane combine of the per-lane state.
        m_row = m_sc[...]                                             # (1, 128)
        m_glob = jnp.max(m_row, axis=1, keepdims=True)                # (1, 1)
        scale = jnp.exp(m_row - m_glob)                               # (1, 128)
        l_tot = jnp.sum(l_sc[...] * scale, axis=1, keepdims=True)     # (1, 1)
        inv_l = 1.0 / l_tot
        aggr = jnp.sum(acc_sc[...] * scale, axis=1, keepdims=True) * inv_l   # (L, 1)
        wp = wp_ref[0]                                                # (L, 1)
        bp = misc_ref[0, :, 1:2]                                      # (1, 1)
        logit = jnp.sum(aggr * wp, axis=0, keepdims=True) + bp        # (1, 1) f32 path
        prob = jax.nn.sigmoid(logit)
        hat = (prob >= 0.5).astype(f32)
        lane = jax.lax.broadcasted_iota(jnp.int32, (1, 128), 1)
        packed = (jnp.where(lane == 0, prob, 0.0)
                  + jnp.where(lane == 1, hat, 0.0)
                  + jnp.where(lane == 2, m_glob, 0.0)
                  + jnp.where(lane == 3, l_tot, 0.0))
        scal_ref[...] = packed[None]                                  # (1, 1, 128)


def _round_up(x, mult):
    return (x + mult - 1) // mult * mult


def caamil_forward(x, cl_x, params, min_cl_p_count, *, tile_n_target=1024):
    pH = x[0]                      # torch: x.squeeze(0)      -> (N, L)
    cpH = cl_x[0]                  # torch: cl_x.squeeze(0)   -> (Nc, L)
    N, L = pH.shape
    Nc = cpH.shape[0]
    m = int(min_cl_p_count)
    if Nc % m:                     # torch raises IOError here (host-side check)
        raise IOError("Error: len(new_cpA[0])%min_cl_p_count")
    D = params["Wa1"].shape[1]
    K = params["Wa2"].shape[1]
    assert K == 1, "kernel specialized for the module default K=1"

    # Instance tile: multiple of 128 (lane width) and of the cluster size,
    # capped so a tiny bag is not padded to a huge tile.
    unit = (128 * m) // math.gcd(128, m)                 # lcm(128, m)
    tile_n = min(_round_up(tile_n_target, unit), _round_up(max(N, Nc), unit))
    n_pad = _round_up(max(N, Nc), tile_n)
    num_t = n_pad // tile_n
    tile_k = tile_n // m

    f32 = jnp.float32
    # Branch-stacked, feature-major (lane = instance) inputs (one-time XLA glue).
    # TODO(synk): bf16 cast of hs_t (halves the only per-tile HBM stream; v5e
    # DMA-bound win) left out to stay inside the 1e-4 validation tolerance.
    hs_t = jnp.stack([
        jnp.pad(pH, ((0, n_pad - N), (0, 0))).T,
        jnp.pad(cpH, ((0, n_pad - Nc), (0, 0))).T,
    ]).astype(f32)                                                     # (2, L, n_pad)
    w1_t = jnp.stack([params["Wa1"].T, params["Wca1"].T]).astype(f32)  # (2, D, L)
    b1 = jnp.stack([params["ba1"].reshape(D, 1),
                    params["bca1"].reshape(D, 1)]).astype(f32)         # (2, D, 1)
    w2r = jnp.stack([params["Wa2"].T, params["Wca2"].T]).astype(f32)   # (2, 1, D)
    wp = jnp.stack([params["Wp"], params["Wcp"]]).astype(f32)          # (2, L, 1)
    misc = jnp.zeros((2, 1, 128), f32)
    misc = misc.at[0, 0, 0].set(params["ba2"][0, 0]).at[0, 0, 1].set(params["bp"][0, 0])
    misc = misc.at[1, 0, 0].set(params["bca2"][0, 0]).at[1, 0, 1].set(params["bcp"][0, 0])

    # Tile-invariant 0/1 segment matrices, built once, resident in VMEM.
    cl_id = jnp.arange(tile_n, dtype=jnp.int32) // m
    seg = (cl_id[:, None] == jnp.arange(tile_k, dtype=jnp.int32)[None, :]).astype(f32)
    seg_t = seg.T

    kernel = functools.partial(caamil_kernel, tile_n=tile_n, m_cl=m,
                               n_rows=N, nc_rows=Nc)
    const = lambda b, t: (b, 0, 0)
    const2 = lambda b, t: (0, 0)

    grid_spec = pltpu.PrefetchScalarGridSpec(
        num_scalar_prefetch=0,
        grid=(2, num_t),                        # (branch, instance tile)
        in_specs=[
            pl.BlockSpec((1, L, tile_n), lambda b, t: (b, 0, t)),   # bag tile (stream)
            pl.BlockSpec((1, D, L), const),                         # W1^T
            pl.BlockSpec((1, D, 1), const),                         # b1
            pl.BlockSpec((1, 1, D), const),                         # w2 row
            pl.BlockSpec((1, L, 1), const),                         # Wp column
            pl.BlockSpec((1, 1, 128), const),                       # [b2, bp] lanes
            pl.BlockSpec((tile_n, tile_k), const2),                 # seg (resident)
            pl.BlockSpec((tile_k, tile_n), const2),                 # seg^T (resident)
        ],
        out_specs=(
            pl.BlockSpec((1, 1, n_pad), const),                     # raw logits row
            pl.BlockSpec((1, 1, 128), const),                       # packed scalars
        ),
        scratch_shapes=[pltpu.VMEM((1, 128), f32),    # per-lane running max
                        pltpu.VMEM((1, 128), f32),    # per-lane running exp-sum
                        pltpu.VMEM((L, 128), f32),    # per-lane weighted aggregate
                        pltpu.VMEM((1, tile_n), f32)],  # branch-gated logits
    )

    attn, scal = pl.pallas_call(
        kernel,
        out_shape=(jax.ShapeDtypeStruct((2, 1, n_pad), f32),
                   jax.ShapeDtypeStruct((2, 1, 128), f32)),
        grid_spec=grid_spec,
        compiler_params=pltpu.CompilerParams(
            dimension_semantics=("parallel", "arbitrary"),
            vmem_limit_bytes=48 * 1024 * 1024),
    )(hs_t, w1_t, b1, w2r, wp, misc, seg, seg_t)

    # Wrapper-side softmax normalization from the packed (max, exp-sum) scalars.
    m0, l0 = scal[0, 0, 2], scal[0, 0, 3]
    m1, l1 = scal[1, 0, 2], scal[1, 0, 3]
    pA = jnp.exp(attn[0, :, :N] - m0) / l0              # (1, N)
    new_cpA = jnp.exp(attn[1, :, :Nc] - m1) / l1        # (1, Nc)
    # softmax over cluster means == m * new_cpA sampled at cluster starts
    cA = new_cpA[:, ::m] * float(m)                     # (1, cl_k)
    pY_prob = scal[0, :, 0:1]
    pY_hat = scal[0, :, 1:2]
    cpY_prob = scal[1, :, 0:1]
    cpY_hat = scal[1, :, 1:2]
    return ((pY_prob, pY_hat, pA), (cpY_prob, cpY_hat, new_cpA), (None, None, cA))


def caamil_reference(x, cl_x, params, m):
    """Pure-JAX transcription of the PyTorch forward (km=None, K=1)."""
    hp = jax.lax.Precision.HIGHEST
    pH = x[0]
    cpH = cl_x[0]

    def attn(H, W1, b1, W2, b2):
        return jnp.matmul(jnp.tanh(jnp.matmul(H, W1, precision=hp) + b1), W2,
                          precision=hp) + b2

    pA = attn(pH, params["Wa1"], params["ba1"], params["Wa2"], params["ba2"]).T
    pA = jax.nn.softmax(pA, axis=1)
    p_aggr = jnp.matmul(pA, pH, precision=hp)
    pY_prob = jax.nn.sigmoid(jnp.matmul(p_aggr, params["Wp"], precision=hp) + params["bp"])
    pY_hat = (pY_prob >= 0.5).astype(jnp.float32)

    cpA = attn(cpH, params["Wca1"], params["bca1"], params["Wca2"], params["bca2"]).T
    K, Nc = cpA.shape
    cl_k = Nc // m
    means = cpA.reshape(K, cl_k, m).mean(axis=(0, 2))                 # (cl_k,)
    new_cpA = jnp.broadcast_to(jnp.repeat(means, m)[None, :], (K, Nc))
    cA = jax.nn.softmax(means[None, :], axis=1)
    new_cpA = jax.nn.softmax(new_cpA, axis=1)
    c_aggr = jnp.matmul(new_cpA, cpH, precision=hp)
    cpY_prob = jax.nn.sigmoid(jnp.matmul(c_aggr, params["Wcp"], precision=hp) + params["bcp"])
    cpY_hat = (cpY_prob >= 0.5).astype(jnp.float32)
    return ((pY_prob, pY_hat, pA), (cpY_prob, cpY_hat, new_cpA), (None, None, cA))


def init_params(key, L, D, K):
    """Deterministic init mimicking nn.Linear's U(-1/sqrt(fan_in), 1/sqrt(fan_in))."""
    def linear(k, fan_in, fan_out):
        k1, k2 = jax.random.split(k)
        bound = 1.0 / (fan_in ** 0.5)
        W = jax.random.uniform(k1, (fan_in, fan_out), jnp.float32, -bound, bound)
        b = jax.random.uniform(k2, (1, fan_out), jnp.float32, -bound, bound)
        return W, b

    ks = jax.random.split(key, 6)
    Wa1, ba1 = linear(ks[0], L, D)     # P_attn[0]
    Wa2, ba2 = linear(ks[1], D, K)     # P_attn[2]
    Wp, bp = linear(ks[2], L, K)       # P_clsf[0]
    Wca1, bca1 = linear(ks[3], L, D)   # cP_attn[0]
    Wca2, bca2 = linear(ks[4], D, K)   # cP_attn[2]
    Wcp, bcp = linear(ks[5], L, K)     # cP_clsf[0]
    return dict(Wa1=Wa1, ba1=ba1, Wa2=Wa2, ba2=ba2, Wp=Wp, bp=bp,
                Wca1=Wca1, bca1=bca1, Wca2=Wca2, bca2=bca2, Wcp=Wcp, bcp=bcp)


if __name__ == "__main__":
    # Small shapes consistent with the forward: L features, D attention hidden,
    # K=1 attention head, N patch instances, Nc = cl_k * min_cl_p_count
    # cluster-ordered instances.  N != Nc and tile_n_target=256 exercise the
    # multi-tile online softmax, the multi-lane-block state update and the
    # padding/mask paths.
    L, D, K = 256, 128, 1
    N = 300
    Nc = 296
    min_cl_p_count = 4

    key = jax.random.PRNGKey(0)
    kp, kx, kc = jax.random.split(key, 3)
    params = init_params(kp, L, D, K)
    x = jax.random.normal(kx, (1, N, L), jnp.float32)
    cl_x = jax.random.normal(kc, (1, Nc, L), jnp.float32)

    out = caamil_forward(x, cl_x, params, min_cl_p_count, tile_n_target=256)
    out = jax.block_until_ready(out)

    ref = caamil_reference(x, cl_x, params, min_cl_p_count)

    (pP, pH_, pA), (cP, cH_, nA), (_, _, cA) = out
    (rpP, rpH, rpA), (rcP, rcH, rnA), (_, _, rcA) = ref
    for got, want in [(pP, rpP), (pH_, rpH), (pA, rpA),
                      (cP, rcP), (cH_, rcH), (nA, rnA), (cA, rcA)]:
        assert got.shape == want.shape, (got.shape, want.shape)
        assert jnp.allclose(got, want, atol=1e-4, rtol=1e-4), \
            float(jnp.max(jnp.abs(got - want)))

    print("KERNEL_OK")
</pallas_src>

<mosaic_0001>
module attributes {stable_mosaic.version = 11 : i64} {
  func.func @caamil_kernel(%arg0: i32, %arg1: i32, %arg2: memref<1x256x256xf32, #tpu.memory_space<vmem>>, %arg3: memref<1x128x256xf32, #tpu.memory_space<vmem>>, %arg4: memref<1x128x1xf32, #tpu.memory_space<vmem>>, %arg5: memref<1x1x128xf32, #tpu.memory_space<vmem>>, %arg6: memref<1x256x1xf32, #tpu.memory_space<vmem>>, %arg7: memref<1x1x128xf32, #tpu.memory_space<vmem>>, %arg8: memref<256x64xf32, #tpu.memory_space<vmem>>, %arg9: memref<64x256xf32, #tpu.memory_space<vmem>>, %arg10: memref<1x1x512xf32, #tpu.memory_space<vmem>>, %arg11: memref<1x1x128xf32, #tpu.memory_space<vmem>>, %arg12: memref<1x128xf32, #tpu.memory_space<vmem>>, %arg13: memref<1x128xf32, #tpu.memory_space<vmem>>, %arg14: memref<256x128xf32, #tpu.memory_space<vmem>>, %arg15: memref<1x256xf32, #tpu.memory_space<vmem>>) attributes {dimension_semantics = [#tpu.dimension_semantics<parallel>, #tpu.dimension_semantics<arbitrary>], iteration_bounds = array<i64: 2, 2>, scalar_prefetch = 0 : i64, scratch_operands = 4 : i64, tpu.core_type = #tpu.core_type<tc>, window_params = [{transform_indices = @transform_0, window_bounds = array<i64: 1, 256, 256>}, {transform_indices = @transform_1, window_bounds = array<i64: 1, 128, 256>}, {transform_indices = @transform_2, window_bounds = array<i64: 1, 128, 1>}, {transform_indices = @transform_3, window_bounds = array<i64: 1, 1, 128>}, {transform_indices = @transform_4, window_bounds = array<i64: 1, 256, 1>}, {transform_indices = @transform_5, window_bounds = array<i64: 1, 1, 128>}, {pipeline_mode = #tpu.pipeline_mode<synchronous>, transform_indices = @transform_6, window_bounds = array<i64: 256, 64>}, {pipeline_mode = #tpu.pipeline_mode<synchronous>, transform_indices = @transform_7, window_bounds = array<i64: 64, 256>}, {transform_indices = @transform_8, window_bounds = array<i64: 1, 1, 512>}, {transform_indices = @transform_9, window_bounds = array<i64: 1, 1, 128>}]} {
    %c0_i32 = arith.constant 0 : i32
    %0 = arith.cmpi eq, %arg1, %c0_i32 : i32
    %1 = arith.extui %0 : i1 to i32
    %c0_i32_0 = arith.constant 0 : i32
    %2 = arith.cmpi ne, %1, %c0_i32_0 : i32
    scf.if %2 {
      %cst_55 = arith.constant -1.000000e+30 : f32
      %88 = vector.broadcast %cst_55 : f32 to vector<1x128xf32>
      %c0_56 = arith.constant 0 : index
      %c0_57 = arith.constant 0 : index
      %89 = vector.load %arg12[%c0_56, %c0_57] : memref<1x128xf32, #tpu.memory_space<vmem>>, vector<1x128xf32>
      tpu.vector_store %arg12[%c0_56, %c0_57], %88 {strides = array<i32>} : memref<1x128xf32, #tpu.memory_space<vmem>>, vector<1x128xf32>,
      %cst_58 = arith.constant 0.000000e+00 : f32
      %90 = vector.broadcast %cst_58 : f32 to vector<1x128xf32>
      %c0_59 = arith.constant 0 : index
      %c0_60 = arith.constant 0 : index
      %91 = vector.load %arg13[%c0_59, %c0_60] : memref<1x128xf32, #tpu.memory_space<vmem>>, vector<1x128xf32>
      tpu.vector_store %arg13[%c0_59, %c0_60], %90 {strides = array<i32>} : memref<1x128xf32, #tpu.memory_space<vmem>>, vector<1x128xf32>,
      %cst_61 = arith.constant 0.000000e+00 : f32
      %92 = vector.broadcast %cst_61 : f32 to vector<256x128xf32>
      %c0_62 = arith.constant 0 : index
      %c0_63 = arith.constant 0 : index
      %93 = vector.load %arg14[%c0_62, %c0_63] : memref<256x128xf32, #tpu.memory_space<vmem>>, vector<256x128xf32>
      tpu.vector_store %arg14[%c0_62, %c0_63], %92 {strides = array<i32>} : memref<256x128xf32, #tpu.memory_space<vmem>>, vector<256x128xf32>,
    } else {
    }
    %c0 = arith.constant 0 : index
    %c0_1 = arith.constant 0 : index
    %c0_2 = arith.constant 0 : index
    %3 = vector.load %arg3[%c0, %c0_1, %c0_2] : memref<1x128x256xf32, #tpu.memory_space<vmem>>, vector<1x128x256xf32>
    %4 = vector.shape_cast %3 : vector<1x128x256xf32> to vector<128x256xf32>
    %c0_3 = arith.constant 0 : index
    %c0_4 = arith.constant 0 : index
    %c0_5 = arith.constant 0 : index
    %5 = vector.load %arg4[%c0_3, %c0_4, %c0_5] : memref<1x128x1xf32, #tpu.memory_space<vmem>>, vector<1x128x1xf32>
    %6 = vector.shape_cast %5 : vector<1x128x1xf32> to vector<128x1xf32>
    %c0_6 = arith.constant 0 : index
    %c0_7 = arith.constant 0 : index
    %c0_8 = arith.constant 0 : index
    %7 = vector.load %arg5[%c0_6, %c0_7, %c0_8] : memref<1x1x128xf32, #tpu.memory_space<vmem>>, vector<1x1x128xf32>
    %8 = vector.shape_cast %7 : vector<1x1x128xf32> to vector<1x128xf32>
    %c0_9 = arith.constant 0 : index
    %c0_10 = arith.constant 0 : index
    %c0_11 = arith.constant 0 : index
    %9 = vector.load %arg7[%c0_9, %c0_10, %c0_11] : memref<1x1x128xf32, #tpu.memory_space<vmem>>, vector<1x1x1xf32>
    %10 = vector.shape_cast %9 : vector<1x1x1xf32> to vector<1x1xf32>
    %c0_12 = arith.constant 0 : index
    %c0_13 = arith.constant 0 : index
    %c0_14 = arith.constant 0 : index
    %11 = vector.load %arg2[%c0_12, %c0_13, %c0_14] : memref<1x256x256xf32, #tpu.memory_space<vmem>>, vector<1x256x256xf32>
    %12 = vector.shape_cast %11 : vector<1x256x256xf32> to vector<256x256xf32>
    %cst = arith.constant dense<0.000000e+00> : vector<128x256xf32>
    %13 = tpu.matmul %4, %12, %cst {dimension_numbers = #tpu.dot_dimension_numbers<[1], [0], [0], [1], [0, 0, 1, 1], [], []>, precision = #tpu.contract_precision<fp32>} : vector<128x256xf32>, vector<256x256xf32>, vector<128x256xf32> -> vector<128x256xf32>
    %14 = vector.broadcast %6 : vector<128x1xf32> to vector<128x256xf32>
    %15 = arith.addf %13, %14 : vector<128x256xf32>
    %16 = math.tanh %15 : vector<128x256xf32>
    %cst_15 = arith.constant dense<0.000000e+00> : vector<1x256xf32>
    %17 = tpu.matmul %8, %16, %cst_15 {dimension_numbers = #tpu.dot_dimension_numbers<[1], [0], [0], [1], [0, 0, 1, 1], [], []>, precision = #tpu.contract_precision<fp32>} : vector<1x128xf32>, vector<128x256xf32>, vector<1x256xf32> -> vector<1x256xf32>
    %18 = vector.broadcast %10 : vector<1x1xf32> to vector<1x256xf32>
    %19 = arith.addf %17, %18 : vector<1x256xf32>
    %c0_16 = arith.constant 0 : index
    %c0_17 = arith.constant 0 : index
    %20 = vector.load %arg15[%c0_16, %c0_17] : memref<1x256xf32, #tpu.memory_space<vmem>>, vector<1x256xf32>
    tpu.vector_store %arg15[%c0_16, %c0_17], %19 {strides = array<i32>} : memref<1x256xf32, #tpu.memory_space<vmem>>, vector<1x256xf32>,
    %c1_i32 = arith.constant 1 : i32
    %21 = arith.cmpi eq, %arg0, %c1_i32 : i32
    %22 = arith.extui %21 : i1 to i32
    %c0_i32_18 = arith.constant 0 : i32
    %23 = arith.cmpi ne, %22, %c0_i32_18 : i32
    scf.if %23 {
      %c0_55 = arith.constant 0 : index
      %c0_56 = arith.constant 0 : index
      %88 = vector.load %arg8[%c0_55, %c0_56] : memref<256x64xf32, #tpu.memory_space<vmem>>, vector<256x64xf32>
      %cst_57 = arith.constant dense<0.000000e+00> : vector<1x64xf32>
      %89 = tpu.matmul %19, %88, %cst_57 {dimension_numbers = #tpu.dot_dimension_numbers<[1], [0], [0], [1], [0, 0, 1, 1], [], []>} : vector<1x256xf32>, vector<256x64xf32>, vector<1x64xf32> -> vector<1x64xf32>
      %c0_58 = arith.constant 0 : index
      %c0_59 = arith.constant 0 : index
      %90 = vector.load %arg9[%c0_58, %c0_59] : memref<64x256xf32, #tpu.memory_space<vmem>>, vector<64x256xf32>
      %cst_60 = arith.constant dense<0.000000e+00> : vector<1x256xf32>
      %91 = tpu.matmul %89, %90, %cst_60 {dimension_numbers = #tpu.dot_dimension_numbers<[1], [0], [0], [1], [0, 0, 1, 1], [], []>} : vector<1x64xf32>, vector<64x256xf32>, vector<1x256xf32> -> vector<1x256xf32>
      %cst_61 = arith.constant 2.500000e-01 : f32
      %92 = vector.broadcast %cst_61 : f32 to vector<1x256xf32>
      %93 = arith.mulf %91, %92 : vector<1x256xf32>
      %c0_62 = arith.constant 0 : index
      %c0_63 = arith.constant 0 : index
      %94 = vector.load %arg15[%c0_62, %c0_63] : memref<1x256xf32, #tpu.memory_space<vmem>>, vector<1x256xf32>
      tpu.vector_store %arg15[%c0_62, %c0_63], %93 {strides = array<i32>} : memref<1x256xf32, #tpu.memory_space<vmem>>, vector<1x256xf32>,
    } else {
    }
    %c0_i32_19 = arith.constant 0 : i32
    %24 = arith.cmpi eq, %arg0, %c0_i32_19 : i32
    %c300_i32 = arith.constant 300 : i32
    %c296_i32 = arith.constant 296 : i32
    %25 = arith.select %24, %c300_i32, %c296_i32 : i32
    %c256_i32 = arith.constant 256 : i32
    %26 = arith.muli %arg1, %c256_i32 : i32
    %27 = tpu.iota {dimensions = array<i32: 1>} : vector<1x256xi32>
    %28 = vector.broadcast %26 : i32 to vector<1x256xi32>
    %29 = arith.addi %28, %27 : vector<1x256xi32>
    %30 = vector.broadcast %25 : i32 to vector<1x256xi32>
    %31 = arith.cmpi slt, %29, %30 : vector<1x256xi32>
    %c0_20 = arith.constant 0 : index
    %c0_21 = arith.constant 0 : index
    %32 = vector.load %arg15[%c0_20, %c0_21] : memref<1x256xf32, #tpu.memory_space<vmem>>, vector<1x256xf32>
    %cst_22 = arith.constant -1.000000e+30 : f32
    %33 = vector.broadcast %cst_22 : f32 to vector<1x256xf32>
    %34 = arith.select %31, %32, %33 : vector<1x256xi1>, vector<1x256xf32>
    %c256_i32_23 = arith.constant 256 : i32
    %35 = arith.muli %arg1, %c256_i32_23 : i32
    %36 = tpu.assume_multiple %35, 128 : i32
    %37 = vector.shape_cast %34 : vector<1x256xf32> to vector<1x1x256xf32>
    %c0_24 = arith.constant 0 : index
    %c0_25 = arith.constant 0 : index
    %38 = arith.index_cast %36 : i32 to index
    %39 = vector.load %arg10[%c0_24, %c0_25, %38] : memref<1x1x512xf32, #tpu.memory_space<vmem>>, vector<1x1x256xf32>
    tpu.vector_store %arg10[%c0_24, %c0_25, %38], %37 {strides = array<i32>} : memref<1x1x512xf32, #tpu.memory_space<vmem>>, vector<1x1x256xf32>,
    %40 = vector.extract_strided_slice %34 {offsets = [0, 0], sizes = [1, 128], strides = [1, 1]} : vector<1x256xf32> to vector<1x128xf32>
    %41 = vector.extract_strided_slice %34 {offsets = [0, 128], sizes = [1, 128], strides = [1, 1]} : vector<1x256xf32> to vector<1x128xf32>
    %42 = arith.maximumf %40, %41 : vector<1x128xf32>
    %c0_26 = arith.constant 0 : index
    %c0_27 = arith.constant 0 : index
    %43 = vector.load %arg12[%c0_26, %c0_27] : memref<1x128xf32, #tpu.memory_space<vmem>>, vector<1x128xf32>
    %44 = arith.maximumf %43, %42 : vector<1x128xf32>
    %45 = arith.subf %43, %44 : vector<1x128xf32>
    %46 = math.exp %45 : vector<1x128xf32>
    %47 = arith.subf %40, %44 : vector<1x128xf32>
    %48 = math.exp %47 : vector<1x128xf32>
    %49 = arith.subf %41, %44 : vector<1x128xf32>
    %50 = math.exp %49 : vector<1x128xf32>
    %c0_28 = arith.constant 0 : index
    %c0_29 = arith.constant 0 : index
    %51 = vector.load %arg13[%c0_28, %c0_29] : memref<1x128xf32, #tpu.memory_space<vmem>>, vector<1x128xf32>
    %52 = arith.mulf %46, %51 : vector<1x128xf32>
    %53 = arith.addf %52, %48 : vector<1x128xf32>
    %54 = arith.addf %53, %50 : vector<1x128xf32>
    %c0_30 = arith.constant 0 : index
    %c0_31 = arith.constant 0 : index
    %55 = vector.load %arg13[%c0_30, %c0_31] : memref<1x128xf32, #tpu.memory_space<vmem>>, vector<1x128xf32>
    tpu.vector_store %arg13[%c0_30, %c0_31], %54 {strides = array<i32>} : memref<1x128xf32, #tpu.memory_space<vmem>>, vector<1x128xf32>,
    %c0_32 = arith.constant 0 : index
    %c0_33 = arith.constant 0 : index
    %56 = vector.load %arg12[%c0_32, %c0_33] : memref<1x128xf32, #tpu.memory_space<vmem>>, vector<1x128xf32>
    tpu.vector_store %arg12[%c0_32, %c0_33], %44 {strides = array<i32>} : memref<1x128xf32, #tpu.memory_space<vmem>>, vector<1x128xf32>,
    %c0_34 = arith.constant 0 : index
    %c0_35 = arith.constant 0 : index
    %57 = vector.load %arg14[%c0_34, %c0_35] : memref<256x128xf32, #tpu.memory_space<vmem>>, vector<128x128xf32>
    %58 = vector.broadcast %46 : vector<1x128xf32> to vector<128x128xf32>
    %59 = arith.mulf %58, %57 : vector<128x128xf32>
    %c0_36 = arith.constant 0 : index
    %c0_37 = arith.constant 0 : index
    %c0_38 = arith.constant 0 : index
    %60 = vector.load %arg2[%c0_36, %c0_37, %c0_38] : memref<1x256x256xf32, #tpu.memory_space<vmem>>, vector<1x128x128xf32>
    %61 = vector.shape_cast %60 : vector<1x128x128xf32> to vector<128x128xf32>
    %62 = vector.broadcast %48 : vector<1x128xf32> to vector<128x128xf32>
    %63 = arith.mulf %61, %62 : vector<128x128xf32>
    %64 = arith.addf %59, %63 : vector<128x128xf32>
    %c0_39 = arith.constant 0 : index
    %c0_40 = arith.constant 0 : index
    %c128 = arith.constant 128 : index
    %65 = vector.load %arg2[%c0_39, %c0_40, %c128] : memref<1x256x256xf32, #tpu.memory_space<vmem>>, vector<1x128x128xf32>
    %66 = vector.shape_cast %65 : vector<1x128x128xf32> to vector<128x128xf32>
    %67 = vector.broadcast %50 : vector<1x128xf32> to vector<128x128xf32>
    %68 = arith.mulf %66, %67 : vector<128x128xf32>
    %69 = arith.addf %64, %68 : vector<128x128xf32>
    %c0_41 = arith.constant 0 : index
    %c0_42 = arith.constant 0 : index
    %70 = vector.load %arg14[%c0_41, %c0_42] : memref<256x128xf32, #tpu.memory_space<vmem>>, vector<128x128xf32>
    tpu.vector_store %arg14[%c0_41, %c0_42], %69 {strides = array<i32>} : memref<256x128xf32, #tpu.memory_space<vmem>>, vector<128x128xf32>,
    %c128_43 = arith.constant 128 : index
    %c0_44 = arith.constant 0 : index
    %71 = vector.load %arg14[%c128_43, %c0_44] : memref<256x128xf32, #tpu.memory_space<vmem>>, vector<128x128xf32>
    %72 = vector.broadcast %46 : vector<1x128xf32> to vector<128x128xf32>
    %73 = arith.mulf %72, %71 : vector<128x128xf32>
    %c0_45 = arith.constant 0 : index
    %c128_46 = arith.constant 128 : index
    %c0_47 = arith.constant 0 : index
    %74 = vector.load %arg2[%c0_45, %c128_46, %c0_47] : memref<1x256x256xf32, #tpu.memory_space<vmem>>, vector<1x128x128xf32>
    %75 = vector.shape_cast %74 : vector<1x128x128xf32> to vector<128x128xf32>
    %76 = vector.broadcast %48 : vector<1x128xf32> to vector<128x128xf32>
    %77 = arith.mulf %75, %76 : vector<128x128xf32>
    %78 = arith.addf %73, %77 : vector<128x128xf32>
    %c0_48 = arith.constant 0 : index
    %c128_49 = arith.constant 128 : index
    %c128_50 = arith.constant 128 : index
    %79 = vector.load %arg2[%c0_48, %c128_49, %c128_50] : memref<1x256x256xf32, #tpu.memory_space<vmem>>, vector<1x128x128xf32>
    %80 = vector.shape_cast %79 : vector<1x128x128xf32> to vector<128x128xf32>
    %81 = vector.broadcast %50 : vector<1x128xf32> to vector<128x128xf32>
    %82 = arith.mulf %80, %81 : vector<128x128xf32>
    %83 = arith.addf %78, %82 : vector<128x128xf32>
    %c128_51 = arith.constant 128 : index
    %c0_52 = arith.constant 0 : index
    %84 = vector.load %arg14[%c128_51, %c0_52] : memref<256x128xf32, #tpu.memory_space<vmem>>, vector<128x128xf32>
    tpu.vector_store %arg14[%c128_51, %c0_52], %83 {strides = array<i32>} : memref<256x128xf32, #tpu.memory_space<vmem>>, vector<128x128xf32>,
    %c1_i32_53 = arith.constant 1 : i32
    %85 = arith.cmpi eq, %arg1, %c1_i32_53 : i32
    %86 = arith.extui %85 : i1 to i32
    %c0_i32_54 = arith.constant 0 : i32
    %87 = arith.cmpi ne, %86, %c0_i32_54 : i32
    scf.if %87 {
      %c0_55 = arith.constant 0 : index
      %c0_56 = arith.constant 0 : index
      %88 = vector.load %arg12[%c0_55, %c0_56] : memref<1x128xf32, #tpu.memory_space<vmem>>, vector<1x128xf32>
      %cst_57 = arith.constant dense<0xFF800000> : vector<1xf32>
      %89 = vector.multi_reduction <maximumf>, %88, %cst_57 [1] : vector<1x128xf32> to vector<1xf32>
      %90 = vector.shape_cast %89 : vector<1xf32> to vector<1x1xf32>
      %91 = vector.broadcast %90 : vector<1x1xf32> to vector<1x128xf32>
      %92 = arith.subf %88, %91 : vector<1x128xf32>
      %93 = math.exp %92 : vector<1x128xf32>
      %c0_58 = arith.constant 0 : index
      %c0_59 = arith.constant 0 : index
      %94 = vector.load %arg13[%c0_58, %c0_59] : memref<1x128xf32, #tpu.memory_space<vmem>>, vector<1x128xf32>
      %95 = arith.mulf %94, %93 : vector<1x128xf32>
      %cst_60 = arith.constant dense<0.000000e+00> : vector<1xf32>
      %96 = vector.multi_reduction <add>, %95, %cst_60 [1] : vector<1x128xf32> to vector<1xf32>
      %97 = vector.shape_cast %96 : vector<1xf32> to vector<1x1xf32>
      %cst_61 = arith.constant 1.000000e+00 : f32
      %98 = vector.broadcast %cst_61 : f32 to vector<1x1xf32>
      %99 = arith.divf %98, %97 : vector<1x1xf32>
      %c0_62 = arith.constant 0 : index
      %c0_63 = arith.constant 0 : index
      %100 = vector.load %arg14[%c0_62, %c0_63] : memref<256x128xf32, #tpu.memory_space<vmem>>, vector<256x128xf32>
      %101 = vector.broadcast %93 : vector<1x128xf32> to vector<256x128xf32>
      %102 = arith.mulf %100, %101 : vector<256x128xf32>
      %cst_64 = arith.constant dense<0.000000e+00> : vector<256xf32>
      %103 = vector.multi_reduction <add>, %102, %cst_64 [1] : vector<256x128xf32> to vector<256xf32>
      %104 = vector.shape_cast %103 : vector<256xf32> to vector<256x1xf32>
      %105 = vector.broadcast %99 : vector<1x1xf32> to vector<256x1xf32>
      %106 = arith.mulf %104, %105 : vector<256x1xf32>
      %c0_65 = arith.constant 0 : index
      %c0_66 = arith.constant 0 : index
      %c0_67 = arith.constant 0 : index
      %107 = vector.load %arg6[%c0_65, %c0_66, %c0_67] : memref<1x256x1xf32, #tpu.memory_space<vmem>>, vector<1x256x1xf32>
      %108 = vector.shape_cast %107 : vector<1x256x1xf32> to vector<256x1xf32>
      %c0_68 = arith.constant 0 : index
      %c0_69 = arith.constant 0 : index
      %c1 = arith.constant 1 : index
      %109 = vector.load %arg7[%c0_68, %c0_69, %c1] : memref<1x1x128xf32, #tpu.memory_space<vmem>>, vector<1x1x1xf32>
      %110 = vector.shape_cast %109 : vector<1x1x1xf32> to vector<1x1xf32>
      %111 = arith.mulf %106, %108 : vector<256x1xf32>
      %cst_70 = arith.constant dense<0.000000e+00> : vector<1xf32>
      %112 = vector.multi_reduction <add>, %111, %cst_70 [0] : vector<256x1xf32> to vector<1xf32>
      %113 = vector.shape_cast %112 : vector<1xf32> to vector<1x1xf32>
      %114 = arith.addf %113, %110 : vector<1x1xf32>
      %115 = arith.negf %114 : vector<1x1xf32>
      %116 = math.exp %115 : vector<1x1xf32>
      %cst_71 = arith.constant 1.000000e+00 : f32
      %117 = vector.broadcast %cst_71 : f32 to vector<1x1xf32>
      %118 = arith.addf %117, %116 : vector<1x1xf32>
      %119 = arith.divf %117, %118 : vector<1x1xf32>
      %cst_72 = arith.constant 5.000000e-01 : f32
      %120 = vector.broadcast %cst_72 : f32 to vector<1x1xf32>
      %121 = arith.cmpf oge, %119, %120 : vector<1x1xf32>
      %122 = arith.extui %121 : vector<1x1xi1> to vector<1x1xi32>
      %123 = arith.sitofp %122 : vector<1x1xi32> to vector<1x1xf32>
      %124 = tpu.iota {dimensions = array<i32: 1>} : vector<1x128xi32>
      %c0_i32_73 = arith.constant 0 : i32
      %125 = vector.broadcast %c0_i32_73 : i32 to vector<1x128xi32>
      %126 = arith.cmpi eq, %124, %125 : vector<1x128xi32>
      %cst_74 = arith.constant 0.000000e+00 : f32
      %127 = vector.shape_cast %119 : vector<1x1xf32> to vector<1x1xf32>
      %128 = vector.broadcast %127 : vector<1x1xf32> to vector<1x128xf32>
      %129 = vector.broadcast %cst_74 : f32 to vector<1x128xf32>
      %130 = arith.select %126, %128, %129 : vector<1x128xi1>, vector<1x128xf32>
      %c1_i32_75 = arith.constant 1 : i32
      %131 = vector.broadcast %c1_i32_75 : i32 to vector<1x128xi32>
      %132 = arith.cmpi eq, %124, %131 : vector<1x128xi32>
      %cst_76 = arith.constant 0.000000e+00 : f32
      %133 = vector.shape_cast %123 : vector<1x1xf32> to vector<1x1xf32>
      %134 = vector.broadcast %133 : vector<1x1xf32> to vector<1x128xf32>
      %135 = vector.broadcast %cst_76 : f32 to vector<1x128xf32>
      %136 = arith.select %132, %134, %135 : vector<1x128xi1>, vector<1x128xf32>
      %137 = arith.addf %130, %136 : vector<1x128xf32>
      %c2_i32 = arith.constant 2 : i32
      %138 = vector.broadcast %c2_i32 : i32 to vector<1x128xi32>
      %139 = arith.cmpi eq, %124, %138 : vector<1x128xi32>
      %cst_77 = arith.constant 0.000000e+00 : f32
      %140 = vector.shape_cast %90 : vector<1x1xf32> to vector<1x1xf32>
      %141 = vector.broadcast %140 : vector<1x1xf32> to vector<1x128xf32>
      %142 = vector.broadcast %cst_77 : f32 to vector<1x128xf32>
      %143 = arith.select %139, %141, %142 : vector<1x128xi1>, vector<1x128xf32>
      %144 = arith.addf %137, %143 : vector<1x128xf32>
      %c3_i32 = arith.constant 3 : i32
      %145 = vector.broadcast %c3_i32 : i32 to vector<1x128xi32>
      %146 = arith.cmpi eq, %124, %145 : vector<1x128xi32>
      %cst_78 = arith.constant 0.000000e+00 : f32
      %147 = vector.shape_cast %97 : vector<1x1xf32> to vector<1x1xf32>
      %148 = vector.broadcast %147 : vector<1x1xf32> to vector<1x128xf32>
      %149 = vector.broadcast %cst_78 : f32 to vector<1x128xf32>
      %150 = arith.select %146, %148, %149 : vector<1x128xi1>, vector<1x128xf32>
      %151 = arith.addf %144, %150 : vector<1x128xf32>
      %152 = vector.shape_cast %151 : vector<1x128xf32> to vector<1x1x128xf32>
      %c0_79 = arith.constant 0 : index
      %c0_80 = arith.constant 0 : index
      %c0_81 = arith.constant 0 : index
      %153 = vector.load %arg11[%c0_79, %c0_80, %c0_81] : memref<1x1x128xf32, #tpu.memory_space<vmem>>, vector<1x1x128xf32>
      tpu.vector_store %arg11[%c0_79, %c0_80, %c0_81], %152 {strides = array<i32>} : memref<1x1x128xf32, #tpu.memory_space<vmem>>, vector<1x1x128xf32>,
    } else {
    }
    return
  }
  func.func @transform_0(%arg0: i32, %arg1: i32) -> (i32, i32, i32) {
    %c0_i32 = arith.constant 0 : i32
    %c0_i32_0 = arith.constant 0 : i32
    return %arg0, %c0_i32, %arg1 : i32, i32, i32
  }
  func.func @transform_1(%arg0: i32, %arg1: i32) -> (i32, i32, i32) {
    %c0_i32 = arith.constant 0 : i32
    %c0_i32_0 = arith.constant 0 : i32
    %c0_i32_1 = arith.constant 0 : i32
    return %arg0, %c0_i32, %c0_i32_0 : i32, i32, i32
  }
  func.func @transform_2(%arg0: i32, %arg1: i32) -> (i32, i32, i32) {
    %c0_i32 = arith.constant 0 : i32
    %c0_i32_0 = arith.constant 0 : i32
    %c0_i32_1 = arith.constant 0 : i32
    return %arg0, %c0_i32, %c0_i32_0 : i32, i32, i32
  }
  func.func @transform_3(%arg0: i32, %arg1: i32) -> (i32, i32, i32) {
    %c0_i32 = arith.constant 0 : i32
    %c0_i32_0 = arith.constant 0 : i32
    %c0_i32_1 = arith.constant 0 : i32
    return %arg0, %c0_i32, %c0_i32_0 : i32, i32, i32
  }
  func.func @transform_4(%arg0: i32, %arg1: i32) -> (i32, i32, i32) {
    %c0_i32 = arith.constant 0 : i32
    %c0_i32_0 = arith.constant 0 : i32
    %c0_i32_1 = arith.constant 0 : i32
    return %arg0, %c0_i32, %c0_i32_0 : i32, i32, i32
  }
  func.func @transform_5(%arg0: i32, %arg1: i32) -> (i32, i32, i32) {
    %c0_i32 = arith.constant 0 : i32
    %c0_i32_0 = arith.constant 0 : i32
    %c0_i32_1 = arith.constant 0 : i32
    return %arg0, %c0_i32, %c0_i32_0 : i32, i32, i32
  }
  func.func @transform_6(%arg0: i32, %arg1: i32) -> (i32, i32) {
    %c0_i32 = arith.constant 0 : i32
    %c0_i32_0 = arith.constant 0 : i32
    %c0_i32_1 = arith.constant 0 : i32
    return %c0_i32, %c0_i32_0 : i32, i32
  }
  func.func @transform_7(%arg0: i32, %arg1: i32) -> (i32, i32) {
    %c0_i32 = arith.constant 0 : i32
    %c0_i32_0 = arith.constant 0 : i32
    %c0_i32_1 = arith.constant 0 : i32
    return %c0_i32, %c0_i32_0 : i32, i32
  }
  func.func @transform_8(%arg0: i32, %arg1: i32) -> (i32, i32, i32) {
    %c0_i32 = arith.constant 0 : i32
    %c0_i32_0 = arith.constant 0 : i32
    %c0_i32_1 = arith.constant 0 : i32
    return %arg0, %c0_i32, %c0_i32_0 : i32, i32, i32
  }
  func.func @transform_9(%arg0: i32, %arg1: i32) -> (i32, i32, i32) {
    %c0_i32 = arith.constant 0 : i32
    %c0_i32_0 = arith.constant 0 : i32
    %c0_i32_1 = arith.constant 0 : i32
    return %arg0, %c0_i32, %c0_i32_0 : i32, i32, i32
  }
}

</mosaic_0001>

<bundles_post_ra>
// kernel: tpu_custom_call.1
= control target key start
LH: loop header
LB: loop body
LE: loop exit
PB: predicated region body
PF: predicated region fallthrough
CT: control target
= control target key end

     0   :  { %s9919_s0 = inlined_call_operand.hbm [shape: f32[2,256,512], index: 0, kind: input, shape index: {}]   ;;  %s9920_s1 = inlined_call_operand.vmem [shape: f32[2,128,256], index: 1, kind: input, shape index: {}]   ;;  %s9921_s2 = inlined_call_operand.vmem [shape: f32[2,128,1], index: 2, kind: input, shape index: {}]   ;;  %s9922_s3 = inlined_call_operand.vmem [shape: f32[2,1,128], index: 3, kind: input, shape index: {}]   ;;  %s9923_s4 = inlined_call_operand.vmem [shape: f32[2,256,1], index: 4, kind: input, shape index: {}]   ;;  %s9924_s5 = inlined_call_operand.vmem [shape: f32[2,1,128], index: 5, kind: input, shape index: {}]   ;;  %s9925_s6 = inlined_call_operand.vmem [shape: f32[256,64], index: 6, kind: input, shape index: {}]   ;;  %s9926_s7 = inlined_call_operand.vmem [shape: f32[64,256], index: 7, kind: input, shape index: {}]   ;;  %s9927_s8 = inlined_call_operand.hbm [shape: f32[2,1,512], index: 8, kind: output, shape index: {0}]   ;;  %s9928_s9 = inlined_call_operand.hbm [shape: f32[2,1,128], index: 9, kind: output, shape index: {1}]  }
   0x1   :  { %10384 = sst [smem:[#allocation175_spill]] %s9919_s0 }
   0x2   :  { %10385 = sst [smem:[#allocation176_spill]] %s9920_s1 }
   0x3   :  { %10386 = sst [smem:[#allocation177_spill]] %s9925_s6 }
   0x4   :  { %10387 = sst [smem:[#allocation178_spill]] %s9926_s7 }
   0x5   :  { %10388 = sst [smem:[#allocation179_spill]] %s9927_s8 }
   0x6   :  { %10389 = sst [smem:[#allocation180_spill]] %s9928_s9 }
   0x7   :  { %15 = vsyncpa [#allocation7], 0 }
   0x8   :  { %17 = vsyncpa [#allocation7 + $0x1], 0 }
   0x9   :  { %18 = vsyncpa [#allocation8], 0 }
   0xa   :  { %20 = vsyncpa [#allocation8 + $0x1], 0 }
   0xb   :  { %21 = vsyncpa [#allocation11], 0 }
   0xc   :  { %23 = vsyncpa [#allocation11 + $0x1], 0  ;;  %s6362_s30 = smov 0   ;;  %s6364_s10 = smov 0  }
   0xd   :  { %s6366_s11 = smov 0   ;;  %s6368_s12 = smov 0  }
   0xe   :  { %s6370_s13 = smov 0   ;;  %s6372_s14 = smov 0  }
   0xf   :  { %s6374_s15 = smov 0   ;;  %s6376_s16 = smov 0  }
  0x10   :  { %s6378_s17 = smov 0   ;;  %s6380_s18 = smov 0  }
  0x11   :  { %s6382_s19 = smov 0  }
  0x12 LB: > { %10390 = sst [smem:[#allocation15_spill]] %s6263_s11  ;;  %s4980_s20 = sadd.s32 4294967295, %s6295_s19   ;;  %s6295_s19 = sphi %s6382_s19, %s29_s19   ;;  %s6291_s18 = sphi %s6380_s18, %s11247_s18   ;;  %s6287_s17 = sphi %s6378_s17, %s11246_s17   ;;  %s6283_s16 = sphi %s6376_s16, %s11245_s16   ;;  %s6279_s15 = sphi %s6374_s15, %s11244_s15   ;;  %s6275_s14 = sphi %s6372_s14, %s11243_s14   ;;  %s6271_s13 = sphi %s6370_s13, %s11250_s13   ;;  %s6267_s12 = sphi %s6368_s12, %s11241_s12   ;;  %s6263_s11 = sphi %s6366_s11, %s11240_s11   ;;  %s6259_s10 = sphi %s6364_s10, %s11249_s10   ;;  %s6255_s30 = sphi %s6362_s30, %s11248_s30  }
  0x13   : > { %10391 = sst [smem:[#allocation16_spill]] %s6271_s13  ;;  %s4981_s21 = sadd.s32 4294967294, %s6295_s19  }
  0x14   : > { %10392 = sst [smem:[#allocation17_spill]] %s6275_s14  ;;  %s38_s22 = sadd.s32 1, %s6287_s17 }
  0x15   : > { %10393 = sst [smem:[#allocation18_spill]] %s6287_s17  ;;  %s41_s23 = sadd.s32 1, %s6291_s18 }
  0x16   : > { %10394 = sst [smem:[#allocation19_spill]] %s6291_s18  ;;  %p39_p0 = scmp.ge.s32.totalorder %s38_s22, 2 }
  0x17   : > { %s50_s24 = sadd.s32 1, %s6275_s14  ;;  %p57_p1 = scmp.ne.s32.totalorder %s6275_s14, %s6271_s13 }
  0x18   : > { %p58_p2 = scmp.eq.s32.totalorder %s6295_s19, 0  ;;  %s11252_s22 = smov (%p39_p0, %s38_s22), 0 }
  0x19   : > { %10395 = sst [smem:[#allocation20_spill]] %s11252_s22  ;;  %s11254_s23 = smov (!%p39_p0, %s41_s23), %s6291_s18 }
  0x1a   : > { %s46_s25 = ssub.s32 %s6287_s17, %s11252_s22  ;;  %p6428_p3 = por %p58_p2, %p57_p1 }
  0x1b   : > { %p43_p4 = scmp.ge.s32.totalorder %s11254_s23, 2  ;;  %p63_p5 = scmp.ne.s32.totalorder %s6271_s13, %s6267_s12 }
  0x1c   : > { %p64_p6 = scmp.eq.s32.totalorder %s4980_s20, 0  ;;  %s248_s27 = sadd.s32 1, %s6263_s11 }
  0x1d   : > { %s11256_s23 = smov (%p43_p4, %s11254_s23), 0  ;;  %p258_p8 = scmp.ne.s32.totalorder %s6263_s11, %s6259_s10 }
  0x1e   : > { %10397 = sst [smem:[#allocation21_spill]] %s11256_s23  ;;  %p6436_p7 = por %p64_p6, %p63_p5 }
  0x1f   : > { %s45_s29 = ssub.s32 %s6291_s18, %s11256_s23  ;;  %p259_p9 = scmp.eq.s32.totalorder %s4980_s20, 3 }
  0x20   : > { %s47_s22 = sor.u32 %s46_s25, %s45_s29  ;;  %p246_p10 = scmp.eq.s32.totalorder %s45_s29, 0 }
  0x21   : > { %p48_p11 = scmp.eq.s32.totalorder %s47_s22, 0  ;;  %p6444_p12 = por %p259_p9, %p258_p8 }
  0x22   : > { %s6449_s9 = scalar_select %p246_p10, %s6263_s11, %s248_s27  }
  0x23   : > { %s10399_s12 = scalar_select %p6444_p12, 1, 0 }
  0x24   : > { %10401 = sst [smem:[#allocation23_spill]] %s6449_s9  ;;  %p264_p13 = scmp.ne.s32.totalorder %s6259_s10, %s6255_s30 }
  0x25   : > { %10400 = sst [smem:[#allocation22_spill]] %s10399_s12  ;;  %p265_p0 = scmp.eq.s32.totalorder %s4981_s21, 3 }
  0x26   : > { %s6452_s8 = scalar_select %p48_p11, %s6275_s14, %s50_s24  }
  0x27   : > { %p5927_p1 = scmp.lt.s32.totalorder %s6295_s19, 4  ;;  %p6457_p2 = por %p265_p0, %p264_p13 }
  0x28   : > { %10402 = sst [smem:[#allocation24_spill]] %s6452_s8  ;;  %s317_s20 = sand.u32 1, %s6275_s14  }
  0x29   : > { %s10403_s7 = scalar_select %p6457_p2, 1, 0 }
  0x2a   : > { %s4984_s25 = sshll.u32 %s317_s20, 9  ;;  %s4985_s22 = sshll.u32 %s6287_s17, 1 }
  0x2b   : > { %s4986_s29 = sshll.u32 %s6291_s18, 7  ;;  %s321_s23 = scalar_lea.vmem [#allocation6], %s4984_s25 }
  0x2c   : > { %s330_s6 = sshll.u32 %s321_s23, 4  ;;  %s327_s12 = sadd.s32 %s4986_s29, %s4985_s22  ;;  %s6464_s6 = int_to_ptr.vmem [resolvable:$true] %s330_s6 }
  0x2d   : > { %s4987_s27 = sshll.u32 %s327_s12, 7  ;;  %p6468_p4 = pnand %p5927_p1, %p6428_p3 }
  0x2e   : > { %s10405_s0 = sld [smem:[#allocation175_spill]]  ;;  %s6478_s23 = scalar_lea.sflag [#allocation7], %s317_s20 }
  0x2f   : > { %p6113_p3 = pneg %p6468_p4 }
  0x34   : > { %s6475_s14 = scalar_lea.hbm %s10405_s0, %s4987_s27  ;;  %s6116_s25 = scalar_lea.hbm %s10405_s0, 32768 }
  0x35   : > { %s6111_s12 = scalar_lea.hbm %s6475_s14, 8192  ;;  %p6117_p10 = scmp.lt.u32.totalorder %s6475_s14, %s10405_s0 }
  0x36   : > { %p6112_p6 = scmp.ne.s32.totalorder %s6475_s14, %s6111_s12  ;;  %p6118_p11 = scmp.lt.u32.totalorder %s6116_s25, %s6111_s12 }
  0x37   : > { %p6120_p0 = scmp.lt.u32.totalorder %s6111_s12, %s6475_s14 }
  0x38   : > { %p6114_p8 = pnand %p6113_p3, %p6112_p6  ;;  %p6119_p13 = por %p6118_p11, %p6117_p10 }
  0x3a   : > { %p6115_p9 = pneg %p6114_p8  ;;  %p6121_p1 = por %p6120_p0, %p6119_p13 }
  0x3c   : > { %p6122_p5 = pnand %p6121_p1, %p6115_p9 }
  0x3e   : > { %6125 = shalt.err (!%p6122_p5)
}
  0x3f   : > { %s6126_s20 = scalar_lea.vmem %s6464_s6, 8192  ;;  %s6297_s27 = smov [#allocation6]  }
  0x40   : > { %p6127_p6 = scmp.ne.s32.totalorder %s6464_s6, %s6126_s20  ;;  %s6131_s21 = sshll.u32 %s6297_s27, 4  ;;  %s6132_s21 = int_to_ptr.vmem [resolvable:$false] %s6131_s21 }
  0x41   : > { %s6133_s8 = scalar_lea.vmem %s6132_s21, 16384  ;;  %p6134_p12 = scmp.lt.s32.totalorder %s6464_s6, %s6132_s21 }
  0x42   : > { %p6129_p8 = pnand %p6127_p6, %p6113_p3  ;;  %p6135_p10 = scmp.lt.s32.totalorder %s6133_s8, %s6126_s20 }
  0x44   : > { %p6130_p2 = pneg %p6129_p8  ;;  %p6136_p11 = por %p6135_p10, %p6134_p12 }
  0x46   : > { %p6137_p13 = pnand %p6136_p11, %p6130_p2 }
  0x48   : > { %6140 = shalt.err (!%p6137_p13)
}
  0x49   : > { %s6298_s12 = smov 512   ;;  %s6299_s26 = smov 256  }
  0x4a   : > { %s6300_s25 = smov 16   ;;  %p374_p5 = scmp.lt.s32.totalorder %s6295_s19, 5 }
  0x4b   : > { %5919 = dma.hbm_to_vmem [thread:$0]  (!%p6468_p4), %s6475_s14, 8192, %s6464_s6, %s6478_s23, %s6298_s12, %s6299_s26, %s6300_s25  }
  0x4c   : > { %p10406_p3 = scmp.ge.s32.totalorder %s6295_s19, 1 }
  0x4e   : > { %p375_p9 = pnand %p10406_p3, %p374_p5 }
  0x50   : > { %378 = sbr.rel (%p375_p9) target bundleno = 2271 (0x8df), region = 52 }
  0x57   : > { %s380_s22 = sand.u32 1, %s6271_s13  }
  0x58   : > { %s4989_s29 = sshll.u32 %s380_s22, 9  ;;  %s381_s20 = scalar_lea.sflag [#allocation7], %s380_s22 }
  0x59   : > { %s6510_s27 = scalar_lea.vmem [#allocation6], %s4989_s29 }
  0x5a   : > { %6242 = dma.done.wait (%p6436_p7), %s381_s20, 8192  }
  0x5b   : > { %6244 = vsyncadd (%p6436_p7), %s381_s20, 4294959104  ;;  %s6517_s6 = sand.u32 1, %s6259_s10   ;;  %p445_p12 = scmp.lt.s32.totalorder %s6283_s16, 1 }
  0x5c   : > { %s4990_s14 = sshll.u32 %s6517_s6, 2  ;;  %s10407_s1 = sld [smem:[#allocation176_spill]] }
  0x5d   : > { %s6522_s24 = scalar_select %p445_p12, %s6283_s16, 1 }
  0x5e   : > { %s6551_s28 = scalar_lea.vmem [#allocation9], %s4990_s14  ;;  %p4997_p7 = scmp.ne.s32.totalorder %s6279_s15, 0 }
  0x5f   : > { %s5011_s23 = sshll.u32 %s6522_s24, 8  ;;  %s5012_s21 = sshll.u32 %s6522_s24, 7  ;;  %v6301_v0 = vmov (!%p4997_p7), -1e+30   ;;  %v6302_v1 = vmov (!%p4997_p7), 0.0  }
  0x60   : > { %s6534_s22 = scalar_lea.vmem %s9921_s2, %s5012_s21  ;;  %s457_s0 = scalar_lea.vmem %s9922_s3, %s6522_s24  ;;  %470 = vst [vmem:[#allocation2] sm:$0x1] (!%p4997_p7), %v6301_v0  ;;  %471 = vst [vmem:[#allocation3] sm:$0x1] (!%p4997_p7), %v6302_v1 }
  0x61   : > { %s6543_s13 = scalar_lea.vmem %s9923_s4, %s5011_s23  ;;  %s6549_s8 = scalar_lea.vmem %s9924_s5, %s6522_s24  ;;  %472 = vst [vmem:[#allocation4] sm:$0xff] (!%p4997_p7), %v6302_v1  ;;  %473 = vst [vmem:[#allocation4 + $0x8] sm:$0xff] (!%p4997_p7), %v6302_v1 }
  0x62   : > { %s6529_s12 = scalar_lea.vmem %s10407_s1, %s5011_s23  ;;  %s443_s1 = scalar_lea.vmem [#allocation10], %s6517_s6  ;;  %474 = vst [vmem:[#allocation4 + $0x10] sm:$0xff] (!%p4997_p7), %v6302_v1  ;;  %475 = vst [vmem:[#allocation4 + $0x18] sm:$0xff] (!%p4997_p7), %v6302_v1 }
  0x63   : > { %469 = sbr.rel (%p4997_p7) target bundleno = 113 (0x71), region = 60  ;;  %476 = vst [vmem:[#allocation4 + $0x20] sm:$0xff] (!%p4997_p7), %v6302_v1  ;;  %477 = vst [vmem:[#allocation4 + $0x28] sm:$0xff] (!%p4997_p7), %v6302_v1 }
  0x64   : > { %478 = vst [vmem:[#allocation4 + $0x30] sm:$0xff] (!%p4997_p7), %v6302_v1  ;;  %479 = vst [vmem:[#allocation4 + $0x38] sm:$0xff] (!%p4997_p7), %v6302_v1 }
  0x65   : > { %480 = vst [vmem:[#allocation4 + $0x40] sm:$0xff] (!%p4997_p7), %v6302_v1  ;;  %481 = vst [vmem:[#allocation4 + $0x48] sm:$0xff] (!%p4997_p7), %v6302_v1 }
  0x66   : > { %482 = vst [vmem:[#allocation4 + $0x50] sm:$0xff] (!%p4997_p7), %v6302_v1  ;;  %483 = vst [vmem:[#allocation4 + $0x58] sm:$0xff] (!%p4997_p7), %v6302_v1 }
  0x67   : > { %484 = vst [vmem:[#allocation4 + $0x60] sm:$0xff] (!%p4997_p7), %v6302_v1  ;;  %485 = vst [vmem:[#allocation4 + $0x68] sm:$0xff] (!%p4997_p7), %v6302_v1 }
  0x68   : > { %486 = vst [vmem:[#allocation4 + $0x70] sm:$0xff] (!%p4997_p7), %v6302_v1  ;;  %487 = vst [vmem:[#allocation4 + $0x78] sm:$0xff] (!%p4997_p7), %v6302_v1 }
  0x69   : > { %488 = vst [vmem:[#allocation4 + $0x80] sm:$0xff] (!%p4997_p7), %v6302_v1  ;;  %489 = vst [vmem:[#allocation4 + $0x88] sm:$0xff] (!%p4997_p7), %v6302_v1 }
  0x6a   : > { %490 = vst [vmem:[#allocation4 + $0x90] sm:$0xff] %v6302_v1  ;;  %491 = vst [vmem:[#allocation4 + $0x98] sm:$0xff] %v6302_v1 }
  0x6b   : > { %492 = vst [vmem:[#allocation4 + $0xa0] sm:$0xff] %v6302_v1  ;;  %493 = vst [vmem:[#allocation4 + $0xa8] sm:$0xff] %v6302_v1 }
  0x6c   : > { %494 = vst [vmem:[#allocation4 + $0xb0] sm:$0xff] %v6302_v1  ;;  %495 = vst [vmem:[#allocation4 + $0xb8] sm:$0xff] %v6302_v1 }
  0x6d   : > { %496 = vst [vmem:[#allocation4 + $0xc0] sm:$0xff] %v6302_v1  ;;  %497 = vst [vmem:[#allocation4 + $0xc8] sm:$0xff] %v6302_v1 }
  0x6e   : > { %498 = vst [vmem:[#allocation4 + $0xd0] sm:$0xff] %v6302_v1  ;;  %499 = vst [vmem:[#allocation4 + $0xd8] sm:$0xff] %v6302_v1 }
  0x6f   : > { %500 = vst [vmem:[#allocation4 + $0xe0] sm:$0xff] %v6302_v1  ;;  %501 = vst [vmem:[#allocation4 + $0xe8] sm:$0xff] %v6302_v1 }
  0x70   : > { %502 = vst [vmem:[#allocation4 + $0xf0] sm:$0xff] %v6302_v1  ;;  %503 = vst [vmem:[#allocation4 + $0xf8] sm:$0xff] %v6302_v1 }
  0x71 PF: > { %v6556_v2 = vld [vmem:[%s6510_s27 + $0x8] sm:$0xff]  ;;  %v6559_v3 = vld [vmem:[%s6510_s27 + $0x18] sm:$0xff]  ;;  %v6562_v4 = vld [vmem:[%s6510_s27] sm:$0xff]  ;;  %p4998_p2 = scmp.ne.s32.totalorder %s6283_s16, 1 }
  0x72   : > { %10408 = vst [vmem:[#allocation25_spill] sm:$0xff] %v6556_v2  ;;  %10409 = vst [vmem:[#allocation26_spill] sm:$0xff] %v6559_v3  ;;  %v9985_v5 = vand.u32 4294901760, %v6556_v2  ;;  %v9984_v6 = vand.u32 4294901760, %v6559_v3  ;;  %v6567_v7 = vld [vmem:[%s6510_s27 + $0x10] sm:$0xff]  ;;  %v9981_v8 = vand.u32 4294901760, %v6562_v4 }
  0x73   : > { %10410 = vst [vmem:[#allocation27_spill] sm:$0xff] %v6562_v4  ;;  %10411 = vst [vmem:[#allocation28_spill] sm:$0xff] %v6567_v7  ;;  %v6571_v9 = vld [vmem:[%s6510_s27 + $0x28] sm:$0xff]  ;;  %v6574_v10 = vld [vmem:[%s6510_s27 + $0x38] sm:$0xff]  ;;  %v9979_v11 = vand.u32 4294901760, %v6567_v7  ;;  %s11230_s18 = sld [smem:[#allocation177_spill]] (!%p4998_p2) }
  0x74   : > { %10412 = vst [vmem:[#allocation29_spill] sm:$0xff] %v6571_v9  ;;  %10413 = vst [vmem:[#allocation30_spill] sm:$0xff] %v6574_v10  ;;  %v9978_v12 = vand.u32 4294901760, %v6571_v9  ;;  %v9976_v13 = vand.u32 4294901760, %v6574_v10  ;;  %v6580_v14 = vld [vmem:[%s6510_s27 + $0x20] sm:$0xff]  ;;  %v6583_v15 = vld [vmem:[%s6510_s27 + $0x30] sm:$0xff]  ;;  %v6588_v16 = vsub.f32 %v6556_v2, %v9985_v5  ;;  %v6593_v17 = vsub.f32 %v6559_v3, %v9984_v6 }
  0x75   : > { %10414 = vst [vmem:[#allocation31_spill] sm:$0xff] %v6580_v14  ;;  %10415 = vst [vmem:[#allocation32_spill] sm:$0xff] %v6583_v15  ;;  %v6598_v18 = vsub.f32 %v6562_v4, %v9981_v8  ;;  %v9974_v19 = vand.u32 4294901760, %v6580_v14  ;;  %v6604_v20 = vsub.f32 %v6567_v7, %v9979_v11  ;;  %v9971_v23 = vand.u32 4294901760, %v6583_v15  ;;  %v6654_v40 = vld [vmem:[%s6510_s27 + $0x48] sm:$0xff]  ;;  %v6657_v41 = vld [vmem:[%s6510_s27 + $0x58] sm:$0xff] }
  0x76   : > { %10416 = vst [vmem:[#allocation33_spill] sm:$0xff] %v6588_v16  ;;  %10417 = vst [vmem:[#allocation34_spill] sm:$0xff] %v6593_v17  ;;  %v6609_v21 = vsub.f32 %v6571_v9, %v9978_v12  ;;  %v6614_v22 = vsub.f32 %v6574_v10, %v9976_v13  ;;  %v9953_v24 = vand.u32 4294901760, %v6588_v16  ;;  %v9952_v25 = vand.u32 4294901760, %v6593_v17  ;;  %v6663_v46 = vld [vmem:[%s6510_s27 + $0x40] sm:$0xff]  ;;  %v6669_v51 = vld [vmem:[%s6510_s27 + $0x50] sm:$0xff] }
  0x77   : > { %10418 = vst [vmem:[#allocation35_spill] sm:$0xff] %v6598_v18  ;;  %10419 = vst [vmem:[#allocation36_spill] sm:$0xff] %v6604_v20  ;;  %v9951_v26 = vand.u32 4294901760, %v6598_v18  ;;  %v6623_v27 = vsub.f32 %v6580_v14, %v9974_v19  ;;  %v9950_v28 = vand.u32 4294901760, %v6604_v20  ;;  %v6631_v31 = vsub.f32 %v6583_v15, %v9971_v23  ;;  %v6672_v52 = vld [vmem:[%s6510_s27 + $0x68] sm:$0xff]  ;;  %v6677_v57 = vld [vmem:[%s6510_s27 + $0x78] sm:$0xff] }
  0x78   : > { %10420 = vst [vmem:[#allocation37_spill] sm:$0xff] %v6609_v21  ;;  %10421 = vst [vmem:[#allocation38_spill] sm:$0xff] %v6614_v22  ;;  %v9948_v29 = vand.u32 4294901760, %v6609_v21  ;;  %v9947_v30 = vand.u32 4294901760, %v6614_v22  ;;  %v1086_v32 = vsub.f32 %v6588_v16, %v9953_v24  ;;  %v1098_v33 = vsub.f32 %v6593_v17, %v9952_v25  ;;  %v6680_v58 = vld [vmem:[%s6510_s27 + $0x60] sm:$0xff]  ;;  %v6842_v19 = vld [vmem:[%s6510_s27 + $0xc8] sm:$0xff] }
  0x79   : > { %10422 = vst [vmem:[#allocation39_spill] sm:$0xff] %v6623_v27  ;;  %10423 = vst [vmem:[#allocation40_spill] sm:$0xff] %v6631_v31  ;;  %v1092_v34 = vsub.f32 %v6598_v18, %v9951_v26  ;;  %v9944_v35 = vand.u32 4294901760, %v6623_v27  ;;  %v1104_v36 = vsub.f32 %v6604_v20, %v9950_v28  ;;  %v9943_v39 = vand.u32 4294901760, %v6631_v31  ;;  %v6757_v28 = vld [vmem:[%s6510_s27 + $0x98] sm:$0xff]  ;;  %v6767_v24 = vld [vmem:[%s6510_s27 + $0x80] sm:$0xff]  ;;  %s11231_s24 = smov (!%p4998_p2), %s11230_s18 }
  0x7a   : > { %v1110_v37 = vsub.f32 %v6609_v21, %v9948_v29  ;;  %v1122_v38 = vsub.f32 %v6614_v22, %v9947_v30  ;;  %10424 = vst [vmem:[#allocation41_spill] sm:$0xff] %v6654_v40  ;;  %10425 = vst [vmem:[#allocation42_spill] sm:$0xff] %v6657_v41  ;;  %v1087_v42 = vand.u32 4294901760, %v1086_v32  ;;  %v1099_v43 = vand.u32 4294901760, %v1098_v33  ;;  %v6696_v33 = vld [vmem:[%s6510_s27 + $0x70] sm:$0xff]  ;;  %v6868_v5 = vld [vmem:[%s6510_s27 + $0xc0] sm:$0xff] }
  0x7b   : > { %v1093_v44 = vand.u32 4294901760, %v1092_v34  ;;  %v1116_v45 = vsub.f32 %v6623_v27, %v9944_v35  ;;  %10426 = vst [vmem:[#allocation43_spill] sm:$0xff] %v6663_v46  ;;  %v1105_v47 = vand.u32 4294901760, %v1104_v36  ;;  %v1128_v50 = vsub.f32 %v6631_v31, %v9943_v39  ;;  %10427 = vst [vmem:[#allocation44_spill] sm:$0xff] %v6669_v51  ;;  %v7275_v2 = vld [vmem:[%s6510_s27 + $0x1c0] sm:$0xff]  ;;  %s11232_s20 = sld [smem:[#allocation178_spill]] (!%p4998_p2) }
  0x7c   : > { %v1111_v48 = vand.u32 4294901760, %v1110_v37  ;;  %v1123_v49 = vand.u32 4294901760, %v1122_v38  ;;  %10428 = vst [vmem:[#allocation45_spill] sm:$0xff] %v6672_v52  ;;  %v5114_v53 = vpack.c.bf16 %v1099_v43, %v1087_v42  ;;  %v9970_v55 = vand.u32 4294901760, %v6654_v40  ;;  %10429 = vst [vmem:[#allocation46_spill] sm:$0xff] %v6677_v57 }
  0x7d   : > { %v1117_v54 = vand.u32 4294901760, %v1116_v45  ;;  %v9964_v56 = vand.u32 4294901760, %v6657_v41  ;;  %10430 = vst [vmem:[#allocation47_spill] sm:$0xff] %v6680_v58  ;;  %v5116_v59 = vpack.c.bf16 %v1105_v47, %v1093_v44  ;;  %v1129_v61 = vand.u32 4294901760, %v1128_v50  ;;  %10433 = vst [vmem:[#allocation50_spill] sm:$0xff] %v6696_v33 }
  0x7e   : > { %v5118_v60 = vpack.c.bf16 %v1123_v49, %v1111_v48  ;;  %v9963_v62 = vand.u32 4294901760, %v6663_v46  ;;  %5115 = vmatprep.subr.bf16.mxu0 %v5114_v53  ;;  %v6686_v63 = vsub.f32 %v6654_v40, %v9970_v55  ;;  %v9962_v1 = vand.u32 4294901760, %v6669_v51  ;;  %10441 = vst [vmem:[#allocation58_spill] sm:$0xff] %v6757_v28  ;;  %10442 = vst [vmem:[#allocation59_spill] sm:$0xff] %v6767_v24  ;;  %v7076_v40 = vld [vmem:[%s6510_s27 + $0x150] sm:$0xff] }
  0x7f   : > { %v6691_v0 = vsub.f32 %v6657_v41, %v9964_v56  ;;  %v9959_v32 = vand.u32 4294901760, %v6672_v52  ;;  %5117 = vmatpush1.bf16.msra.mxu0 %v5116_v59  ;;  %v5120_v34 = vpack.c.bf16 %v1129_v61, %v1117_v54  ;;  %v9958_v37 = vand.u32 4294901760, %v6677_v57  ;;  %10455 = vst [vmem:[#allocation72_spill] sm:$0xff] %v6842_v19  ;;  %10458 = vst [vmem:[#allocation75_spill] sm:$0xff] %v6868_v5 }
  0x80   : > { %10431 = vst [vmem:[#allocation48_spill] sm:$0xff] %v6686_v63  ;;  %v6701_v36 = vsub.f32 %v6663_v46, %v9963_v62  ;;  %v9957_v38 = vand.u32 4294901760, %v6680_v58  ;;  %5119 = vmatprep.subr.bf16.mxu0 %v5118_v60  ;;  %v9945_v42 = vand.u32 4294901760, %v6686_v63  ;;  %v6710_v44 = vsub.f32 %v6669_v51, %v9962_v1  ;;  %v6781_v62 = vld [vmem:[%s6510_s27 + $0xb8] sm:$0xff]  ;;  %10501 = vst [vmem:[#allocation108_spill] sm:$0xff] %v7076_v40 }
  0x81   : > { %10432 = vst [vmem:[#allocation49_spill] sm:$0xff] %v6691_v0  ;;  %v9946_v43 = vand.u32 4294901760, %v6691_v0  ;;  %v6715_v45 = vsub.f32 %v6672_v52, %v9959_v32  ;;  %v6721_v48 = vsub.f32 %v6677_v57, %v9958_v37  ;;  %v9956_v49 = vand.u32 4294901760, %v6696_v33  ;;  %v6774_v37 = vld [vmem:[%s6510_s27 + $0xa8] sm:$0xff]  ;;  %10445 = vst [vmem:[#allocation62_spill] sm:$0xff] %v6781_v62 }
  0x82   : > { %10434 = vst [vmem:[#allocation51_spill] sm:$0xff] %v6701_v36  ;;  %10435 = vst [vmem:[#allocation52_spill] sm:$0xff] %v6710_v44  ;;  %v9949_v47 = vand.u32 4294901760, %v6701_v36  ;;  %v6727_v50 = vsub.f32 %v6680_v58, %v9957_v38  ;;  %v1134_v53 = vsub.f32 %v6686_v63, %v9945_v42  ;;  %v9954_v59 = vand.u32 4294901760, %v6710_v44  ;;  %v6975_v58 = vld [vmem:[%s6510_s27 + $0x110] sm:$0xff] }
  0x83   : > { %10436 = vst [vmem:[#allocation53_spill] sm:$0xff] %v6715_v45  ;;  %10437 = vst [vmem:[#allocation54_spill] sm:$0xff] %v6721_v48  ;;  %v1146_v54 = vsub.f32 %v6691_v0, %v9946_v43  ;;  %v9955_v60 = vand.u32 4294901760, %v6715_v45  ;;  %5121 = vmatpush1.bf16.msra.mxu0 %v5120_v34  ;;  %v9960_v39 = vand.u32 4294901760, %v6721_v48  ;;  %v6745_v42 = vsub.f32 %v6696_v33, %v9956_v49  ;;  %v6748_v43 = vld [vmem:[%s6510_s27 + $0x88] sm:$0xff] }
  0x84   : > { %10438 = vst [vmem:[#allocation55_spill] sm:$0xff] %v6727_v50  ;;  %v1140_v61 = vsub.f32 %v6701_v36, %v9949_v47  ;;  %v9961_v35 = vand.u32 4294901760, %v6727_v50  ;;  %10440 = vst [vmem:[#allocation57_spill] sm:$0xff] %v6748_v43  ;;  %v1135_v30 = vand.u32 4294901760, %v1134_v53  ;;  %v1152_v34 = vsub.f32 %v6710_v44, %v9954_v59  ;;  %v6770_v59 = vld [vmem:[%s6510_s27 + $0x90] sm:$0xff] }
  0x85   : > { %10439 = vst [vmem:[#allocation56_spill] sm:$0xff] %v6745_v42  ;;  %v1147_v29 = vand.u32 4294901760, %v1146_v54  ;;  %v1158_v47 = vsub.f32 %v6715_v45, %v9955_v60  ;;  %v1170_v25 = vsub.f32 %v6721_v48, %v9960_v39  ;;  %v9965_v54 = vand.u32 4294901760, %v6745_v42  ;;  %10443 = vst [vmem:[#allocation60_spill] sm:$0xff] %v6770_v59 }
  0x86   : > { %v1141_v26 = vand.u32 4294901760, %v1140_v61  ;;  %v1164_v53 = vsub.f32 %v6727_v50, %v9961_v35  ;;  %v1153_v49 = vand.u32 4294901760, %v1152_v34  ;;  %v9967_v61 = vand.u32 4294901760, %v6748_v43  ;;  %10444 = vst [vmem:[#allocation61_spill] sm:$0xff] %v6774_v37  ;;  %10481 = vst [vmem:[#allocation92_spill] sm:$0xff] %v6975_v58 }
  0x87   : > { %v5122_v60 = vpack.c.bf16 %v1147_v29, %v1135_v30  ;;  %v1159_v38 = vand.u32 4294901760, %v1158_v47  ;;  %v1171_v32 = vand.u32 4294901760, %v1170_v25  ;;  %v1176_v35 = vsub.f32 %v6745_v42, %v9965_v54  ;;  %v6791_v47 = vld [vmem:[%s6510_s27 + $0xa0] sm:$0xff]  ;;  %10547 = vst [vmem:[#allocation138_spill] sm:$0xff] %v7275_v2 }
  0x88   : > { %v1165_v39 = vand.u32 4294901760, %v1164_v53  ;;  %v9966_v1 = vand.u32 4294901760, %v6757_v28  ;;  %v5124_v56 = vpack.c.bf16 %v1153_v49, %v1141_v26  ;;  %v6786_v29 = vsub.f32 %v6748_v43, %v9967_v61  ;;  %10447 = vst [vmem:[#allocation64_spill] sm:$0xff] %v6791_v47 }
  0x89   : > { %5123 = vmatprep.subr.bf16.mxu0 %v5122_v60  ;;  %v9968_v30 = vand.u32 4294901760, %v6767_v24  ;;  %v9969_v25 = vand.u32 4294901760, %v6770_v59  ;;  %v5126_v34 = vpack.c.bf16 %v1171_v32, %v1159_v38  ;;  %v1177_v53 = vand.u32 4294901760, %v1176_v35  ;;  %v6812_v38 = vld [vmem:[%s6510_s27 + $0xb0] sm:$0xff] }
  0x8a   : > { %10446 = vst [vmem:[#allocation63_spill] sm:$0xff] %v6786_v29  ;;  %v6796_v54 = vsub.f32 %v6757_v28, %v9966_v1  ;;  %v9972_v26 = vand.u32 4294901760, %v6774_v37  ;;  %5125 = vmatpush1.bf16.msra.mxu0 %v5124_v56  ;;  %v9973_v49 = vand.u32 4294901760, %v6786_v29  ;;  %v9975_v35 = vand.u32 4294901760, %v6781_v62  ;;  %10451 = vst [vmem:[#allocation68_spill] sm:$0xff] %v6812_v38 }
  0x8b   : > { %v6803_v60 = vsub.f32 %v6767_v24, %v9968_v30  ;;  %v6808_v32 = vsub.f32 %v6770_v59, %v9969_v25  ;;  %5127 = vmatprep.subr.bf16.mxu0 %v5126_v34  ;;  %v5128_v1 = vpack.c.bf16 %v1177_v53, %v1165_v39  ;;  %v9980_v30 = vand.u32 4294901760, %v6791_v47  ;;  %v6887_v24 = vld [vmem:[%s6510_s27 + $0xf8] sm:$0xff] }
  0x8c   : > { %10448 = vst [vmem:[#allocation65_spill] sm:$0xff] %v6796_v54  ;;  %v9977_v56 = vand.u32 4294901760, %v6796_v54  ;;  %v6818_v61 = vsub.f32 %v6774_v37, %v9972_v26  ;;  %v1182_v25 = vsub.f32 %v6786_v29, %v9973_v49  ;;  %v6829_v39 = vsub.f32 %v6781_v62, %v9975_v35  ;;  %10463 = vst [vmem:[#allocation79_spill] sm:$0xff] %v6887_v24 }
  0x8d   : > { %10449 = vst [vmem:[#allocation66_spill] sm:$0xff] %v6803_v60  ;;  %10450 = vst [vmem:[#allocation67_spill] sm:$0xff] %v6808_v32  ;;  %v9982_v55 = vand.u32 4294901760, %v6803_v60  ;;  %v9983_v23 = vand.u32 4294901760, %v6808_v32  ;;  %v9988_v26 = vand.u32 4294901760, %v6812_v38  ;;  %v6839_v49 = vsub.f32 %v6791_v47, %v9980_v30 }
  0x8e   : > { %10452 = vst [vmem:[#allocation69_spill] sm:$0xff] %v6818_v61  ;;  %10453 = vst [vmem:[#allocation70_spill] sm:$0xff] %v6829_v39  ;;  %v1194_v34 = vsub.f32 %v6796_v54, %v9977_v56  ;;  %v9986_v53 = vand.u32 4294901760, %v6818_v61  ;;  %5129 = vmatpush1.bf16.msra.mxu0 %v5128_v1  ;;  %v1183_v35 = vand.u32 4294901760, %v1182_v25  ;;  %v9992_v12 = vand.u32 4294901760, %v6829_v39  ;;  %v6861_v25 = vld [vmem:[%s6510_s27 + $0xd8] sm:$0xff] }
  0x8f   : > { %10454 = vst [vmem:[#allocation71_spill] sm:$0xff] %v6839_v49  ;;  %v1188_v13 = vsub.f32 %v6803_v60, %v9982_v55  ;;  %v1200_v56 = vsub.f32 %v6808_v32, %v9983_v23  ;;  %v6858_v1 = vsub.f32 %v6812_v38, %v9988_v26  ;;  %10457 = vst [vmem:[#allocation74_spill] sm:$0xff] %v6861_v25  ;;  %v9995_v6 = vand.u32 4294901760, %v6842_v19 }
  0x90   : > { %v1195_v11 = vand.u32 4294901760, %v1194_v34  ;;  %v1206_v30 = vsub.f32 %v6818_v61, %v9986_v53  ;;  %v1218_v34 = vsub.f32 %v6829_v39, %v9992_v12  ;;  %v6871_v53 = vld [vmem:[%s6510_s27 + $0xd0] sm:$0xff]  ;;  %v10460_v26 = vand.u32 4294901760, %v6839_v49  ;;  %v7163_v61 = vld [vmem:[%s6510_s27 + $0x198] sm:$0xff] }
  0x91   : > { %10456 = vst [vmem:[#allocation73_spill] sm:$0xff] %v6858_v1  ;;  %v1189_v55 = vand.u32 4294901760, %v1188_v13  ;;  %v1201_v23 = vand.u32 4294901760, %v1200_v56  ;;  %10459 = vst [vmem:[#allocation76_spill] sm:$0xff] %v6871_v53  ;;  %v9996_v13 = vand.u32 4294901760, %v6858_v1  ;;  %v6878_v56 = vld [vmem:[%s6510_s27 + $0xe8] sm:$0xff]  ;;  %v6884_v59 = vsub.f32 %v6842_v19, %v9995_v6 }
  0x92   : > { %v5130_v8 = vpack.c.bf16 %v1195_v11, %v1183_v35  ;;  %v1207_v47 = vand.u32 4294901760, %v1206_v30  ;;  %v1212_v38 = vsub.f32 %v6839_v49, %v10460_v26  ;;  %10461 = vst [vmem:[#allocation77_spill] sm:$0xff] %v6878_v56  ;;  %v1219_v37 = vand.u32 4294901760, %v1218_v34  ;;  %10520 = vst [vmem:[#allocation121_spill] sm:$0xff] %v7163_v61 }
  0x93   : > { %v5132_v62 = vpack.c.bf16 %v1201_v23, %v1189_v55  ;;  %v9997_v12 = vand.u32 4294901760, %v6861_v25  ;;  %10462 = vst [vmem:[#allocation78_spill] sm:$0xff] %v6884_v59  ;;  %v1224_v30 = vsub.f32 %v6858_v1, %v9996_v13  ;;  %v9998_v26 = vand.u32 4294901760, %v6868_v5  ;;  %v6895_v55 = vld [vmem:[%s6510_s27 + $0xe0] sm:$0xff] }
  0x94   : > { %5131 = vmatprep.subr.bf16.mxu0 %v5130_v8  ;;  %v1213_v11 = vand.u32 4294901760, %v1212_v38  ;;  %v9999_v23 = vand.u32 4294901760, %v6871_v53  ;;  %10464 = vst [vmem:[#allocation80_spill] sm:$0xff] %v6895_v55  ;;  %v5134_v35 = vpack.c.bf16 %v1219_v37, %v1207_v47  ;;  %v10003_v34 = vand.u32 4294901760, %v6884_v59  ;;  %v6916_v47 = vld [vmem:[%s6510_s27 + $0xf0] sm:$0xff]  ;;  %v7072_v1 = vld [vmem:[%s6510_s27 + $0x140] sm:$0xff] }
  0x95   : > { %5133 = vmatpush1.bf16.msra.mxu0 %v5132_v62  ;;  %v6901_v6 = vsub.f32 %v6861_v25, %v9997_v12  ;;  %v10005_v8 = vand.u32 4294901760, %v6878_v56  ;;  %v1225_v38 = vand.u32 4294901760, %v1224_v30  ;;  %v6907_v13 = vsub.f32 %v6868_v5, %v9998_v26  ;;  %10468 = vst [vmem:[#allocation84_spill] sm:$0xff] %v6916_v47  ;;  %10500 = vst [vmem:[#allocation107_spill] sm:$0xff] %v7072_v1 }
  0x96   : > { %v6912_v62 = vsub.f32 %v6871_v53, %v9999_v23  ;;  %5135 = vmatprep.subr.bf16.mxu0 %v5134_v35  ;;  %v1230_v12 = vsub.f32 %v6884_v59, %v10003_v34  ;;  %v10012_v23 = vand.u32 4294901760, %v6895_v55  ;;  %v10470_v35 = vand.u32 4294901760, %v6887_v24  ;;  %v6936_v34 = vld [vmem:[%s6510_s27 + $0x108] sm:$0xff] }
  0x97   : > { %10465 = vst [vmem:[#allocation81_spill] sm:$0xff] %v6901_v6  ;;  %10466 = vst [vmem:[#allocation82_spill] sm:$0xff] %v6907_v13  ;;  %v6925_v26 = vsub.f32 %v6878_v56, %v10005_v8  ;;  %v5136_v53 = vpack.c.bf16 %v1225_v38, %v1213_v11  ;;  %v10008_v37 = vand.u32 4294901760, %v6907_v13  ;;  %v10473_v19 = vand.u32 4294901760, %v6901_v6  ;;  %v6956_v56 = vld [vmem:[%s6510_s27 + $0x118] sm:$0xff] }
  0x98   : > { %10467 = vst [vmem:[#allocation83_spill] sm:$0xff] %v6912_v62  ;;  %v10010_v5 = vand.u32 4294901760, %v6912_v62  ;;  %v6933_v25 = vsub.f32 %v6887_v24, %v10470_v35  ;;  %10472 = vst [vmem:[#allocation87_spill] sm:$0xff] %v6936_v34  ;;  %v1231_v30 = vand.u32 4294901760, %v1230_v12  ;;  %v10483_v52 = vand.u32 4294901760, %v6936_v34 }
  0x99   : > { %10469 = vst [vmem:[#allocation85_spill] sm:$0xff] %v6925_v26  ;;  %v1242_v8 = vsub.f32 %v6901_v6, %v10473_v19  ;;  %5137 = vmatpush1.bf16.msra.mxu0 %v5136_v53  ;;  %v1236_v38 = vsub.f32 %v6907_v13, %v10008_v37  ;;  %v6953_v19 = vsub.f32 %v6895_v55, %v10012_v23  ;;  %10475 = vst [vmem:[#allocation89_spill] sm:$0xff] %v6956_v56  ;;  %vm3953_vm1 = vcmask (!%p4998_p2), 523264  }
  0x9a   : > { %10471 = vst [vmem:[#allocation86_spill] sm:$0xff] %v6933_v25  ;;  %v1248_v35 = vsub.f32 %v6912_v62, %v10010_v5  ;;  %v10476_v53 = vand.u32 4294901760, %v6925_v26  ;;  %v10477_v37 = vand.u32 4294901760, %v6916_v47  ;;  %v10479_v23 = vand.u32 4294901760, %v6933_v25 }
  0x9b   : > { %10474 = vst [vmem:[#allocation88_spill] sm:$0xff] %v6953_v19  ;;  %v1243_v11 = vand.u32 4294901760, %v1242_v8  ;;  %v1237_v12 = vand.u32 4294901760, %v1236_v38  ;;  %v10020_v33 = vand.u32 4294901760, %v6953_v19  ;;  %v6972_v8 = vld [vmem:[%s6510_s27 + $0x100] sm:$0xff]  ;;  %v10023_v5 = vand.u32 4294901760, %v6956_v56 }
  0x9c   : > { %v1254_v24 = vsub.f32 %v6925_v26, %v10476_v53  ;;  %v6964_v28 = vsub.f32 %v6916_v47, %v10477_v37  ;;  %v1249_v43 = vand.u32 4294901760, %v1248_v35  ;;  %v1266_v55 = vsub.f32 %v6933_v25, %v10479_v23  ;;  %10480 = vst [vmem:[#allocation91_spill] sm:$0xff] %v6972_v8  ;;  %v6980_v38 = vld [vmem:[%s6510_s27 + $0x128] sm:$0xff] }
  0x9d   : > { %v5138_v53 = vpack.c.bf16 %v1243_v11, %v1231_v30  ;;  %10482 = vst [vmem:[#allocation93_spill] sm:$0xff] %v6980_v38  ;;  %v1260_v23 = vsub.f32 %v6953_v19, %v10020_v33  ;;  %v6988_v51 = vsub.f32 %v6936_v34, %v10483_v52  ;;  %v10027_v30 = vand.u32 4294901760, %v6975_v58  ;;  %v7001_v11 = vld [vmem:[%s6510_s27 + $0x138] sm:$0xff] }
  0x9e   : > { %10478 = vst [vmem:[#allocation90_spill] sm:$0xff] %v6964_v28  ;;  %v1255_v57 = vand.u32 4294901760, %v1254_v24  ;;  %v10021_v37 = vand.u32 4294901760, %v6964_v28  ;;  %v5140_v35 = vpack.c.bf16 %v1249_v43, %v1237_v12  ;;  %v1267_v47 = vand.u32 4294901760, %v1266_v55  ;;  %10486 = vst [vmem:[#allocation96_spill] sm:$0xff] %v7001_v11  ;;  %v7004_v12 = vld [vmem:[%s6510_s27 + $0x120] sm:$0xff] }
  0x9f   : > { %10484 = vst [vmem:[#allocation94_spill] sm:$0xff] %v6988_v51  ;;  %5139 = vmatprep.subr.bf16.mxu0 %v5138_v53  ;;  %v6996_v43 = vsub.f32 %v6956_v56, %v10023_v5  ;;  %v10026_v55 = vand.u32 4294901760, %v6972_v8  ;;  %10487 = vst [vmem:[#allocation97_spill] sm:$0xff] %v7004_v12  ;;  %v1261_v53 = vand.u32 4294901760, %v1260_v23  ;;  %v10029_v33 = vand.u32 4294901760, %v6988_v51 }
  0xa0   : > { %v1272_v24 = vsub.f32 %v6964_v28, %v10021_v37  ;;  %5141 = vmatpush1.bf16.msra.mxu0 %v5140_v35  ;;  %v5142_v52 = vpack.c.bf16 %v1267_v47, %v1255_v57  ;;  %v10031_v37 = vand.u32 4294901760, %v6980_v38  ;;  %v7017_v46 = vsub.f32 %v6975_v58, %v10027_v30  ;;  %v7020_v57 = vld [vmem:[%s6510_s27 + $0x130] sm:$0xff] }
  0xa1   : > { %10485 = vst [vmem:[#allocation95_spill] sm:$0xff] %v6996_v43  ;;  %v10033_v5 = vand.u32 4294901760, %v6996_v43  ;;  %v7012_v56 = vsub.f32 %v6972_v8, %v10026_v55  ;;  %10490 = vst [vmem:[#allocation100_spill] sm:$0xff] %v7020_v57  ;;  %v1278_v47 = vsub.f32 %v6988_v51, %v10029_v33  ;;  %v7038_v33 = vld [vmem:[%s6510_s27 + $0x148] sm:$0xff]  ;;  %v10510_v39 = vand.u32 4294901760, %v7076_v40 }
  0xa2   : > { %v1273_v34 = vand.u32 4294901760, %v1272_v24  ;;  %10489 = vst [vmem:[#allocation99_spill] sm:$0xff] %v7017_v46  ;;  %5143 = vmatprep.subr.bf16.mxu0 %v5142_v52  ;;  %v7029_v23 = vsub.f32 %v6980_v38, %v10031_v37  ;;  %v10039_v24 = vand.u32 4294901760, %v7004_v12  ;;  %v10036_v58 = vand.u32 4294901760, %v7017_v46  ;;  %10492 = vst [vmem:[#allocation102_spill] sm:$0xff] %v7038_v33 }
  0xa3   : > { %10488 = vst [vmem:[#allocation98_spill] sm:$0xff] %v7012_v56  ;;  %v1290_v30 = vsub.f32 %v6996_v43, %v10033_v5  ;;  %v10034_v52 = vand.u32 4294901760, %v7012_v56  ;;  %v1279_v35 = vand.u32 4294901760, %v1278_v47  ;;  %v10493_v37 = vand.u32 4294901760, %v7001_v11 }
  0xa4   : > { %10491 = vst [vmem:[#allocation101_spill] sm:$0xff] %v7029_v23  ;;  %v5144_v55 = vpack.c.bf16 %v1273_v34, %v1261_v53  ;;  %v1296_v47 = vsub.f32 %v7017_v46, %v10036_v58  ;;  %v7056_v8 = vsub.f32 %v7004_v12, %v10039_v24  ;;  %v10497_v34 = vand.u32 4294901760, %v7029_v23  ;;  %v7084_v58 = vld [vmem:[%s6510_s27 + $0x168] sm:$0xff] }
  0xa5   : > { %v7044_v38 = vsub.f32 %v7001_v11, %v10493_v37  ;;  %v1291_v53 = vand.u32 4294901760, %v1290_v30  ;;  %v1284_v5 = vsub.f32 %v7012_v56, %v10034_v52  ;;  %v7059_v37 = vld [vmem:[%s6510_s27 + $0x158] sm:$0xff]  ;;  %v10498_v52 = vand.u32 4294901760, %v7020_v57  ;;  %10502 = vst [vmem:[#allocation109_spill] sm:$0xff] %v7084_v58 }
  0xa6   : > { %5145 = vmatpush1.bf16.msra.mxu0 %v5144_v55  ;;  %10495 = vst [vmem:[#allocation104_spill] sm:$0xff] %v7056_v8  ;;  %10496 = vst [vmem:[#allocation105_spill] sm:$0xff] %v7059_v37  ;;  %v1302_v55 = vsub.f32 %v7029_v23, %v10497_v34  ;;  %v1297_v49 = vand.u32 4294901760, %v1296_v47  ;;  %v10049_v41 = vand.u32 4294901760, %v7056_v8  ;;  %v10505_v14 = vand.u32 4294901760, %v7059_v37 }
  0xa7   : > { %10494 = vst [vmem:[#allocation103_spill] sm:$0xff] %v7044_v38  ;;  %v10047_v30 = vand.u32 4294901760, %v7044_v38  ;;  %v7068_v11 = vsub.f32 %v7020_v57, %v10498_v52  ;;  %v5146_v24 = vpack.c.bf16 %v1291_v53, %v1279_v35  ;;  %v1285_v12 = vand.u32 4294901760, %v1284_v5 }
  0xa8   : > { %v1303_v34 = vand.u32 4294901760, %v1302_v55  ;;  %v1308_v35 = vsub.f32 %v7056_v8, %v10049_v41  ;;  %v10503_v53 = vand.u32 4294901760, %v7038_v33  ;;  %v10055_v55 = vand.u32 4294901760, %v7072_v1 }
  0xa9   : > { %10499 = vst [vmem:[#allocation106_spill] sm:$0xff] %v7068_v11  ;;  %v1314_v15 = vsub.f32 %v7044_v38, %v10047_v30  ;;  %v10050_v52 = vand.u32 4294901760, %v7068_v11  ;;  %5147 = vmatprep.subr.bf16.mxu0 %v5146_v24  ;;  %v5148_v5 = vpack.c.bf16 %v1297_v49, %v1285_v12  ;;  %v7101_v49 = vsub.f32 %v7059_v37, %v10505_v14  ;;  %v7105_v24 = vld [vmem:[%s6510_s27 + $0x178] sm:$0xff] }
  0xaa   : > { %v7092_v47 = vsub.f32 %v7038_v33, %v10503_v53  ;;  %10507 = vst [vmem:[#allocation112_spill] sm:$0xff] %v7105_v24  ;;  %v1309_v53 = vand.u32 4294901760, %v1308_v35  ;;  %v7115_v33 = vld [vmem:[%s6510_s27 + $0x160] sm:$0xff]  ;;  %v10529_v4 = vand.u32 4294901760, %v7163_v61 }
  0xab   : > { %v1315_v30 = vand.u32 4294901760, %v1314_v15  ;;  %v1320_v57 = vsub.f32 %v7068_v11, %v10050_v52  ;;  %10506 = vst [vmem:[#allocation111_spill] sm:$0xff] %v7101_v49  ;;  %5149 = vmatpush1.bf16.msra.mxu0 %v5148_v5  ;;  %v7111_v15 = vsub.f32 %v7072_v1, %v10055_v55  ;;  %10509 = vst [vmem:[#allocation114_spill] sm:$0xff] %v7115_v33  ;;  %v10062_v12 = vand.u32 4294901760, %v7101_v49  ;;  %v7142_v52 = vld [vmem:[%s6510_s27 + $0x188] sm:$0xff] }
  0xac   : > { %10504 = vst [vmem:[#allocation110_spill] sm:$0xff] %v7092_v47  ;;  %v10057_v41 = vand.u32 4294901760, %v7092_v47  ;;  %v7121_v5 = vsub.f32 %v7076_v40, %v10510_v39  ;;  %v10512_v1 = vand.u32 4294901760, %v7084_v58  ;;  %v10070_v55 = vand.u32 4294901760, %v7115_v33  ;;  %10515 = vst [vmem:[#allocation118_spill] sm:$0xff] %v7142_v52 }
  0xad   : > { %10508 = vst [vmem:[#allocation113_spill] sm:$0xff] %v7111_v15  ;;  %v5150_v14 = vpack.c.bf16 %v1315_v30, %v1303_v34  ;;  %v1321_v37 = vand.u32 4294901760, %v1320_v57  ;;  %v7134_v57 = vld [vmem:[%s6510_s27 + $0x170] sm:$0xff]  ;;  %v1338_v39 = vsub.f32 %v7101_v49, %v10062_v12 }
  0xae   : > { %10511 = vst [vmem:[#allocation115_spill] sm:$0xff] %v7121_v5  ;;  %v1326_v35 = vsub.f32 %v7092_v47, %v10057_v41  ;;  %v7131_v30 = vsub.f32 %v7084_v58, %v10512_v1  ;;  %10514 = vst [vmem:[#allocation117_spill] sm:$0xff] %v7134_v57  ;;  %v10066_v41 = vand.u32 4294901760, %v7121_v5  ;;  %v10516_v1 = vand.u32 4294901760, %v7111_v15 }
  0xaf   : > { %5151 = vmatprep.subr.bf16.mxu0 %v5150_v14  ;;  %v5152_v34 = vpack.c.bf16 %v1321_v37, %v1309_v53  ;;  %v10517_v37 = vand.u32 4294901760, %v7105_v24  ;;  %v1339_v14 = vand.u32 4294901760, %v1338_v39 }
  0xb0   : > { %10513 = vst [vmem:[#allocation116_spill] sm:$0xff] %v7131_v30  ;;  %v1327_v40 = vand.u32 4294901760, %v1326_v35  ;;  %v1332_v58 = vsub.f32 %v7111_v15, %v10516_v1  ;;  %v1344_v12 = vsub.f32 %v7121_v5, %v10066_v41  ;;  %v7160_v1 = vsub.f32 %v7115_v33, %v10070_v55  ;;  %v7171_v41 = vld [vmem:[%s6510_s27 + $0x180] sm:$0xff] }
  0xb1   : > { %v7151_v53 = vsub.f32 %v7105_v24, %v10517_v37  ;;  %5153 = vmatpush1.bf16.msra.mxu0 %v5152_v34  ;;  %v10521_v37 = vand.u32 4294901760, %v7131_v30  ;;  %10522 = vst [vmem:[#allocation122_spill] sm:$0xff] %v7171_v41  ;;  %v10523_v55 = vand.u32 4294901760, %v7134_v57 }
  0xb2   : > { %10519 = vst [vmem:[#allocation120_spill] sm:$0xff] %v7160_v1  ;;  %v1333_v32 = vand.u32 4294901760, %v1332_v58  ;;  %v5154_v35 = vpack.c.bf16 %v1339_v14, %v1327_v40  ;;  %v1345_v60 = vand.u32 4294901760, %v1344_v12  ;;  %v10078_v10 = vand.u32 4294901760, %v7160_v1  ;;  %v7180_v58 = vld [vmem:[%s6510_s27 + $0x190] sm:$0xff]  ;;  %v7192_v14 = vld [vmem:[%s6510_s27 + $0x1a8] sm:$0xff] }
  0xb3   : > { %10518 = vst [vmem:[#allocation119_spill] sm:$0xff] %v7151_v53  ;;  %v1350_v34 = vsub.f32 %v7131_v30, %v10521_v37  ;;  %v10074_v39 = vand.u32 4294901760, %v7151_v53  ;;  %v7177_v33 = vsub.f32 %v7134_v57, %v10523_v55  ;;  %10525 = vst [vmem:[#allocation124_spill] sm:$0xff] %v7180_v58  ;;  %v10526_v40 = vand.u32 4294901760, %v7142_v52 }
  0xb4   : > { %10528 = vst [vmem:[#allocation126_spill] sm:$0xff] %v7192_v14  ;;  %5155 = vmatprep.subr.bf16.mxu0 %v5154_v35  ;;  %v5156_v55 = vpack.c.bf16 %v1345_v60, %v1333_v32  ;;  %v7207_v60 = vld [vmem:[%s6510_s27 + $0x1b8] sm:$0xff] }
  0xb5   : > { %10524 = vst [vmem:[#allocation123_spill] sm:$0xff] %v7177_v33  ;;  %v1351_v9 = vand.u32 4294901760, %v1350_v34  ;;  %v1362_v37 = vsub.f32 %v7151_v53, %v10074_v39  ;;  %v7189_v12 = vsub.f32 %v7142_v52, %v10526_v40  ;;  %v1356_v34 = vsub.f32 %v7160_v1, %v10078_v10  ;;  %10531 = vst [vmem:[#allocation128_spill] sm:$0xff] %v7207_v60  ;;  %v7246_v10 = vld [vmem:[%s6510_s27 + $0x1c8] sm:$0xff] }
  0xb6   : > { %v10080_v57 = vand.u32 4294901760, %v7177_v33  ;;  %v10083_v39 = vand.u32 4294901760, %v7171_v41  ;;  %v7203_v40 = vsub.f32 %v7163_v61, %v10529_v4  ;;  %5157 = vmatpush1.bf16.msra.mxu0 %v5156_v55  ;;  %v7219_v4 = vld [vmem:[%s6510_s27 + $0x1a0] sm:$0xff]  ;;  %v10534_v61 = vand.u32 4294901760, %v7180_v58  ;;  %10539 = vst [vmem:[#allocation134_spill] sm:$0xff] %v7246_v10 }
  0xb7   : > { %10527 = vst [vmem:[#allocation125_spill] sm:$0xff] %v7189_v12  ;;  %v1363_v7 = vand.u32 4294901760, %v1362_v37  ;;  %v10085_v24 = vand.u32 4294901760, %v7189_v12  ;;  %v1357_v32 = vand.u32 4294901760, %v1356_v34  ;;  %10533 = vst [vmem:[#allocation130_spill] sm:$0xff] %v7219_v4 }
  0xb8   : > { %10530 = vst [vmem:[#allocation127_spill] sm:$0xff] %v7203_v40  ;;  %v1368_v35 = vsub.f32 %v7177_v33, %v10080_v57  ;;  %v7215_v37 = vsub.f32 %v7171_v41, %v10083_v39  ;;  %v10090_v34 = vand.u32 4294901760, %v7203_v40  ;;  %v7228_v57 = vsub.f32 %v7180_v58, %v10534_v61 }
  0xb9   : > { %v5158_v52 = vpack.c.bf16 %v1363_v7, %v1351_v9  ;;  %v1374_v55 = vsub.f32 %v7189_v12, %v10085_v24  ;;  %v10536_v41 = vand.u32 4294901760, %v7192_v14  ;;  %v7238_v9 = vld [vmem:[%s6510_s27 + $0x1b0] sm:$0xff] }
  0xba   : > { %10532 = vst [vmem:[#allocation129_spill] sm:$0xff] %v7215_v37  ;;  %10535 = vst [vmem:[#allocation131_spill] sm:$0xff] %v7228_v57  ;;  %v1369_v54 = vand.u32 4294901760, %v1368_v35  ;;  %v1386_v61 = vsub.f32 %v7203_v40, %v10090_v34  ;;  %v10093_v35 = vand.u32 4294901760, %v7228_v57 }
  0xbb   : > { %v7235_v7 = vsub.f32 %v7192_v14, %v10536_v41  ;;  %10538 = vst [vmem:[#allocation133_spill] sm:$0xff] %v7238_v9  ;;  %5159 = vmatprep.subr.bf16.mxu0 %v5158_v52  ;;  %v1375_v24 = vand.u32 4294901760, %v1374_v55  ;;  %v10540_v41 = vand.u32 4294901760, %v7215_v37  ;;  %v10541_v52 = vand.u32 4294901760, %v7207_v60 }
  0xbc   : > { %v5160_v58 = vpack.c.bf16 %v1369_v54, %v1357_v32  ;;  %v1387_v34 = vand.u32 4294901760, %v1386_v61  ;;  %v1392_v39 = vsub.f32 %v7228_v57, %v10093_v35  ;;  %v10543_v54 = vand.u32 4294901760, %v7219_v4 }
  0xbd   : > { %10537 = vst [vmem:[#allocation132_spill] sm:$0xff] %v7235_v7  ;;  %v1380_v14 = vsub.f32 %v7215_v37, %v10540_v41  ;;  %v7255_v55 = vsub.f32 %v7207_v60, %v10541_v52  ;;  %v7267_v41 = vld [vmem:[%s6510_s27 + $0x1d8] sm:$0xff]  ;;  %v10546_v52 = vand.u32 4294901760, %v7235_v7 }
  0xbe   : > { %v7264_v32 = vsub.f32 %v7219_v4, %v10543_v54  ;;  %10545 = vst [vmem:[#allocation137_spill] sm:$0xff] %v7267_v41  ;;  %5161 = vmatpush1.bf16.msra.mxu0 %v5160_v58  ;;  %v5162_v3 = vpack.c.bf16 %v1387_v34, %v1375_v24  ;;  %v1393_v42 = vand.u32 4294901760, %v1392_v39  ;;  %v10548_v4 = vand.u32 4294901760, %v7238_v9  ;;  %v7284_v58 = vld [vmem:[%s6510_s27 + $0x1d0] sm:$0xff]  ;;  %v7296_v34 = vld [vmem:[%s6510_s27 + $0x1e8] sm:$0xff] }
  0xbf   : > { %10542 = vst [vmem:[#allocation135_spill] sm:$0xff] %v7255_v55  ;;  %v1381_v29 = vand.u32 4294901760, %v1380_v14  ;;  %v1398_v61 = vsub.f32 %v7235_v7, %v10546_v52  ;;  %v10101_v60 = vand.u32 4294901760, %v7255_v55  ;;  %10550 = vst [vmem:[#allocation140_spill] sm:$0xff] %v7284_v58  ;;  %v10551_v24 = vand.u32 4294901760, %v7246_v10 }
  0xc0   : > { %10544 = vst [vmem:[#allocation136_spill] sm:$0xff] %v7264_v32  ;;  %v10107_v54 = vand.u32 4294901760, %v7264_v32  ;;  %v7281_v50 = vsub.f32 %v7238_v9, %v10548_v4  ;;  %10553 = vst [vmem:[#allocation142_spill] sm:$0xff] %v7296_v34  ;;  %5163 = vmatprep.subr.bf16.mxu0 %v5162_v3  ;;  %v10554_v45 = vand.u32 4294901760, %v7267_v41  ;;  %v7311_v3 = vld [vmem:[%s6510_s27 + $0x1f8] sm:$0xff] }
  0xc1   : > { %v1399_v14 = vand.u32 4294901760, %v1398_v61  ;;  %v1410_v52 = vsub.f32 %v7255_v55, %v10101_v60  ;;  %v7293_v39 = vsub.f32 %v7246_v10, %v10551_v24  ;;  %v5164_v4 = vpack.c.bf16 %v1393_v42, %v1381_v29  ;;  %10556 = vst [vmem:[#allocation144_spill] sm:$0xff] %v7311_v3 }
  0xc2   : > { %10549 = vst [vmem:[#allocation139_spill] sm:$0xff] %v7281_v50  ;;  %v1404_v61 = vsub.f32 %v7264_v32, %v10107_v54  ;;  %v10109_v9 = vand.u32 4294901760, %v7281_v50  ;;  %v10112_v60 = vand.u32 4294901760, %v7275_v2  ;;  %v7307_v24 = vsub.f32 %v7267_v41, %v10554_v45  ;;  %v7323_v45 = vld [vmem:[%s6510_s27 + $0x1e0] sm:$0xff] }
  0xc3   : > { %10552 = vst [vmem:[#allocation141_spill] sm:$0xff] %v7293_v39  ;;  %v1411_v48 = vand.u32 4294901760, %v1410_v52  ;;  %v10114_v35 = vand.u32 4294901760, %v7293_v39  ;;  %5165 = vmatpush1.bf16.msra.mxu0 %v5164_v4  ;;  %10558 = vst [vmem:[#allocation146_spill] sm:$0xff] %v7323_v45  ;;  %v10559_v41 = vand.u32 4294901760, %v7284_v58 }
  0xc4   : > { %10555 = vst [vmem:[#allocation143_spill] sm:$0xff] %v7307_v24  ;;  %v1405_v42 = vand.u32 4294901760, %v1404_v61  ;;  %v1416_v29 = vsub.f32 %v7281_v50, %v10109_v9  ;;  %v7319_v52 = vsub.f32 %v7275_v2, %v10112_v60  ;;  %v10121_v61 = vand.u32 4294901760, %v7307_v24  ;;  %v7350_v60 = vld [vmem:[%s6529_s12 + $0x8] sm:$0xff] }
  0xc5   : > { %v5166_v10 = vpack.c.bf16 %v1411_v48, %v1399_v14  ;;  %v1422_v4 = vsub.f32 %v7293_v39, %v10114_v35  ;;  %v7332_v9 = vsub.f32 %v7284_v58, %v10559_v41  ;;  %v10561_v2 = vand.u32 4294901760, %v7296_v34  ;;  %v7342_v14 = vld [vmem:[%s6510_s27 + $0x1f0] sm:$0xff] }
  0xc6   : > { %10557 = vst [vmem:[#allocation145_spill] sm:$0xff] %v7319_v52  ;;  %v1417_v44 = vand.u32 4294901760, %v1416_v29  ;;  %10563 = vst [vmem:[#allocation149_spill] sm:$0xff] %v7342_v14  ;;  %v1434_v39 = vsub.f32 %v7307_v24, %v10121_v61  ;;  %v10564_v58 = vand.u32 4294901760, %v7319_v52 }
  0xc7   : > { %10560 = vst [vmem:[#allocation147_spill] sm:$0xff] %v7332_v9  ;;  %v7339_v48 = vsub.f32 %v7296_v34, %v10561_v2  ;;  %5167 = vmatprep.subr.bf16.mxu0 %v5166_v10  ;;  %v1423_v35 = vand.u32 4294901760, %v1422_v4  ;;  %v10125_v41 = vand.u32 4294901760, %v7332_v9  ;;  %v10565_v10 = vand.u32 4294901760, %v7311_v3 }
  0xc8   : > { %v5168_v54 = vpack.c.bf16 %v1417_v44, %v1405_v42  ;;  %v1428_v2 = vsub.f32 %v7319_v52, %v10564_v58  ;;  %v1435_v36 = vand.u32 4294901760, %v1434_v39  ;;  %v10567_v44 = vand.u32 4294901760, %v7323_v45 }
  0xc9   : > { %10562 = vst [vmem:[#allocation148_spill] sm:$0xff] %v7339_v48  ;;  %v10128_v34 = vand.u32 4294901760, %v7339_v48  ;;  %v7359_v4 = vsub.f32 %v7311_v3, %v10565_v10  ;;  %v1440_v61 = vsub.f32 %v7332_v9, %v10125_v41  ;;  %v7375_v39 = vand.u32 4294901760, %v7350_v60 }
  0xca   : > { %v7368_v42 = vsub.f32 %v7323_v45, %v10567_v44  ;;  %5169 = vmatpush1.bf16.msra.mxu0 %v5168_v54  ;;  %v1429_v58 = vand.u32 4294901760, %v1428_v2  ;;  %v5170_v3 = vpack.c.bf16 %v1435_v36, %v1423_v35  ;;  %v10570_v9 = vand.u32 4294901760, %v7342_v14  ;;  %v7395_v45 = vld [vmem:[%s6529_s12] sm:$0xff] }
  0xcb   : > { %10566 = vst [vmem:[#allocation150_spill] sm:$0xff] %v7359_v4  ;;  %v1446_v52 = vsub.f32 %v7339_v48, %v10128_v34  ;;  %v10130_v10 = vand.u32 4294901760, %v7359_v4  ;;  %10569 = vst [vmem:[#allocation152_spill] sm:$0xff] %v7375_v39  ;;  %v1441_v41 = vand.u32 4294901760, %v1440_v61  ;;  %1468 = vmatprep.mubr.f32.mxu0 %v7375_v39 }
  0xcc   : > { %10568 = vst [vmem:[#allocation151_spill] sm:$0xff] %v7368_v42  ;;  %v10133_v29 = vand.u32 4294901760, %v7368_v42  ;;  %v7381_v44 = vsub.f32 %v7342_v14, %v10570_v9  ;;  %5171 = vmatprep.subr.bf16.mxu0 %v5170_v3  ;;  %10572 = vst [vmem:[#allocation154_spill] sm:$0xff] %v7395_v45  ;;  %v5178_v3 = vpack.c.bf16 %v6593_v17, %v6588_v16  ;;  %v10595_v17 = vld [vmem:[#allocation56_spill] sm:$0xff] }
  0xcd   : > { %v1447_v54 = vand.u32 4294901760, %v1446_v52  ;;  %v1458_v2 = vsub.f32 %v7359_v4, %v10130_v10  ;;  %v5172_v34 = vpack.c.bf16 %v1441_v41, %v1429_v58  ;;  %v7400_v41 = vld [vmem:[%s6529_s12 + $0x18] sm:$0xff] }
  0xce   : > { %10571 = vst [vmem:[#allocation153_spill] sm:$0xff] %v7381_v44  ;;  %v1452_v36 = vsub.f32 %v7368_v42, %v10133_v29  ;;  %v10132_v35 = vand.u32 4294901760, %v7381_v44  ;;  %10573 = vst [vmem:[#allocation155_spill] sm:$0xff] %v7400_v41  ;;  %v7445_v29 = vld [vmem:[%s6529_s12 + $0x20] sm:$0xff] }
  0xcf   : > { %v1459_v61 = vand.u32 4294901760, %v1458_v2  ;;  %5173 = vmatpush1.bf16.msra.mxu0 %v5172_v34  ;;  %v7403_v2 = vand.u32 4294901760, %v7395_v45  ;;  %v5180_v34 = vpack.c.bf16 %v6604_v20, %v6598_v18  ;;  %10580 = vst [vmem:[#allocation162_spill] sm:$0xff] %v7445_v29  ;;  %v10588_v18 = vld [vmem:[#allocation145_spill] sm:$0xff]  ;;  %v10684_v45 = vld [vmem:[#allocation50_spill] sm:$0xff] }
  0xd0   : > { %v1453_v9 = vand.u32 4294901760, %v1452_v36  ;;  %v1464_v52 = vsub.f32 %v7381_v44, %v10132_v35  ;;  %v7411_v36 = vld [vmem:[%s6529_s12 + $0x10] sm:$0xff]  ;;  %v5184_v35 = vpack.c.bf16 %v6631_v31, %v6623_v27  ;;  %v10583_v27 = vld [vmem:[#allocation51_spill] sm:$0xff] }
  0xd1   : > { %v5174_v14 = vpack.c.bf16 %v1459_v61, %v1447_v54  ;;  %10574 = vst [vmem:[#allocation156_spill] sm:$0xff] %v7403_v2  ;;  %v7408_v54 = vand.u32 4294901760, %v7400_v41  ;;  %10576 = vst [vmem:[#allocation158_spill] sm:$0xff] %v7411_v36  ;;  %v10591_v31 = vld [vmem:[#allocation54_spill] sm:$0xff] }
  0xd2   : > { %v1465_v10 = vand.u32 4294901760, %v1464_v52  ;;  %v7454_v52 = vld [vmem:[%s6529_s12 + $0x38] sm:$0xff] }
  0xd3   : > { %5175 = vmatprep.subr.bf16.mxu0 %v5174_v14  ;;  %10575 = vst [vmem:[#allocation157_spill] sm:$0xff] %v7408_v54  ;;  %10581 = vst [vmem:[#allocation163_spill] sm:$0xff] %v7454_v52  ;;  %v7476_v61 = vand.u32 4294901760, %v7454_v52 }
  0xd4   : > { %v5176_v58 = vpack.c.bf16 %v1465_v10, %v1453_v9  ;;  %v5182_v10 = vpack.c.bf16 %v6614_v22, %v6609_v21  ;;  %v7420_v9 = vld [vmem:[%s6529_s12 + $0x28] sm:$0xff]  ;;  %v7479_v22 = vld [vmem:[%s6529_s12 + $0x30] sm:$0xff] }
  0xd5   : > { %10577 = vst [vmem:[#allocation159_spill] sm:$0xff] %v7420_v9  ;;  %10585 = vst [vmem:[#allocation165_spill] sm:$0xff] %v7476_v61  ;;  %v10587_v21 = vld [vmem:[#allocation141_spill] sm:$0xff]  ;;  %v7496_v20 = vand.u32 4294901760, %v7479_v22 }
  0xd6   : > { %5177 = vmatpush1.bf16.msra.mxu0 %v5176_v58  ;;  %v7442_v58 = vand.u32 4294901760, %v7420_v9  ;;  %10586 = vst [vmem:[#allocation166_spill] sm:$0xff] %v7479_v22  ;;  %v10603_v22 = vld [vmem:[#allocation63_spill] sm:$0xff] }
  0xd7   : > { %5179 = vmatprep.subr.bf16.mxu0 %v5178_v3  ;;  %v7432_v3 = vand.u32 4294901760, %v7411_v36  ;;  %10593 = vst [vmem:[#allocation168_spill] sm:$0xff] %v7496_v20  ;;  %v7516_v36 = vld [vmem:[%s6529_s12 + $0x58] sm:$0xff] }
  0xd8   : > { %10579 = vst [vmem:[#allocation161_spill] sm:$0xff] %v7442_v58 }
  0xd9   : > { %1470 = vmatmul.mubr.f32.vlgmr.msra.gmra.mrb[0].mxu0 %v7403_v2  ;;  %10578 = vst [vmem:[#allocation160_spill] sm:$0xff] %v7432_v3  ;;  %v10699_v2 = vld [vmem:[#allocation137_spill] sm:$0xff] }
  0xda   : > { %5181 = vmatpush1.bf16.msra.mxu0 %v5180_v34  ;;  %1476 = vmatprep.mubr.f32.mxu0 %v7408_v54  ;;  %v5186_v34 = vpack.c.bf16 %v6691_v0, %v6686_v63  ;;  %v10584_v63 = vld [vmem:[#allocation52_spill] sm:$0xff]  ;;  %v10589_v0 = vld [vmem:[#allocation147_spill] sm:$0xff] }
  0xdb   : > { %5183 = vmatprep.subr.bf16.mxu0 %v5182_v10  ;;  %v7466_v10 = vand.u32 4294901760, %v7445_v29  ;;  %v5188_v14 = vpack.c.bf16 %v10584_v63, %v10583_v27  ;;  %v7488_v29 = vld [vmem:[%s6529_s12 + $0x48] sm:$0xff]  ;;  %v10600_v27 = vld [vmem:[#allocation26_spill] sm:$0xff] }
  0xdc   : > { %10592 = vst [vmem:[#allocation167_spill] sm:$0xff] %v7488_v29  ;;  %v10598_v63 = vld [vmem:[#allocation25_spill] sm:$0xff]  ;;  %10605 = vst [vmem:[#allocation26_spill] sm:$0xff] %v7516_v36 }
  0xdd   : > { %1478 = vmatmul.mubr.f32.gmra.mrb[2].mxu0 %v7432_v3  ;;  %10582 = vst [vmem:[#allocation164_spill] sm:$0xff] %v7466_v10  ;;  %v10599_v9 = vand.u32 4294901760, %v10598_v63 }
  0xde   : > { %5185 = vmatpush1.bf16.msra.mxu0 %v5184_v35  ;;  %1484 = vmatprep.mubr.f32.mxu0 %v7442_v58  ;;  %v10590_v35 = vld [vmem:[#allocation53_spill] sm:$0xff]  ;;  %v10601_v58 = vand.u32 4294901760, %v10600_v27 }
  0xdf   : > { %5187 = vmatprep.subr.bf16.mxu0 %v5186_v34  ;;  %v5190_v16 = vpack.c.bf16 %v10591_v31, %v10590_v35  ;;  %v10594_v34 = vld [vmem:[#allocation55_spill] sm:$0xff]  ;;  %v7502_v31 = vand.u32 4294901760, %v7488_v29  ;;  %v10608_v29 = vld [vmem:[#allocation28_spill] sm:$0xff] }
  0xe0   : > { %v5192_v52 = vpack.c.bf16 %v10595_v17, %v10594_v34  ;;  %v7505_v35 = vld [vmem:[%s6529_s12 + $0x40] sm:$0xff]  ;;  %v10609_v3 = vand.u32 4294901760, %v10608_v29 }
  0xe1   : > { %1486 = vmatmul.mubr.f32.gmra.mrb[4].mxu0 %v7466_v10  ;;  %10596 = vst [vmem:[#allocation169_spill] sm:$0xff] %v7502_v31  ;;  %10597 = vst [vmem:[#allocation170_spill] sm:$0xff] %v7505_v35  ;;  %v7511_v10 = vpack.c.bf16 %v10601_v58, %v10599_v9  ;;  %v10606_v17 = vld [vmem:[#allocation27_spill] sm:$0xff]  ;;  %v7527_v27 = vand.u32 4294901760, %v7505_v35  ;;  %v10614_v9 = vld [vmem:[#allocation30_spill] sm:$0xff] }
  0xe2   : > { %5189 = vmatpush1.bf16.msra.mxu0 %v5188_v14  ;;  %1492 = vmatprep.mubr.f32.mxu0 %v7476_v61  ;;  %v10604_v14 = vld [vmem:[#allocation65_spill] sm:$0xff]  ;;  %v10607_v34 = vand.u32 4294901760, %v10606_v17  ;;  %v10615_v58 = vand.u32 4294901760, %v10614_v9  ;;  %v10617_v17 = vld [vmem:[#allocation66_spill] sm:$0xff]  ;;  %v10618_v29 = vld [vmem:[#allocation67_spill] sm:$0xff] }
  0xe3   : > { %10602 = vst [vmem:[#allocation25_spill] sm:$0xff] %v7511_v10  ;;  %5191 = vmatprep.subr.bf16.mxu0 %v5190_v16  ;;  %v5194_v61 = vpack.c.bf16 %v10604_v14, %v10603_v22  ;;  %5051 = vmatprep.subr.bf16.mxu1 %v7511_v10  ;;  %10611 = vst [vmem:[#allocation28_spill] sm:$0xff] %v7527_v27  ;;  %v10612_v16 = vld [vmem:[#allocation29_spill] sm:$0xff]  ;;  %v10622_v9 = vld [vmem:[#allocation70_spill] sm:$0xff] }
  0xe4   : > { %v7522_v41 = vpack.c.bf16 %v10609_v3, %v10607_v34  ;;  %v10613_v63 = vand.u32 4294901760, %v10612_v16  ;;  %v5196_v3 = vpack.c.bf16 %v10618_v29, %v10617_v17  ;;  %v7540_v34 = vand.u32 4294901760, %v7516_v36  ;;  %v7543_v22 = vld [vmem:[%s6529_s12 + $0x50] sm:$0xff]  ;;  %v10624_v35 = vld [vmem:[#allocation31_spill] sm:$0xff] }
  0xe5   : > { %1494 = vmatmul.mubr.f32.gmra.mrb[6].mxu0 %v7496_v20  ;;  %10620 = vst [vmem:[#allocation171_spill] sm:$0xff] %v7543_v22  ;;  %v10621_v16 = vld [vmem:[#allocation69_spill] sm:$0xff]  ;;  %v10626_v20 = vld [vmem:[#allocation32_spill] sm:$0xff]  ;;  %v7559_v29 = vand.u32 4294901760, %v7543_v22  ;;  %v10632_v36 = vld [vmem:[#allocation42_spill] sm:$0xff] }
  0xe6   : > { %10610 = vst [vmem:[#allocation27_spill] sm:$0xff] %v7522_v41  ;;  %v7533_v14 = vpack.c.bf16 %v10615_v58, %v10613_v63  ;;  %5053 = vmatpush1.bf16.msra.mxu1 %v7522_v41  ;;  %5193 = vmatpush1.bf16.msra.mxu0 %v5192_v52  ;;  %10619 = vst [vmem:[#allocation30_spill] sm:$0xff] %v7540_v34  ;;  %v5198_v63 = vpack.c.bf16 %v10622_v9, %v10621_v16  ;;  %v7548_v58 = vld [vmem:[%s6529_s12 + $0x68] sm:$0xff]  ;;  %v10625_v52 = vand.u32 4294901760, %v10624_v35  ;;  %v7575_v16 = vld [vmem:[%s6529_s12 + $0x60] sm:$0xff] }
  0xe7   : > { %1500 = vmatprep.mubr.f32.mxu0 %v7502_v31  ;;  %5195 = vmatprep.subr.bf16.mxu0 %v5194_v61  ;;  %10623 = vst [vmem:[#allocation172_spill] sm:$0xff] %v7548_v58  ;;  %v10627_v31 = vand.u32 4294901760, %v10626_v20  ;;  %10629 = vst [vmem:[#allocation32_spill] sm:$0xff] %v7559_v29  ;;  %v10630_v17 = vld [vmem:[#allocation41_spill] sm:$0xff]  ;;  %v10633_v10 = vand.u32 4294901760, %v10632_v36  ;;  %v10635_v20 = vld [vmem:[#allocation71_spill] sm:$0xff] }
  0xe8   : > { %10616 = vst [vmem:[#allocation29_spill] sm:$0xff] %v7533_v14  ;;  %5055 = vmatprep.subr.bf16.mxu1 %v7533_v14  ;;  %v10631_v61 = vand.u32 4294901760, %v10630_v17  ;;  %10638 = vst [vmem:[#allocation173_spill] sm:$0xff] %v7575_v16  ;;  %v7578_v17 = vld [vmem:[%s6529_s12 + $0x78] sm:$0xff] }
  0xe9   : > { %v7554_v41 = vpack.c.bf16 %v10627_v31, %v10625_v52  ;;  %1502 = vmatmul.mubr.f32.gmra.mrb[8].mxu0 %v7527_v27  ;;  %v10636_v31 = vld [vmem:[#allocation73_spill] sm:$0xff]  ;;  %v7572_v52 = vand.u32 4294901760, %v7548_v58  ;;  %10639 = vst [vmem:[#allocation174_spill] sm:$0xff] %v7578_v17  ;;  %v10640_v36 = vld [vmem:[#allocation43_spill] sm:$0xff] }
  0xea   : > { %v7565_v9 = vpack.c.bf16 %v10633_v10, %v10631_v61  ;;  %5197 = vmatpush1.bf16.msra.mxu0 %v5196_v3  ;;  %1508 = vmatprep.mubr.f32.mxu0 %v7540_v34  ;;  %v5200_v35 = vpack.c.bf16 %v10636_v31, %v10635_v20  ;;  %v10641_v10 = vand.u32 4294901760, %v10640_v36  ;;  %v10642_v61 = vld [vmem:[#allocation44_spill] sm:$0xff]  ;;  %v10645_v3 = vld [vmem:[#allocation102_spill] sm:$0xff]  ;;  %v10647_v31 = vld [vmem:[#allocation105_spill] sm:$0xff] }
  0xeb   : > { %10628 = vst [vmem:[#allocation31_spill] sm:$0xff] %v7554_v41  ;;  %5057 = vmatpush1.bf16.msra.mxu1 %v7554_v41  ;;  %10637 = vst [vmem:[#allocation42_spill] sm:$0xff] %v7572_v52  ;;  %5199 = vmatprep.subr.bf16.mxu0 %v5198_v63  ;;  %v10643_v22 = vand.u32 4294901760, %v10642_v61  ;;  %v10646_v34 = vand.u32 4294901760, %v10645_v3  ;;  %v10648_v20 = vand.u32 4294901760, %v10647_v31  ;;  %v10650_v41 = vld [vmem:[#allocation107_spill] sm:$0xff] }
  0xec   : > { %10634 = vst [vmem:[#allocation41_spill] sm:$0xff] %v7565_v9  ;;  %5059 = vmatprep.subr.bf16.mxu1 %v7565_v9  ;;  %v10651_v14 = vand.u32 4294901760, %v10650_v41  ;;  %v10652_v63 = vld [vmem:[#allocation108_spill] sm:$0xff]  ;;  %v10655_v36 = vld [vmem:[#allocation109_spill] sm:$0xff]  ;;  %v7607_v3 = vand.u32 4294901760, %v7575_v16 }
  0xed   : > { %v7584_v27 = vpack.c.bf16 %v10643_v22, %v10641_v10  ;;  %v7591_v58 = vpack.c.bf16 %v10648_v20, %v10646_v34  ;;  %v10653_v54 = vand.u32 4294901760, %v10652_v63  ;;  %v10656_v44 = vand.u32 4294901760, %v10655_v36  ;;  %v10657_v61 = vld [vmem:[#allocation112_spill] sm:$0xff]  ;;  %1510 = vmatmul.mubr.f32.gmra.mrb[10].mxu0 %v7559_v29  ;;  %v10660_v31 = vld [vmem:[#allocation45_spill] sm:$0xff]  ;;  %v10662_v20 = vld [vmem:[#allocation46_spill] sm:$0xff] }
  0xee   : > { %v10658_v22 = vand.u32 4294901760, %v10657_v61  ;;  %v10661_v34 = vand.u32 4294901760, %v10660_v31  ;;  %v10663_v9 = vand.u32 4294901760, %v10662_v20  ;;  %v10667_v63 = vld [vmem:[#allocation117_spill] sm:$0xff]  ;;  %5201 = vmatpush1.bf16.msra.mxu0 %v5200_v35  ;;  %1516 = vmatprep.mubr.f32.mxu0 %v7572_v52  ;;  %v10670_v31 = vld [vmem:[#allocation118_spill] sm:$0xff]  ;;  %v10680_v35 = vpack.c.bf16 %v6901_v6, %v6884_v59 }
  0xef   : > { %10644 = vst [vmem:[#allocation43_spill] sm:$0xff] %v7584_v27  ;;  %10649 = vst [vmem:[#allocation44_spill] sm:$0xff] %v7591_v58  ;;  %v7597_v42 = vpack.c.bf16 %v10653_v54, %v10651_v14  ;;  %5061 = vmatpush1.bf16.msra.mxu1 %v7584_v27  ;;  %v10665_v54 = vld [vmem:[#allocation114_spill] sm:$0xff]  ;;  %v10668_v36 = vand.u32 4294901760, %v10667_v63  ;;  %v10671_v20 = vand.u32 4294901760, %v10670_v31  ;;  %v10677_v27 = vld [vmem:[#allocation124_spill] sm:$0xff] }
  0xf0   : > { %v7603_v10 = vpack.c.bf16 %v10658_v22, %v10656_v44  ;;  %v7613_v41 = vpack.c.bf16 %v10663_v9, %v10661_v34  ;;  %v10666_v14 = vand.u32 4294901760, %v10665_v54  ;;  %v7624_v44 = vand.u32 4294901760, %v7578_v17  ;;  %v7627_v22 = vld [vmem:[%s6529_s12 + $0x70] sm:$0xff]  ;;  %5203 = vmatprep.subr.bf16.mxu0 %v10680_v35  ;;  %v10682_v17 = vld [vmem:[#allocation47_spill] sm:$0xff] }
  0xf1   : > { %10654 = vst [vmem:[#allocation102_spill] sm:$0xff] %v7597_v42  ;;  %v10672_v9 = vld [vmem:[#allocation121_spill] sm:$0xff]  ;;  %v10675_v29 = vld [vmem:[#allocation122_spill] sm:$0xff]  ;;  %v10678_v63 = vand.u32 4294901760, %v10677_v27  ;;  %v10683_v52 = vand.u32 4294901760, %v10682_v17  ;;  %v10685_v31 = vand.u32 4294901760, %v10684_v45  ;;  %1518 = vmatmul.mubr.f32.gmra.mrb[12].mxu0 %v7607_v3 }
  0xf2   : > { %10659 = vst [vmem:[#allocation105_spill] sm:$0xff] %v7603_v10  ;;  %10664 = vst [vmem:[#allocation107_spill] sm:$0xff] %v7613_v41  ;;  %v7620_v61 = vpack.c.bf16 %v10668_v36, %v10666_v14  ;;  %v10673_v34 = vand.u32 4294901760, %v10672_v9  ;;  %v10676_v54 = vand.u32 4294901760, %v10675_v29  ;;  %v7645_v36 = vld [vmem:[%s6529_s12 + $0x88] sm:$0xff]  ;;  %5063 = vmatprep.subr.bf16.mxu1 %v7613_v41  ;;  %v10687_v29 = vld [vmem:[#allocation126_spill] sm:$0xff]  ;;  %1524 = vmatprep.mubr.f32.mxu0 %v7624_v44 }
  0xf3   : > { %10681 = vst [vmem:[#allocation45_spill] sm:$0xff] %v7645_v36  ;;  %v7651_v9 = vpack.c.bf16 %v10685_v31, %v10683_v52  ;;  %v10689_v27 = vld [vmem:[#allocation128_spill] sm:$0xff]  ;;  %v10694_v35 = vld [vmem:[#allocation133_spill] sm:$0xff]  ;;  %v10697_v17 = vld [vmem:[#allocation134_spill] sm:$0xff]  ;;  %v10700_v52 = vand.u32 4294901760, %v10699_v2 }
  0xf4   : > { %10669 = vst [vmem:[#allocation108_spill] sm:$0xff] %v7620_v61  ;;  %v7633_v16 = vpack.c.bf16 %v10673_v34, %v10671_v20  ;;  %v7639_v14 = vpack.c.bf16 %v10678_v63, %v10676_v54  ;;  %v10688_v20 = vand.u32 4294901760, %v10687_v29  ;;  %v10690_v34 = vand.u32 4294901760, %v10689_v27  ;;  %v10692_v63 = vld [vmem:[#allocation130_spill] sm:$0xff]  ;;  %v10704_v29 = vld [vmem:[#allocation140_spill] sm:$0xff] }
  0xf5   : > { %10686 = vst [vmem:[#allocation46_spill] sm:$0xff] %v7651_v9  ;;  %v10693_v6 = vand.u32 4294901760, %v10692_v63  ;;  %v10695_v59 = vand.u32 4294901760, %v10694_v35  ;;  %v10698_v45 = vand.u32 4294901760, %v10697_v17  ;;  %v10702_v41 = vld [vmem:[#allocation138_spill] sm:$0xff]  ;;  %v10705_v48 = vand.u32 4294901760, %v10704_v29  ;;  %5065 = vmatpush1.bf16.msra.mxu1 %v7651_v9 }
  0xf6   : > { %10674 = vst [vmem:[#allocation109_spill] sm:$0xff] %v7633_v16  ;;  %10679 = vst [vmem:[#allocation112_spill] sm:$0xff] %v7639_v14  ;;  %v7658_v54 = vpack.c.bf16 %v10690_v34, %v10688_v20  ;;  %v10703_v16 = vand.u32 4294901760, %v10702_v41  ;;  %v7680_v20 = vand.u32 4294901760, %v7627_v22  ;;  %v10710_v2 = vld [vmem:[#allocation58_spill] sm:$0xff]  ;;  %v7707_v29 = vld [vmem:[%s6529_s12 + $0x80] sm:$0xff] }
  0xf7   : > { %v7664_v14 = vpack.c.bf16 %v10695_v59, %v10693_v6  ;;  %v7670_v31 = vpack.c.bf16 %v10700_v52, %v10698_v45  ;;  %v7684_v6 = vsub.f32 %v7350_v60, %v7375_v39  ;;  %v10708_v59 = vld [vmem:[#allocation57_spill] sm:$0xff]  ;;  %v10711_v63 = vand.u32 4294901760, %v10710_v2  ;;  %v10713_v41 = vld [vmem:[#allocation142_spill] sm:$0xff]  ;;  %10719 = vst [vmem:[#allocation50_spill] sm:$0xff] %v7707_v29  ;;  %v10729_v39 = vld [vmem:[#allocation60_spill] sm:$0xff] }
  0xf8   : > { %10691 = vst [vmem:[#allocation114_spill] sm:$0xff] %v7658_v54  ;;  %v7676_v27 = vpack.c.bf16 %v10705_v48, %v10703_v16  ;;  %v10709_v34 = vand.u32 4294901760, %v10708_v59  ;;  %v10714_v48 = vand.u32 4294901760, %v10713_v41  ;;  %v10715_v16 = vld [vmem:[#allocation144_spill] sm:$0xff]  ;;  %v10718_v52 = vpack.c.bf16 %v6912_v62, %v6907_v13  ;;  %v10720_v59 = vld [vmem:[#allocation146_spill] sm:$0xff]  ;;  %v10722_v2 = vld [vmem:[#allocation149_spill] sm:$0xff]  ;;  %1526 = vmatmul.mubr.f32.gmra.mrb[14].mxu0 %v7680_v20 }
  0xf9   : > { %10696 = vst [vmem:[#allocation117_spill] sm:$0xff] %v7664_v14  ;;  %10701 = vst [vmem:[#allocation118_spill] sm:$0xff] %v7670_v31  ;;  %v10716_v17 = vand.u32 4294901760, %v10715_v16  ;;  %v7704_v60 = vand.u32 4294901760, %v7645_v36  ;;  %v7719_v16 = vld [vmem:[%s6529_s12 + $0x98] sm:$0xff]  ;;  %v10730_v62 = vand.u32 4294901760, %v10729_v39  ;;  %v10737_v39 = vpack.c.bf16 %v6964_v28, %v6953_v19 }
  0xfa   : > { %10706 = vst [vmem:[#allocation121_spill] sm:$0xff] %v7676_v27  ;;  %10707 = vst [vmem:[#allocation122_spill] sm:$0xff] %v7684_v6  ;;  %v7690_v35 = vpack.c.bf16 %v10711_v63, %v10709_v34  ;;  %5205 = vmatpush1.bf16.msra.mxu0 %v10718_v52  ;;  %v10721_v34 = vand.u32 4294901760, %v10720_v59  ;;  %v10723_v63 = vand.u32 4294901760, %v10722_v2  ;;  %v10212_v59 = vand.u32 4294901760, %v7684_v6  ;;  %v10732_v2 = vld [vmem:[#allocation61_spill] sm:$0xff] }
  0xfb   : > { %v7697_v45 = vpack.c.bf16 %v10716_v17, %v10714_v48  ;;  %v10725_v48 = vpack.c.bf16 %v6933_v25, %v6925_v26  ;;  %10726 = vst [vmem:[#allocation128_spill] sm:$0xff] %v7719_v16  ;;  %v10727_v17 = vld [vmem:[#allocation59_spill] sm:$0xff]  ;;  %1532 = vmatprep.mubr.f32.mxu0 %v7704_v60 }
  0xfc   : > { %10712 = vst [vmem:[#allocation124_spill] sm:$0xff] %v7690_v35  ;;  %v7713_v41 = vpack.c.bf16 %v10723_v63, %v10721_v34  ;;  %v10728_v52 = vand.u32 4294901760, %v10727_v17  ;;  %5067 = vmatprep.subr.bf16.mxu1 %v7690_v35  ;;  %v7731_v34 = vand.u32 4294901760, %v7707_v29  ;;  %v10733_v63 = vand.u32 4294901760, %v10732_v2  ;;  %v7757_v2 = vld [vmem:[%s6529_s12 + $0xa8] sm:$0xff] }
  0xfd   : > { %10717 = vst [vmem:[#allocation47_spill] sm:$0xff] %v7697_v45  ;;  %5207 = vmatprep.subr.bf16.mxu0 %v10725_v48  ;;  %v10734_v48 = vld [vmem:[#allocation62_spill] sm:$0xff]  ;;  %v7748_v17 = vand.u32 4294901760, %v7719_v16  ;;  %10739 = vst [vmem:[#allocation134_spill] sm:$0xff] %v7757_v2  ;;  %v10745_v29 = vld [vmem:[#allocation72_spill] sm:$0xff] }
  0xfe   : > { %10724 = vst [vmem:[#allocation126_spill] sm:$0xff] %v7713_v41  ;;  %v7725_v13 = vpack.c.bf16 %v10730_v62, %v10728_v52  ;;  %v10735_v25 = vand.u32 4294901760, %v10734_v48  ;;  %v829_v62 = vsub.f32 %v7684_v6, %v10212_v59  ;;  %5209 = vmatpush1.bf16.msra.mxu0 %v10737_v39  ;;  %v7751_v52 = vld [vmem:[%s6529_s12 + $0x90] sm:$0xff]  ;;  %v10742_v59 = vld [vmem:[#allocation68_spill] sm:$0xff]  ;;  %v10746_v36 = vand.u32 4294901760, %v10745_v29  ;;  %v10754_v29 = vld [vmem:[#allocation75_spill] sm:$0xff] }
  0xff   : > { %v10743_v28 = vand.u32 4294901760, %v10742_v59  ;;  %1534 = vmatmul.mubr.f32.gmra.mrb[16].mxu0 %v7731_v34  ;;  %v7768_v16 = vand.u32 4294901760, %v7751_v52  ;;  %v7782_v59 = vand.u32 4294901760, %v7757_v2 }
 0x100   : > { %10731 = vst [vmem:[#allocation130_spill] sm:$0xff] %v7725_v13  ;;  %v7737_v26 = vpack.c.bf16 %v10735_v25, %v10733_v63  ;;  %5069 = vmatpush1.bf16.msra.mxu1 %v7725_v13  ;;  %v10738_v25 = vpack.c.bf16 %v6996_v43, %v6988_v51  ;;  %v10740_v63 = vld [vmem:[#allocation64_spill] sm:$0xff]  ;;  %v830_v19 = vand.u32 4294901760, %v829_v62  ;;  %v10747_v43 = vld [vmem:[#allocation74_spill] sm:$0xff]  ;;  %1540 = vmatprep.mubr.f32.mxu0 %v7748_v17 }
 0x101   : > { %v10741_v48 = vand.u32 4294901760, %v10740_v63  ;;  %v7785_v62 = vld [vmem:[%s6529_s12 + $0xa0] sm:$0xff]  ;;  %v10755_v63 = vand.u32 4294901760, %v10754_v29  ;;  %v10764_v29 = vpack.c.bf16 %v7068_v11, %v7056_v8 }
 0x102   : > { %10736 = vst [vmem:[#allocation133_spill] sm:$0xff] %v7737_v26  ;;  %5211 = vmatprep.subr.bf16.mxu0 %v10738_v25  ;;  %5071 = vmatprep.subr.bf16.mxu1 %v7737_v26  ;;  %v10748_v25 = vand.u32 4294901760, %v10747_v43  ;;  %10751 = vst [vmem:[#allocation140_spill] sm:$0xff] %v7785_v62  ;;  %v10752_v43 = vpack.c.bf16 %v7044_v38, %v7029_v23  ;;  %v10761_v38 = vld [vmem:[#allocation79_spill] sm:$0xff] }
 0x103   : > { %v7763_v39 = vpack.c.bf16 %v10743_v28, %v10741_v48  ;;  %v10750_v28 = vpack.c.bf16 %v7017_v46, %v7012_v56  ;;  %v10756_v48 = vld [vmem:[#allocation76_spill] sm:$0xff]  ;;  %831 = vmatprep.mubr.f32.mxu1 %v830_v19  ;;  %1542 = vmatmul.mubr.f32.gmra.mrb[18].mxu0 %v7768_v16  ;;  %v7802_v46 = vand.u32 4294901760, %v7785_v62  ;;  %v10759_v56 = vld [vmem:[#allocation77_spill] sm:$0xff]  ;;  %v10773_v8 = vld [vmem:[#allocation87_spill] sm:$0xff] }
 0x104   : > { %v7774_v51 = vpack.c.bf16 %v10748_v25, %v10746_v36  ;;  %v7791_v36 = vld [vmem:[%s6529_s12 + $0xb8] sm:$0xff]  ;;  %v10757_v25 = vand.u32 4294901760, %v10756_v48  ;;  %v10760_v2 = vand.u32 4294901760, %v10759_v56  ;;  %1548 = vmatprep.mubr.f32.mxu0 %v7782_v59  ;;  %v10766_v56 = vpack.c.bf16 %v7101_v49, %v7092_v47  ;;  %v10775_v62 = vld [vmem:[#allocation89_spill] sm:$0xff] }
 0x105   : > { %10744 = vst [vmem:[#allocation137_spill] sm:$0xff] %v7763_v39  ;;  %5073 = vmatpush1.bf16.msra.mxu1 %v7763_v39  ;;  %5213 = vmatpush1.bf16.msra.mxu0 %v10750_v28  ;;  %10753 = vst [vmem:[#allocation57_spill] sm:$0xff] %v7791_v36  ;;  %v7816_v19 = vand.u32 4294901760, %v7791_v36  ;;  %v10774_v36 = vand.u32 4294901760, %v10773_v8  ;;  %v10776_v49 = vand.u32 4294901760, %v10775_v62  ;;  %v10779_v8 = vpack.c.bf16 %v7151_v53, %v7131_v30  ;;  %v10780_v62 = vld [vmem:[#allocation91_spill] sm:$0xff] }
 0x106   : > { %10749 = vst [vmem:[#allocation138_spill] sm:$0xff] %v7774_v51  ;;  %5215 = vmatprep.subr.bf16.mxu0 %v10752_v43  ;;  %v7797_v28 = vpack.c.bf16 %v10757_v25, %v10755_v63  ;;  %5075 = vmatprep.subr.bf16.mxu1 %v7774_v51  ;;  %v10762_v43 = vand.u32 4294901760, %v10761_v38  ;;  %v7819_v63 = vld [vmem:[%s6529_s12 + $0xb0] sm:$0xff]  ;;  %v7825_v38 = vld [vmem:[%s6529_s12 + $0xc8] sm:$0xff] }
 0x107   : > { %10765 = vst [vmem:[#allocation144_spill] sm:$0xff] %v7819_v63  ;;  %10767 = vst [vmem:[#allocation146_spill] sm:$0xff] %v7825_v38  ;;  %v10770_v25 = vld [vmem:[#allocation84_spill] sm:$0xff]  ;;  %1550 = vmatmul.mubr.f32.gmra.mrb[20].mxu0 %v7802_v46  ;;  %v10785_v47 = vld [vmem:[#allocation93_spill] sm:$0xff] }
 0x108   : > { %10758 = vst [vmem:[#allocation58_spill] sm:$0xff] %v7797_v28  ;;  %v7808_v23 = vpack.c.bf16 %v10762_v43, %v10760_v2  ;;  %v10768_v2 = vld [vmem:[#allocation80_spill] sm:$0xff]  ;;  %v10771_v43 = vand.u32 4294901760, %v10770_v25  ;;  %1556 = vmatprep.mubr.f32.mxu0 %v7816_v19 }
 0x109   : > { %5077 = vmatpush1.bf16.msra.mxu1 %v7797_v28  ;;  %5217 = vmatpush1.bf16.msra.mxu0 %v10764_v29  ;;  %v10769_v48 = vand.u32 4294901760, %v10768_v2  ;;  %v7836_v29 = vand.u32 4294901760, %v7819_v63  ;;  %v10778_v2 = vpack.c.bf16 %v7121_v5, %v7111_v15  ;;  %v7853_v25 = vld [vmem:[%s6529_s12 + $0xc0] sm:$0xff] }
 0x10a   : > { %10763 = vst [vmem:[#allocation142_spill] sm:$0xff] %v7808_v23  ;;  %5219 = vmatprep.subr.bf16.mxu0 %v10766_v56  ;;  %5079 = vmatprep.subr.bf16.mxu1 %v7808_v23  ;;  %v7842_v56 = vpack.c.bf16 %v10776_v49, %v10774_v36  ;;  %v7859_v49 = vld [vmem:[%s6529_s12 + $0xd8] sm:$0xff]  ;;  %v10781_v36 = vand.u32 4294901760, %v10780_v62  ;;  %v10787_v63 = vld [vmem:[#allocation96_spill] sm:$0xff] }
 0x10b   : > { %v7831_v11 = vpack.c.bf16 %v10771_v43, %v10769_v48  ;;  %v7850_v48 = vand.u32 4294901760, %v7825_v38  ;;  %v10782_v43 = vld [vmem:[#allocation92_spill] sm:$0xff]  ;;  %1558 = vmatmul.mubr.f32.gmra.mrb[22].mxu0 %v7836_v29  ;;  %v10786_v38 = vand.u32 4294901760, %v10785_v47  ;;  %v10788_v53 = vand.u32 4294901760, %v10787_v63  ;;  %v10793_v63 = vld [vmem:[#allocation97_spill] sm:$0xff] }
 0x10c   : > { %10777 = vst [vmem:[#allocation59_spill] sm:$0xff] %v7842_v56  ;;  %v10783_v5 = vand.u32 4294901760, %v10782_v43  ;;  %v7884_v62 = vand.u32 4294901760, %v7859_v49  ;;  %v10791_v47 = vpack.c.bf16 %v7203_v40, %v7189_v12  ;;  %v10795_v43 = vld [vmem:[#allocation100_spill] sm:$0xff] }
 0x10d   : > { %10772 = vst [vmem:[#allocation149_spill] sm:$0xff] %v7831_v11  ;;  %5081 = vmatpush1.bf16.msra.mxu1 %v7831_v11  ;;  %5221 = vmatpush1.bf16.msra.mxu0 %v10778_v2  ;;  %v7870_v2 = vand.u32 4294901760, %v7853_v25  ;;  %v10796_v30 = vand.u32 4294901760, %v10795_v43  ;;  %v7921_v43 = vld [vmem:[%s6529_s12 + $0xf8] sm:$0xff]  ;;  %v10816_v12 = vld [vmem:[#allocation112_spill] sm:$0xff] }
 0x10e   : > { %5223 = vmatprep.subr.bf16.mxu0 %v10779_v8  ;;  %v7865_v15 = vpack.c.bf16 %v10783_v5, %v10781_v36  ;;  %5083 = vmatprep.subr.bf16.mxu1 %v7842_v56  ;;  %v7876_v8 = vpack.c.bf16 %v10788_v53, %v10786_v38  ;;  %v10790_v5 = vpack.c.bf16 %v7177_v33, %v7160_v1  ;;  %v7887_v36 = vld [vmem:[%s6529_s12 + $0xd0] sm:$0xff]  ;;  %v7893_v53 = vld [vmem:[%s6529_s12 + $0xe8] sm:$0xff]  ;;  %v10794_v38 = vand.u32 4294901760, %v10793_v63 }
 0x10f   : > { %1564 = vmatprep.mubr.f32.mxu0 %v7850_v48  ;;  %10792 = vst [vmem:[#allocation62_spill] sm:$0xff] %v7893_v53  ;;  %v7912_v63 = vand.u32 4294901760, %v7893_v53  ;;  %10802 = vst [vmem:[#allocation74_spill] sm:$0xff] %v7921_v43  ;;  %v10817_v1 = vld [vmem:[#allocation153_spill] sm:$0xff] }
 0x110   : > { %10784 = vst [vmem:[#allocation60_spill] sm:$0xff] %v7865_v15  ;;  %10789 = vst [vmem:[#allocation61_spill] sm:$0xff] %v7876_v8  ;;  %v7899_v33 = vpack.c.bf16 %v10796_v30, %v10794_v38  ;;  %1566 = vmatmul.mubr.f32.gmra.mrb[24].mxu0 %v7870_v2  ;;  %v7915_v30 = vld [vmem:[%s6529_s12 + $0xe0] sm:$0xff]  ;;  %v10801_v38 = vpack.c.bf16 %v7255_v55, %v7235_v7  ;;  %v7934_v55 = vand.u32 4294901760, %v7921_v43 }
 0x111   : > { %5085 = vmatpush1.bf16.msra.mxu1 %v7865_v15  ;;  %5225 = vmatpush1.bf16.msra.mxu0 %v10790_v5  ;;  %v7904_v5 = vand.u32 4294901760, %v7887_v36  ;;  %10799 = vst [vmem:[#allocation68_spill] sm:$0xff] %v7912_v63  ;;  %10800 = vst [vmem:[#allocation72_spill] sm:$0xff] %v7915_v30  ;;  %v10807_v7 = vpack.c.bf16 %v7307_v24, %v10587_v21  ;;  %v10813_v24 = vld [vmem:[#allocation156_spill] sm:$0xff]  ;;  %v10814_v21 = vld [vmem:[#allocation154_spill] sm:$0xff] }
 0x112   : > { %5227 = vmatprep.subr.bf16.mxu0 %v10791_v47  ;;  %10797 = vst [vmem:[#allocation64_spill] sm:$0xff] %v7899_v33  ;;  %5087 = vmatprep.subr.bf16.mxu1 %v7876_v8  ;;  %v10798_v47 = vpack.c.bf16 %v7228_v57, %v7215_v37  ;;  %v7926_v57 = vand.u32 4294901760, %v7915_v30  ;;  %10805 = vst [vmem:[#allocation76_spill] sm:$0xff] %v7934_v55  ;;  %v7958_v40 = vsub.f32 %v10814_v21, %v10813_v24  ;;  %v10824_v21 = vld [vmem:[#allocation160_spill] sm:$0xff]  ;;  %v10825_v24 = vld [vmem:[#allocation158_spill] sm:$0xff] }
 0x113   : > { %1572 = vmatprep.mubr.f32.mxu0 %v7884_v62  ;;  %v10837_v30 = vld [vmem:[#allocation168_spill] sm:$0xff] }
 0x114   : > { %1574 = vmatmul.mubr.f32.gmra.mrb[26].mxu0 %v7904_v5  ;;  %10803 = vst [vmem:[#allocation75_spill] sm:$0xff] %v7926_v57  ;;  %10815 = vst [vmem:[#allocation80_spill] sm:$0xff] %v7958_v40 }
 0x115   : > { %5089 = vmatpush1.bf16.msra.mxu1 %v7899_v33  ;;  %5229 = vmatpush1.bf16.msra.mxu0 %v10798_v47  ;;  %v10804_v47 = vpack.c.bf16 %v7281_v50, %v7264_v32  ;;  %v10810_v50 = vld [vmem:[#allocation148_spill] sm:$0xff] }
 0x116   : > { %5231 = vmatprep.subr.bf16.mxu0 %v10801_v38  ;;  %5091 = vmatprep.subr.bf16.mxu1 %v7591_v58  ;;  %v7937_v38 = vld [vmem:[%s6529_s12 + $0xf0] sm:$0xff]  ;;  %v10811_v32 = vpack.c.bf16 %v7359_v4, %v10810_v50  ;;  %v7975_v50 = vsub.f32 %v10825_v24, %v10824_v21  ;;  %v10831_v21 = vld [vmem:[#allocation164_spill] sm:$0xff] }
 0x117   : > { %1580 = vmatprep.mubr.f32.mxu0 %v7912_v63  ;;  %10806 = vst [vmem:[#allocation77_spill] sm:$0xff] %v7937_v38  ;;  %v7945_v37 = vand.u32 4294901760, %v7937_v38  ;;  %v10818_v38 = vld [vmem:[#allocation151_spill] sm:$0xff] }
 0x118   : > { %1582 = vmatmul.mubr.f32.gmra.mrb[28].mxu0 %v7926_v57  ;;  %10826 = vst [vmem:[#allocation87_spill] sm:$0xff] %v7975_v50 }
 0x119   : > { %5093 = vmatpush1.bf16.msra.mxu1 %v7597_v42  ;;  %5233 = vmatpush1.bf16.msra.mxu0 %v10804_v47  ;;  %10808 = vst [vmem:[#allocation79_spill] sm:$0xff] %v7945_v37  ;;  %v10809_v47 = vpack.c.bf16 %v10589_v0, %v10588_v18  ;;  %v10819_v0 = vpack.c.bf16 %v10817_v1, %v10818_v38  ;;  %v10821_v18 = vld [vmem:[#allocation155_spill] sm:$0xff] }
 0x11a   : > { %5235 = vmatprep.subr.bf16.mxu0 %v10807_v7  ;;  %5095 = vmatprep.subr.bf16.mxu1 %v7603_v10  ;;  %v10812_v7 = vld [vmem:[#allocation109_spill] sm:$0xff]  ;;  %v10827_v1 = vld [vmem:[#allocation27_spill] sm:$0xff] }
 0x11b   : > { %1588 = vmatprep.mubr.f32.mxu0 %v7934_v55  ;;  %v10829_v38 = vld [vmem:[#allocation159_spill] sm:$0xff] }
 0x11c   : > { %1590 = vmatmul.mubr.f32.gmra.mrb[30].mxu0 %v7945_v37  ;;  %v10832_v37 = vld [vmem:[#allocation162_spill] sm:$0xff] }
 0x11d   : > { %5097 = vmatpush1.bf16.msra.mxu1 %v7620_v61  ;;  %5237 = vmatpush1.bf16.msra.mxu0 %v10809_v47  ;;  %v10820_v47 = vld [vmem:[#allocation157_spill] sm:$0xff]  ;;  %v7993_v43 = vsub.f32 %v10832_v37, %v10831_v21 }
 0x11e   : > { %5239 = vmatprep.subr.bf16.mxu0 %v10811_v32  ;;  %5099 = vmatprep.subr.bf16.mxu1 %v10812_v7  ;;  %v7968_v4 = vsub.f32 %v10821_v18, %v10820_v47  ;;  %v10823_v32 = vld [vmem:[#allocation25_spill] sm:$0xff]  ;;  %v10263_v47 = vand.u32 4294901760, %v7958_v40 }
 0x11f   : > { %1790 = vmatprep.mubr.f32.mxu0 %v7684_v6  ;;  %v10830_v6 = vld [vmem:[#allocation29_spill] sm:$0xff] }
 0x120   : > { %10822 = vst [vmem:[#allocation84_spill] sm:$0xff] %v7968_v4  ;;  %v835_v24 = vsub.f32 %v7958_v40, %v10263_v47  ;;  %v10272_v55 = vand.u32 4294901760, %v7968_v4  ;;  %v10274_v47 = vand.u32 4294901760, %v7975_v50 }
 0x121   : > { %5101 = vmatpush1.bf16.msra.mxu1 %v10816_v12  ;;  %5241 = vmatpush1.bf16.msra.mxu0 %v10819_v0  ;;  %v10828_v0 = vld [vmem:[#allocation161_spill] sm:$0xff] }
 0x122   : > { %5243 = vmatprep.subr.bf16.mxu0 %v10823_v32  ;;  %5103 = vmatprep.subr.bf16.mxu1 %v7658_v54  ;;  %v7982_v18 = vsub.f32 %v10829_v38, %v10828_v0  ;;  %v10833_v38 = vld [vmem:[#allocation31_spill] sm:$0xff]  ;;  %v10834_v0 = vld [vmem:[#allocation165_spill] sm:$0xff]  ;;  %v845_v37 = vsub.f32 %v7968_v4, %v10272_v55  ;;  %v836_v21 = vand.u32 4294901760, %v835_v24 }
 0x123   : > { %v10840_v55 = vld [vmem:[#allocation169_spill] sm:$0xff]  ;;  %v10841_v24 = vld [vmem:[#allocation167_spill] sm:$0xff] }
 0x124   : > { %1793 = vmatmul.mubr.f32.vlgmr.msra.gmra.mrb[0].mxu0 %v7958_v40  ;;  %v10836_v40 = vld [vmem:[#allocation41_spill] sm:$0xff]  ;;  %v10284_v57 = vand.u32 4294901760, %v7982_v18 }
 0x125   : > { %5105 = vmatpush1.bf16.msra.mxu1 %v7664_v14  ;;  %5245 = vmatpush1.bf16.msra.mxu0 %v10827_v1 }
 0x126   : > { %1800 = vmatprep.mubr.f32.mxu0 %v7968_v4  ;;  %5247 = vmatprep.subr.bf16.mxu0 %v10830_v6  ;;  %v8023_v4 = vsub.f32 %v10841_v24, %v10840_v55  ;;  %v10843_v24 = vld [vmem:[#allocation28_spill] sm:$0xff]  ;;  %v10844_v55 = vld [vmem:[#allocation170_spill] sm:$0xff] }
 0x127   : > { %5107 = vmatprep.subr.bf16.mxu1 %v7670_v31  ;;  %v10835_v31 = vld [vmem:[#allocation163_spill] sm:$0xff]  ;;  %v8037_v53 = vsub.f32 %v10844_v55, %v10843_v24 }
 0x128   : > { %1803 = vmatmul.mubr.f32.gmra.mrb[2].mxu0 %v7975_v50  ;;  %v8001_v14 = vsub.f32 %v10835_v31, %v10834_v0  ;;  %v10838_v31 = vld [vmem:[#allocation166_spill] sm:$0xff] }
 0x129   : > { %5109 = vmatpush1.bf16.msra.mxu1 %v7676_v27  ;;  %5249 = vmatpush1.bf16.msra.mxu0 %v10833_v38  ;;  %v851_v27 = vsub.f32 %v7975_v50, %v10274_v47  ;;  %v8015_v0 = vsub.f32 %v10838_v31, %v10837_v30  ;;  %v10283_v47 = vand.u32 4294901760, %v7993_v43  ;;  %v10842_v50 = vld [vmem:[#allocation107_spill] sm:$0xff]  ;;  %v846_v31 = vand.u32 4294901760, %v845_v37 }
 0x12a   : > { %1810 = vmatprep.mubr.f32.mxu0 %v7982_v18  ;;  %5251 = vmatprep.subr.bf16.mxu0 %v10836_v40  ;;  %v861_v30 = vsub.f32 %v7982_v18, %v10284_v57  ;;  %v10288_v63 = vand.u32 4294901760, %v8001_v14 }
 0x12b   : > { %5111 = vmatprep.subr.bf16.mxu1 %v7697_v45  ;;  %v10839_v45 = vld [vmem:[#allocation43_spill] sm:$0xff]  ;;  %v867_v54 = vsub.f32 %v7993_v43, %v10283_v47  ;;  %v10287_v47 = vand.u32 4294901760, %v8015_v0 }
 0x12c   : > { %1813 = vmatmul.mubr.f32.gmra.mrb[4].mxu0 %v7993_v43  ;;  %v862_v57 = vand.u32 4294901760, %v861_v30  ;;  %v877_v55 = vsub.f32 %v8001_v14, %v10288_v63  ;;  %v10292_v30 = vand.u32 4294901760, %v8023_v4 }
 0x12d   : > { %5113 = vmatpush1.bf16.msra.mxu1 %v7713_v41  ;;  %5253 = vmatpush1.bf16.msra.mxu0 %v10839_v45  ;;  %v852_v41 = vand.u32 4294901760, %v851_v27  ;;  %v10846_v27 = vld [vmem:[#allocation26_spill] sm:$0xff]  ;;  %v868_v24 = vand.u32 4294901760, %v867_v54  ;;  %v10850_v54 = vld [vmem:[#allocation172_spill] sm:$0xff] }
 0x12e   : > { %1820 = vmatprep.mubr.f32.mxu0 %v8001_v14  ;;  %5255 = vmatprep.subr.bf16.mxu0 %v10842_v50  ;;  %v878_v63 = vand.u32 4294901760, %v877_v55 }
 0x12f   : > { %5674 = vmatprep.subr.bf16.mxu1 %v10823_v32  ;;  %v10848_v32 = vld [vmem:[#allocation171_spill] sm:$0xff] }
 0x130   : > { %837 = vmatmul.mubr.f32.vlgmr.msra.gmra.mrb[0].mxu1 %v836_v21  ;;  %1823 = vmatmul.mubr.f32.gmra.mrb[6].mxu0 %v8015_v0  ;;  %v10845_v21 = vld [vmem:[#allocation30_spill] sm:$0xff] }
 0x131   : > { %5690 = vmatpush1.bf16.msra.mxu1 %v10827_v1  ;;  %5257 = vmatpush1.bf16.msra.mxu0 %v7651_v9  ;;  %v8045_v37 = vsub.f32 %v10846_v27, %v10845_v21  ;;  %v883_v1 = vsub.f32 %v8015_v0, %v10287_v47  ;;  %v10847_v27 = vld [vmem:[#allocation32_spill] sm:$0xff]  ;;  %v10291_v47 = vand.u32 4294901760, %v8037_v53 }
 0x132   : > { %1830 = vmatprep.mubr.f32.mxu0 %v8023_v4  ;;  %5259 = vmatprep.subr.bf16.mxu0 %v7690_v35  ;;  %v8059_v21 = vsub.f32 %v10848_v32, %v10847_v27  ;;  %v893_v32 = vsub.f32 %v8023_v4, %v10292_v30 }
 0x133   : > { %847 = vmatprep.mubr.f32.mxu1 %v846_v31  ;;  %5675 = vmatprep.subr.bf16.mxu1 %v10830_v6  ;;  %v899_v6 = vsub.f32 %v8037_v53, %v10291_v47 }
 0x134   : > { %853 = vmatmul.mubr.f32.gmra.mrb[2].mxu1 %v852_v41  ;;  %1833 = vmatmul.mubr.f32.gmra.mrb[8].mxu0 %v8037_v53  ;;  %v10849_v41 = vld [vmem:[#allocation42_spill] sm:$0xff]  ;;  %v10294_v55 = vand.u32 4294901760, %v8059_v21  ;;  %v894_v47 = vand.u32 4294901760, %v893_v32 }
 0x135   : > { %5691 = vmatpush1.bf16.msra.mxu1 %v10833_v38  ;;  %5261 = vmatpush1.bf16.msra.mxu0 %v7725_v13  ;;  %v8067_v31 = vsub.f32 %v10850_v54, %v10849_v41  ;;  %v884_v38 = vand.u32 4294901760, %v883_v1  ;;  %v10851_v54 = vld [vmem:[#allocation173_spill] sm:$0xff]  ;;  %v10852_v1 = vld [vmem:[#allocation174_spill] sm:$0xff]  ;;  %v900_v30 = vand.u32 4294901760, %v899_v6 }
 0x136   : > { %1840 = vmatprep.mubr.f32.mxu0 %v8045_v37  ;;  %5263 = vmatprep.subr.bf16.mxu0 %v7737_v26  ;;  %v8081_v41 = vsub.f32 %v10851_v54, %v7607_v3  ;;  %v10853_v6 = vld [vmem:[#allocation45_spill] sm:$0xff] }
 0x137   : > { %863 = vmatprep.mubr.f32.mxu1 %v862_v57  ;;  %5676 = vmatprep.subr.bf16.mxu1 %v10836_v40  ;;  %v10295_v57 = vand.u32 4294901760, %v8045_v37 }
 0x138   : > { %869 = vmatmul.mubr.f32.gmra.mrb[4].mxu1 %v868_v24  ;;  %1843 = vmatmul.mubr.f32.gmra.mrb[10].mxu0 %v8059_v21  ;;  %v8089_v24 = vsub.f32 %v10852_v1, %v7624_v44  ;;  %v8103_v1 = vsub.f32 %v7627_v22, %v7680_v20  ;;  %v10298_v32 = vand.u32 4294901760, %v8081_v41 }
 0x139   : > { %5692 = vmatpush1.bf16.msra.mxu1 %v10839_v45  ;;  %5265 = vmatpush1.bf16.msra.mxu0 %v7763_v39  ;;  %v909_v54 = vsub.f32 %v8045_v37, %v10295_v57  ;;  %v915_v45 = vsub.f32 %v8059_v21, %v10294_v55 }
 0x13a   : > { %1850 = vmatprep.mubr.f32.mxu0 %v8067_v31  ;;  %5267 = vmatprep.subr.bf16.mxu0 %v7774_v51 }
 0x13b   : > { %879 = vmatprep.mubr.f32.mxu1 %v878_v63  ;;  %5677 = vmatprep.subr.bf16.mxu1 %v10842_v50  ;;  %v10299_v63 = vand.u32 4294901760, %v8067_v31  ;;  %v910_v55 = vand.u32 4294901760, %v909_v54  ;;  %v916_v57 = vand.u32 4294901760, %v915_v45  ;;  %v10855_v45 = vld [vmem:[#allocation128_spill] sm:$0xff]  ;;  %v10301_v54 = vand.u32 4294901760, %v8103_v1 }
 0x13c   : > { %885 = vmatmul.mubr.f32.gmra.mrb[6].mxu1 %v884_v38  ;;  %1853 = vmatmul.mubr.f32.gmra.mrb[12].mxu0 %v8081_v41  ;;  %v8111_v38 = vsub.f32 %v10853_v6, %v7704_v60  ;;  %v10854_v6 = vld [vmem:[#allocation50_spill] sm:$0xff] }
 0x13d   : > { %5693 = vmatpush1.bf16.msra.mxu1 %v7651_v9  ;;  %5269 = vmatpush1.bf16.msra.mxu0 %v7797_v28  ;;  %v925_v22 = vsub.f32 %v8067_v31, %v10299_v63  ;;  %v931_v9 = vsub.f32 %v8081_v41, %v10298_v32  ;;  %v8125_v50 = vsub.f32 %v10854_v6, %v7731_v34 }
 0x13e   : > { %1860 = vmatprep.mubr.f32.mxu0 %v8089_v24  ;;  %5271 = vmatprep.subr.bf16.mxu0 %v7808_v23 }
 0x13f   : > { %895 = vmatprep.mubr.f32.mxu1 %v894_v47  ;;  %5678 = vmatprep.subr.bf16.mxu1 %v7690_v35  ;;  %v10302_v47 = vand.u32 4294901760, %v8089_v24  ;;  %v926_v32 = vand.u32 4294901760, %v925_v22  ;;  %v932_v63 = vand.u32 4294901760, %v931_v9  ;;  %v10856_v9 = vld [vmem:[#allocation134_spill] sm:$0xff]  ;;  %v10305_v22 = vand.u32 4294901760, %v8125_v50 }
 0x140   : > { %901 = vmatmul.mubr.f32.gmra.mrb[8].mxu1 %v900_v30  ;;  %1863 = vmatmul.mubr.f32.gmra.mrb[14].mxu0 %v8103_v1  ;;  %v8133_v30 = vsub.f32 %v10855_v45, %v7748_v17  ;;  %v8147_v45 = vsub.f32 %v7751_v52, %v7768_v16 }
 0x141   : > { %5694 = vmatpush1.bf16.msra.mxu1 %v7725_v13  ;;  %5273 = vmatpush1.bf16.msra.mxu0 %v7831_v11  ;;  %v941_v6 = vsub.f32 %v8089_v24, %v10302_v47  ;;  %v947_v13 = vsub.f32 %v8103_v1, %v10301_v54 }
 0x142   : > { %1870 = vmatprep.mubr.f32.mxu0 %v8111_v38  ;;  %5275 = vmatprep.subr.bf16.mxu0 %v7842_v56 }
 0x143   : > { %911 = vmatprep.mubr.f32.mxu1 %v910_v55  ;;  %5679 = vmatprep.subr.bf16.mxu1 %v7737_v26  ;;  %v10306_v55 = vand.u32 4294901760, %v8111_v38  ;;  %v942_v54 = vand.u32 4294901760, %v941_v6  ;;  %v948_v47 = vand.u32 4294901760, %v947_v13  ;;  %v10858_v13 = vld [vmem:[#allocation57_spill] sm:$0xff]  ;;  %v10309_v6 = vand.u32 4294901760, %v8147_v45 }
 0x144   : > { %917 = vmatmul.mubr.f32.gmra.mrb[10].mxu1 %v916_v57  ;;  %1873 = vmatmul.mubr.f32.gmra.mrb[16].mxu0 %v8125_v50  ;;  %v8155_v57 = vsub.f32 %v10856_v9, %v7782_v59  ;;  %v10857_v9 = vld [vmem:[#allocation140_spill] sm:$0xff] }
 0x145   : > { %5695 = vmatpush1.bf16.msra.mxu1 %v7763_v39  ;;  %5277 = vmatpush1.bf16.msra.mxu0 %v7865_v15  ;;  %v957_v52 = vsub.f32 %v8111_v38, %v10306_v55  ;;  %v963_v39 = vsub.f32 %v8125_v50, %v10305_v22  ;;  %v8169_v26 = vsub.f32 %v10857_v9, %v7802_v46 }
 0x146   : > { %1880 = vmatprep.mubr.f32.mxu0 %v8133_v30  ;;  %5279 = vmatprep.subr.bf16.mxu0 %v7876_v8 }
 0x147   : > { %927 = vmatprep.mubr.f32.mxu1 %v926_v32  ;;  %5680 = vmatprep.subr.bf16.mxu1 %v7774_v51  ;;  %v10310_v32 = vand.u32 4294901760, %v8133_v30  ;;  %v958_v22 = vand.u32 4294901760, %v957_v52  ;;  %v964_v55 = vand.u32 4294901760, %v963_v39  ;;  %v10860_v39 = vld [vmem:[#allocation146_spill] sm:$0xff]  ;;  %v10312_v52 = vand.u32 4294901760, %v8169_v26 }
 0x148   : > { %933 = vmatmul.mubr.f32.gmra.mrb[12].mxu1 %v932_v63  ;;  %1883 = vmatmul.mubr.f32.gmra.mrb[18].mxu0 %v8147_v45  ;;  %v8177_v63 = vsub.f32 %v10858_v13, %v7816_v19  ;;  %v10859_v13 = vld [vmem:[#allocation144_spill] sm:$0xff] }
 0x149   : > { %5696 = vmatpush1.bf16.msra.mxu1 %v7797_v28  ;;  %5281 = vmatpush1.bf16.msra.mxu0 %v7899_v33  ;;  %v973_v9 = vsub.f32 %v8133_v30, %v10310_v32  ;;  %v979_v28 = vsub.f32 %v8147_v45, %v10309_v6  ;;  %v8191_v51 = vsub.f32 %v10859_v13, %v7836_v29 }
 0x14a   : > { %1890 = vmatprep.mubr.f32.mxu0 %v8155_v57  ;;  %5283 = vmatprep.subr.bf16.mxu0 %v7591_v58 }
 0x14b   : > { %943 = vmatprep.mubr.f32.mxu1 %v942_v54  ;;  %5681 = vmatprep.subr.bf16.mxu1 %v7808_v23  ;;  %v10313_v54 = vand.u32 4294901760, %v8155_v57  ;;  %v974_v6 = vand.u32 4294901760, %v973_v9  ;;  %v980_v32 = vand.u32 4294901760, %v979_v28  ;;  %v8221_v28 = vsub.f32 %v7859_v49, %v7884_v62 }
 0x14c   : > { %949 = vmatmul.mubr.f32.gmra.mrb[14].mxu1 %v948_v47  ;;  %1893 = vmatmul.mubr.f32.gmra.mrb[20].mxu0 %v8169_v26  ;;  %v8199_v47 = vsub.f32 %v10860_v39, %v7850_v48  ;;  %v8213_v39 = vsub.f32 %v7853_v25, %v7870_v2  ;;  %v8235_v49 = vsub.f32 %v7887_v36, %v7904_v5 }
 0x14d   : > { %5697 = vmatpush1.bf16.msra.mxu1 %v7831_v11  ;;  %5285 = vmatpush1.bf16.msra.mxu0 %v7597_v42  ;;  %v989_v13 = vsub.f32 %v8155_v57, %v10313_v54  ;;  %v995_v11 = vsub.f32 %v8169_v26, %v10312_v52  ;;  %10863 = vst [vmem:[#allocation92_spill] sm:$0xff] %v8221_v28 }
 0x14e   : > { %1900 = vmatprep.mubr.f32.mxu0 %v8177_v63  ;;  %10861 = vst [vmem:[#allocation89_spill] sm:$0xff] %v8199_v47  ;;  %5287 = vmatprep.subr.bf16.mxu0 %v7603_v10  ;;  %10862 = vst [vmem:[#allocation91_spill] sm:$0xff] %v8213_v39 }
 0x14f   : > { %959 = vmatprep.mubr.f32.mxu1 %v958_v22  ;;  %5682 = vmatprep.subr.bf16.mxu1 %v7842_v56  ;;  %v10315_v22 = vand.u32 4294901760, %v8177_v63  ;;  %v990_v9 = vand.u32 4294901760, %v989_v13  ;;  %v996_v52 = vand.u32 4294901760, %v995_v11  ;;  %10864 = vst [vmem:[#allocation93_spill] sm:$0xff] %v8235_v49  ;;  %v10866_v11 = vld [vmem:[#allocation62_spill] sm:$0xff]  ;;  %v10870_v56 = vld [vmem:[#allocation72_spill] sm:$0xff] }
 0x150   : > { %965 = vmatmul.mubr.f32.gmra.mrb[16].mxu1 %v964_v55  ;;  %1903 = vmatmul.mubr.f32.gmra.mrb[22].mxu0 %v8191_v51  ;;  %v10314_v55 = vand.u32 4294901760, %v8191_v51 }
 0x151   : > { %5698 = vmatpush1.bf16.msra.mxu1 %v7865_v15  ;;  %5289 = vmatpush1.bf16.msra.mxu0 %v7620_v61  ;;  %v1005_v25 = vsub.f32 %v8177_v63, %v10315_v22  ;;  %v10868_v22 = vld [vmem:[#allocation114_spill] sm:$0xff] }
 0x152   : > { %1910 = vmatprep.mubr.f32.mxu0 %v8199_v47  ;;  %5291 = vmatprep.subr.bf16.mxu0 %v10812_v7  ;;  %v1011_v54 = vsub.f32 %v8191_v51, %v10314_v55  ;;  %v10322_v55 = vand.u32 4294901760, %v8213_v39 }
 0x153   : > { %975 = vmatprep.mubr.f32.mxu1 %v974_v6  ;;  %5683 = vmatprep.subr.bf16.mxu1 %v7876_v8  ;;  %v10321_v6 = vand.u32 4294901760, %v8199_v47  ;;  %v1006_v8 = vand.u32 4294901760, %v1005_v25  ;;  %v10872_v25 = vld [vmem:[#allocation117_spill] sm:$0xff] }
 0x154   : > { %981 = vmatmul.mubr.f32.gmra.mrb[18].mxu1 %v980_v32  ;;  %1913 = vmatmul.mubr.f32.gmra.mrb[24].mxu0 %v8213_v39  ;;  %v10865_v32 = vld [vmem:[#allocation68_spill] sm:$0xff]  ;;  %v1027_v15 = vsub.f32 %v8213_v39, %v10322_v55  ;;  %v10329_v55 = vand.u32 4294901760, %v8235_v49 }
 0x155   : > { %5699 = vmatpush1.bf16.msra.mxu1 %v7899_v33  ;;  %5293 = vmatpush1.bf16.msra.mxu0 %v10816_v12  ;;  %v8243_v13 = vsub.f32 %v10866_v11, %v10865_v32  ;;  %v1021_v36 = vsub.f32 %v8199_v47, %v10321_v6  ;;  %v1012_v33 = vand.u32 4294901760, %v1011_v54  ;;  %v10869_v11 = vld [vmem:[#allocation75_spill] sm:$0xff]  ;;  %v10874_v54 = vld [vmem:[#allocation74_spill] sm:$0xff] }
 0x156   : > { %1920 = vmatprep.mubr.f32.mxu0 %v8221_v28  ;;  %5295 = vmatprep.subr.bf16.mxu0 %v10868_v22  ;;  %v8257_v23 = vsub.f32 %v10870_v56, %v10869_v11  ;;  %v1043_v40 = vsub.f32 %v8235_v49, %v10329_v55 }
 0x157   : > { %10867 = vst [vmem:[#allocation96_spill] sm:$0xff] %v8243_v13  ;;  %991 = vmatprep.mubr.f32.mxu1 %v990_v9  ;;  %5684 = vmatprep.subr.bf16.mxu1 %v7591_v58  ;;  %v10328_v9 = vand.u32 4294901760, %v8221_v28  ;;  %v10875_v58 = vld [vmem:[#allocation118_spill] sm:$0xff]  ;;  %v1022_v35 = vand.u32 4294901760, %v1021_v36  ;;  %v10878_v36 = vld [vmem:[#allocation121_spill] sm:$0xff] }
 0x158   : > { %997 = vmatmul.mubr.f32.gmra.mrb[20].mxu1 %v996_v52  ;;  %1923 = vmatmul.mubr.f32.gmra.mrb[26].mxu0 %v8235_v49  ;;  %10871 = vst [vmem:[#allocation97_spill] sm:$0xff] %v8257_v23  ;;  %v10873_v52 = vld [vmem:[#allocation76_spill] sm:$0xff] }
 0x159   : > { %5700 = vmatpush1.bf16.msra.mxu1 %v7597_v42  ;;  %5297 = vmatpush1.bf16.msra.mxu0 %v10872_v25  ;;  %v8265_v6 = vsub.f32 %v10874_v54, %v10873_v52  ;;  %v1037_v56 = vsub.f32 %v8221_v28, %v10328_v9  ;;  %v1028_v42 = vand.u32 4294901760, %v1027_v15  ;;  %v10876_v54 = vld [vmem:[#allocation79_spill] sm:$0xff]  ;;  %v10877_v52 = vld [vmem:[#allocation77_spill] sm:$0xff] }
 0x15a   : > { %1930 = vmatprep.mubr.f32.mxu0 %v8243_v13  ;;  %5299 = vmatprep.subr.bf16.mxu0 %v10875_v58  ;;  %v8279_v39 = vsub.f32 %v10877_v52, %v10876_v54  ;;  %v10879_v15 = vld [vmem:[#allocation47_spill] sm:$0xff]  ;;  %v10880_v9 = vld [vmem:[#allocation33_spill] sm:$0xff] }
 0x15b   : > { %1007 = vmatprep.mubr.f32.mxu1 %v1006_v8  ;;  %5685 = vmatprep.subr.bf16.mxu1 %v7603_v10  ;;  %v10334_v8 = vand.u32 4294901760, %v8243_v13  ;;  %v10881_v55 = vand.u32 4294901760, %v10880_v9  ;;  %v10882_v10 = vld [vmem:[#allocation34_spill] sm:$0xff]  ;;  %v1038_v52 = vand.u32 4294901760, %v1037_v56  ;;  %v10889_v56 = vld [vmem:[#allocation36_spill] sm:$0xff]  ;;  %v10895_v32 = vand.u32 4294901760, %v8265_v6 }
 0x15c   : > { %1013 = vmatmul.mubr.f32.gmra.mrb[22].mxu1 %v1012_v33  ;;  %1933 = vmatmul.mubr.f32.gmra.mrb[28].mxu0 %v8257_v23  ;;  %v10336_v33 = vand.u32 4294901760, %v8257_v23  ;;  %v10883_v49 = vand.u32 4294901760, %v10882_v10  ;;  %v10884_v10 = vld [vmem:[#allocation126_spill] sm:$0xff] }
 0x15d   : > { %5701 = vmatpush1.bf16.msra.mxu1 %v7620_v61  ;;  %5301 = vmatpush1.bf16.msra.mxu0 %v10878_v36  ;;  %v1053_v54 = vsub.f32 %v8243_v13, %v10334_v8  ;;  %v1044_v61 = vand.u32 4294901760, %v1043_v40  ;;  %v10890_v8 = vand.u32 4294901760, %v10889_v56  ;;  %v10893_v13 = vld [vmem:[#allocation38_spill] sm:$0xff] }
 0x15e   : > { %1940 = vmatprep.mubr.f32.mxu0 %v8265_v6  ;;  %5303 = vmatprep.subr.bf16.mxu0 %v10879_v15  ;;  %v5306_v28 = vpack.c.bf16 %v10883_v49, %v10881_v55  ;;  %v1059_v11 = vsub.f32 %v8257_v23, %v10336_v33  ;;  %v10887_v49 = vld [vmem:[#allocation35_spill] sm:$0xff]  ;;  %v10891_v33 = vld [vmem:[#allocation37_spill] sm:$0xff]  ;;  %v10894_v47 = vand.u32 4294901760, %v10893_v13 }
 0x15f   : > { %1023 = vmatprep.mubr.f32.mxu1 %v1022_v35  ;;  %5686 = vmatprep.subr.bf16.mxu1 %v10812_v7  ;;  %v10885_v35 = vld [vmem:[#allocation122_spill] sm:$0xff]  ;;  %v10341_v7 = vand.u32 4294901760, %v8279_v39  ;;  %v10892_v23 = vand.u32 4294901760, %v10891_v33  ;;  %v10900_v13 = vld [vmem:[#allocation39_spill] sm:$0xff] }
 0x160   : > { %1029 = vmatmul.mubr.f32.gmra.mrb[24].mxu1 %v1028_v42  ;;  %1943 = vmatmul.mubr.f32.gmra.mrb[30].mxu0 %v8279_v39  ;;  %v10886_v55 = vand.u32 4294901760, %v10885_v35  ;;  %v10888_v42 = vand.u32 4294901760, %v10887_v49  ;;  %v1069_v35 = vsub.f32 %v8265_v6, %v10895_v32  ;;  %v10902_v32 = vld [vmem:[#allocation40_spill] sm:$0xff] }
 0x161   : > { %5702 = vmatpush1.bf16.msra.mxu1 %v10816_v12  ;;  %5305 = vmatpush1.bf16.msra.mxu0 %v10884_v10  ;;  %v5310_v9 = vpack.c.bf16 %v10894_v47, %v10892_v23  ;;  %v1054_v12 = vand.u32 4294901760, %v1053_v54  ;;  %v10898_v23 = vld [vmem:[#allocation84_spill] sm:$0xff]  ;;  %v10901_v54 = vand.u32 4294901760, %v10900_v13 }
 0x162   : > { %2080 = vmatprep.mubr.f32.mxu0 %v10886_v55  ;;  %v5308_v40 = vpack.c.bf16 %v10890_v8, %v10888_v42  ;;  %5307 = vmatprep.subr.bf16.mxu0 %v5306_v28  ;;  %v1060_v55 = vand.u32 4294901760, %v1059_v11  ;;  %v1075_v8 = vsub.f32 %v8279_v39, %v10341_v7  ;;  %v10896_v28 = vld [vmem:[#allocation80_spill] sm:$0xff]  ;;  %v10899_v47 = vand.u32 4294901760, %v10898_v23  ;;  %v10906_v42 = vld [vmem:[#allocation49_spill] sm:$0xff] }
 0x163   : > { %1039 = vmatprep.mubr.f32.mxu1 %v1038_v52  ;;  %5687 = vmatprep.subr.bf16.mxu1 %v10868_v22  ;;  %v10897_v49 = vand.u32 4294901760, %v10896_v28  ;;  %v10904_v11 = vld [vmem:[#allocation48_spill] sm:$0xff]  ;;  %v10907_v56 = vand.u32 4294901760, %v10906_v42  ;;  %v1070_v28 = vand.u32 4294901760, %v1069_v35 }
 0x164   : > { %1045 = vmatmul.mubr.f32.gmra.mrb[26].mxu1 %v1044_v61  ;;  %v10903_v61 = vand.u32 4294901760, %v10902_v32  ;;  %v10905_v52 = vand.u32 4294901760, %v10904_v11  ;;  %v10923_v42 = vld [vmem:[#allocation56_spill] sm:$0xff] }
 0x165   : > { %2084 = vmatmul.mubr.f32.vlgmr.msra.gmra.mrb[0].mxu0 %v10897_v49  ;;  %5703 = vmatpush1.bf16.msra.mxu1 %v10872_v25  ;;  %v10908_v49 = vld [vmem:[#allocation87_spill] sm:$0xff] }
 0x166   : > { %5309 = vmatpush1.bf16.msra.mxu0 %v5308_v40  ;;  %2092 = vmatprep.mubr.f32.mxu0 %v10899_v47  ;;  %v5312_v33 = vpack.c.bf16 %v10903_v61, %v10901_v54  ;;  %v5314_v7 = vpack.c.bf16 %v10907_v56, %v10905_v52  ;;  %v1076_v40 = vand.u32 4294901760, %v1075_v8  ;;  %v10909_v23 = vand.u32 4294901760, %v10908_v49  ;;  %v10913_v54 = vld [vmem:[#allocation52_spill] sm:$0xff]  ;;  %v10921_v52 = vld [vmem:[#allocation55_spill] sm:$0xff] }
 0x167   : > { %5311 = vmatprep.subr.bf16.mxu0 %v5310_v9  ;;  %1055 = vmatprep.mubr.f32.mxu1 %v1054_v12  ;;  %v10910_v47 = vand.u32 4294901760, %v7982_v18  ;;  %v10911_v9 = vld [vmem:[#allocation51_spill] sm:$0xff]  ;;  %v10914_v32 = vand.u32 4294901760, %v10913_v54  ;;  %v10915_v12 = vld [vmem:[#allocation53_spill] sm:$0xff]  ;;  %v10920_v18 = vand.u32 4294901760, %v8001_v14  ;;  %v10924_v56 = vand.u32 4294901760, %v10923_v42 }
 0x168   : > { %1061 = vmatmul.mubr.f32.gmra.mrb[28].mxu1 %v1060_v55  ;;  %5688 = vmatprep.subr.bf16.mxu1 %v10875_v58  ;;  %v10912_v13 = vand.u32 4294901760, %v10911_v9  ;;  %v10916_v35 = vand.u32 4294901760, %v10915_v12  ;;  %v10917_v55 = vld [vmem:[#allocation54_spill] sm:$0xff]  ;;  %v10932_v54 = vand.u32 4294901760, %v8023_v4  ;;  %v10935_v12 = vld [vmem:[#allocation67_spill] sm:$0xff]  ;;  %v10941_v4 = vand.u32 4294901760, %v8037_v53 }
 0x169   : > { %2096 = vmatmul.mubr.f32.gmra.mrb[2].mxu0 %v10909_v23  ;;  %5704 = vmatpush1.bf16.msra.mxu1 %v10878_v36  ;;  %v10918_v11 = vand.u32 4294901760, %v10917_v55  ;;  %v10927_v23 = vld [vmem:[#allocation65_spill] sm:$0xff]  ;;  %v10931_v14 = vld [vmem:[#allocation42_spill] sm:$0xff]  ;;  %v10942_v42 = vand.u32 4294901760, %v8045_v37  ;;  %v10951_v37 = vand.u32 4294901760, %v8059_v21 }
 0x16a   : > { %5313 = vmatpush1.bf16.msra.mxu0 %v5312_v33  ;;  %2104 = vmatprep.mubr.f32.mxu0 %v10910_v47  ;;  %v5316_v61 = vpack.c.bf16 %v10914_v32, %v10912_v13  ;;  %v10919_v33 = vand.u32 4294901760, %v7993_v43  ;;  %v10928_v47 = vand.u32 4294901760, %v10927_v23  ;;  %v10929_v43 = vld [vmem:[#allocation30_spill] sm:$0xff]  ;;  %v10930_v13 = vand.u32 4294901760, %v8015_v0  ;;  %v537_v53 = vld [vmem:[%s6534_s22 + $0x8] sm:$0xff] }
 0x16b   : > { %5315 = vmatprep.subr.bf16.mxu0 %v5314_v7  ;;  %v5318_v8 = vpack.c.bf16 %v10918_v11, %v10916_v35  ;;  %1071 = vmatprep.mubr.f32.mxu1 %v1070_v28  ;;  %v10922_v7 = vand.u32 4294901760, %v10921_v52  ;;  %v10925_v28 = vld [vmem:[#allocation63_spill] sm:$0xff]  ;;  %v10933_v32 = vld [vmem:[#allocation66_spill] sm:$0xff]  ;;  %v10936_v35 = vand.u32 4294901760, %v10935_v12  ;;  %v10937_v11 = vld [vmem:[#allocation69_spill] sm:$0xff]  ;;  %v6303_v0 = vmov 0  }
 0x16c   : > { %1077 = vmatmul.mubr.f32.gmra.mrb[30].mxu1 %v1076_v40  ;;  %5689 = vmatprep.subr.bf16.mxu1 %v10879_v15  ;;  %v10926_v40 = vand.u32 4294901760, %v10925_v28  ;;  %v10945_v28 = vld [vmem:[#allocation73_spill] sm:$0xff]  ;;  %v10952_v12 = vand.u32 4294901760, %v8067_v31  ;;  %v10961_v31 = vand.u32 4294901760, %v8081_v41 }
 0x16d   : > { %2108 = vmatmul.mubr.f32.gmra.mrb[4].mxu0 %v10919_v33  ;;  %5705 = vmatpush1.bf16.msra.mxu1 %v10884_v10  ;;  %v5320_v49 = vpack.c.bf16 %v10924_v56, %v10922_v7  ;;  %v10939_v33 = vld [vmem:[#allocation70_spill] sm:$0xff]  ;;  %v536_v7 = vld [vmem:[%s6534_s22] sm:$0xff]  ;;  %v541_v21 = vld [vmem:[%s6534_s22 + $0x28] sm:$0xff] }
 0x16e   : > { %5317 = vmatpush1.bf16.msra.mxu0 %v5316_v61  ;;  %2116 = vmatprep.mubr.f32.mxu0 %v10920_v18  ;;  %v5322_v9 = vpack.c.bf16 %v10928_v47, %v10926_v40  ;;  %v10934_v61 = vand.u32 4294901760, %v10933_v32  ;;  %v10940_v18 = vand.u32 4294901760, %v10939_v33  ;;  %v10943_v56 = vld [vmem:[#allocation71_spill] sm:$0xff]  ;;  %v10946_v40 = vand.u32 4294901760, %v10945_v28  ;;  %v10947_v47 = vld [vmem:[#allocation78_spill] sm:$0xff] }
 0x16f   : > { %5319 = vmatprep.subr.bf16.mxu0 %v5318_v8  ;;  %2824 = vmatprep.mubr.f32.mxu1 %v10929_v43  ;;  %v10938_v8 = vand.u32 4294901760, %v10937_v11  ;;  %v10955_v11 = vld [vmem:[#allocation83_spill] sm:$0xff]  ;;  %v542_v41 = vld [vmem:[%s6534_s22 + $0x30] sm:$0xff] }
 0x170   : > { %2826 = vmatmul.mubr.f32.vlgmr.msra.gmra.mrb[32].mxu1 %v10847_v27  ;;  %v5324_v55 = vpack.c.bf16 %v10936_v35, %v10934_v61  ;;  %6029 = vset.pattern.permute.xlu0 %v6303_v0  ;;  %v538_v61 = vld [vmem:[%s6534_s22 + $0x10] sm:$0xff] }
 0x171   : > { %2120 = vmatmul.mubr.f32.gmra.mrb[6].mxu0 %v10930_v13  ;;  %2832 = vmatprep.mubr.f32.mxu1 %v10931_v14  ;;  %v5326_v52 = vpack.c.bf16 %v10940_v18, %v10938_v8  ;;  %v10949_v13 = vld [vmem:[#allocation81_spill] sm:$0xff]  ;;  %v10953_v35 = vld [vmem:[#allocation82_spill] sm:$0xff]  ;;  %v10956_v8 = vand.u32 4294901760, %v10955_v11 }
 0x172   : > { %5321 = vmatpush1.bf16.msra.mxu0 %v5320_v49  ;;  %2128 = vmatprep.mubr.f32.mxu0 %v10932_v54  ;;  %v10944_v49 = vand.u32 4294901760, %v10943_v56  ;;  %v10950_v54 = vand.u32 4294901760, %v10949_v13  ;;  %v10957_v18 = vld [vmem:[#allocation85_spill] sm:$0xff]  ;;  %v10962_v56 = vand.u32 4294901760, %v8089_v24  ;;  %v10971_v24 = vand.u32 4294901760, %v8103_v1  ;;  %v544_v1 = vld [vmem:[%s6534_s22 + $0x40] sm:$0xff] }
 0x173   : > { %5323 = vmatprep.subr.bf16.mxu0 %v5322_v9  ;;  %v10948_v9 = vand.u32 4294901760, %v10947_v47  ;;  %620 = vperm.xlu0 %6029, %v536_v7   ;;  %v10959_v7 = vld [vmem:[#allocation86_spill] sm:$0xff] }
 0x174   : > { %2834 = vmatmul.mubr.f32.gmra.mrb[34].mxu1 %v7607_v3  ;;  %v5328_v23 = vpack.c.bf16 %v10946_v40, %v10944_v49  ;;  %6030 = vset.pattern.permute.xlu1 %v6303_v0  ;;  %v10960_v0 = vand.u32 4294901760, %v10959_v7  ;;  %v10963_v49 = vld [vmem:[#allocation88_spill] sm:$0xff]  ;;  %v10965_v40 = vld [vmem:[#allocation90_spill] sm:$0xff] }
 0x175   : > { %2132 = vmatmul.mubr.f32.gmra.mrb[8].mxu0 %v10941_v4  ;;  %2840 = vmatprep.mubr.f32.mxu1 %v7624_v44  ;;  %v5330_v32 = vpack.c.bf16 %v10950_v54, %v10948_v9  ;;  %v10964_v28 = vand.u32 4294901760, %v10963_v49  ;;  %v10967_v9 = vld [vmem:[#allocation94_spill] sm:$0xff]  ;;  %v10969_v54 = vld [vmem:[#allocation95_spill] sm:$0xff] }
 0x176   : > { %5325 = vmatpush1.bf16.msra.mxu0 %v5324_v55  ;;  %2140 = vmatprep.mubr.f32.mxu0 %v10942_v42  ;;  %v10954_v55 = vand.u32 4294901760, %v10953_v35  ;;  %v539_v42 = vld [vmem:[%s6534_s22 + $0x18] sm:$0xff]  ;;  %v10968_v13 = vand.u32 4294901760, %v10967_v9 }
 0x177   : > { %5327 = vmatprep.subr.bf16.mxu0 %v5326_v52  ;;  %v10958_v52 = vand.u32 4294901760, %v10957_v18  ;;  %625 = vperm.xlu0 %6029, %v537_v53  }
 0x178   : > { %2842 = vmatmul.mubr.f32.gmra.mrb[36].mxu1 %v7680_v20  ;;  %v5332_v33 = vpack.c.bf16 %v10956_v8, %v10954_v55  ;;  %630 = vperm.xlu1 %6030, %v538_v61   ;;  %v10972_v61 = vand.u32 4294901760, %v8111_v38  ;;  %v10975_v55 = vld [vmem:[#allocation99_spill] sm:$0xff]  ;;  %v10981_v38 = vand.u32 4294901760, %v8125_v50  ;;  %v546_v50 = vld [vmem:[%s6534_s22 + $0x50] sm:$0xff] }
 0x179   : > { %2144 = vmatmul.mubr.f32.gmra.mrb[10].mxu0 %v10951_v37  ;;  %2848 = vmatprep.mubr.f32.mxu1 %v7704_v60  ;;  %v5334_v4 = vpack.c.bf16 %v10960_v0, %v10958_v52  ;;  %v540_v37 = vld [vmem:[%s6534_s22 + $0x20] sm:$0xff]  ;;  %v10976_v11 = vand.u32 4294901760, %v10975_v55 }
 0x17a   : > { %5329 = vmatpush1.bf16.msra.mxu0 %v5328_v23  ;;  %2152 = vmatprep.mubr.f32.mxu0 %v10952_v12  ;;  %v10966_v23 = vand.u32 4294901760, %v10965_v40  ;;  %v10973_v12 = vld [vmem:[#allocation98_spill] sm:$0xff]  ;;  %v10979_v52 = vld [vmem:[#allocation103_spill] sm:$0xff] }
 0x17b   : > { %5331 = vmatprep.subr.bf16.mxu0 %v5330_v32  ;;  %v10970_v32 = vand.u32 4294901760, %v10969_v54  ;;  %645 = vperm.xlu0 %6029, %v541_v21   ;;  %v10974_v35 = vand.u32 4294901760, %v10973_v12  ;;  %v10980_v7 = vand.u32 4294901760, %v10979_v52  ;;  %v10982_v21 = vand.u32 4294901760, %v8133_v30  ;;  %v10987_v40 = vld [vmem:[#allocation110_spill] sm:$0xff]  ;;  %v545_v54 = vld [vmem:[%s6534_s22 + $0x48] sm:$0xff] }
 0x17c   : > { %2850 = vmatmul.mubr.f32.gmra.mrb[38].mxu1 %v7731_v34  ;;  %v5336_v47 = vpack.c.bf16 %v10966_v23, %v10964_v28  ;;  %635 = vperm.xlu1 %6030, %v539_v42   ;;  %v10988_v23 = vand.u32 4294901760, %v10987_v40  ;;  %v10991_v30 = vand.u32 4294901760, %v8147_v45  ;;  %v10997_v12 = vld [vmem:[#allocation116_spill] sm:$0xff]  ;;  %v10999_v55 = vld [vmem:[#allocation119_spill] sm:$0xff]  ;;  %v11013_v40 = vld [vmem:[#allocation89_spill] sm:$0xff] }
 0x17d   : > { %2156 = vmatmul.mubr.f32.gmra.mrb[12].mxu0 %v10961_v31  ;;  %2856 = vmatprep.mubr.f32.mxu1 %v7748_v17  ;;  %v5338_v53 = vpack.c.bf16 %v10970_v32, %v10968_v13  ;;  %v5340_v8 = vpack.c.bf16 %v10976_v11, %v10974_v35  ;;  %v10983_v31 = vld [vmem:[#allocation104_spill] sm:$0xff]  ;;  %v10992_v32 = vand.u32 4294901760, %v8155_v57  ;;  %v10998_v35 = vand.u32 4294901760, %v10997_v12 }
 0x17e   : > { %5333 = vmatpush1.bf16.msra.mxu0 %v5332_v33  ;;  %2164 = vmatprep.mubr.f32.mxu0 %v10962_v56  ;;  %v10977_v33 = vld [vmem:[#allocation101_spill] sm:$0xff]  ;;  %v10984_v42 = vand.u32 4294901760, %v10983_v31  ;;  %v10985_v56 = vld [vmem:[#allocation106_spill] sm:$0xff]  ;;  %v11000_v11 = vand.u32 4294901760, %v10999_v55  ;;  %v548_v45 = vld [vmem:[%s6534_s22 + $0x60] sm:$0xff]  ;;  %v11001_v57 = vand.u32 4294901760, %v8169_v26 }
 0x17f   : > { %5335 = vmatprep.subr.bf16.mxu0 %v5334_v4  ;;  %v10978_v18 = vand.u32 4294901760, %v10977_v33  ;;  %650 = vperm.xlu0 %6029, %v542_v41   ;;  %v543_v4 = vld [vmem:[%s6534_s22 + $0x38] sm:$0xff]  ;;  %v10986_v49 = vand.u32 4294901760, %v10985_v56  ;;  %v11003_v52 = vld [vmem:[#allocation120_spill] sm:$0xff]  ;;  %v550_v26 = vld [vmem:[%s6534_s22 + $0x70] sm:$0xff] }
 0x180   : > { %2858 = vmatmul.mubr.f32.gmra.mrb[40].mxu1 %v7768_v16  ;;  %640 = vperm.xlu1 %6030, %v540_v37   ;;  %v547_v33 = vld [vmem:[%s6534_s22 + $0x58] sm:$0xff] }
 0x181   : > { %2168 = vmatmul.mubr.f32.gmra.mrb[14].mxu0 %v10971_v24  ;;  %2864 = vmatprep.mubr.f32.mxu1 %v7782_v59  ;;  %v5342_v0 = vpack.c.bf16 %v10980_v7, %v10978_v18  ;;  %v5344_v28 = vpack.c.bf16 %v10986_v49, %v10984_v42  ;;  %v10995_v24 = vld [vmem:[#allocation115_spill] sm:$0xff]  ;;  %v11002_v18 = vand.u32 4294901760, %v8177_v63  ;;  %v11004_v7 = vand.u32 4294901760, %v11003_v52  ;;  %v11012_v49 = vld [vmem:[#allocation68_spill] sm:$0xff] }
 0x182   : > { %5337 = vmatpush1.bf16.msra.mxu0 %v5336_v47  ;;  %2176 = vmatprep.mubr.f32.mxu0 %v10972_v61  ;;  %v10989_v47 = vld [vmem:[#allocation111_spill] sm:$0xff]  ;;  %v10996_v37 = vand.u32 4294901760, %v10995_v24  ;;  %v11011_v63 = vand.u32 4294901760, %v8191_v51 }
 0x183   : > { %5339 = vmatprep.subr.bf16.mxu0 %v5338_v53  ;;  %v10990_v9 = vand.u32 4294901760, %v10989_v47  ;;  %660 = vperm.xlu0 %6029, %v544_v1   ;;  %v10993_v53 = vld [vmem:[#allocation113_spill] sm:$0xff]  ;;  %v11009_v31 = vld [vmem:[#allocation127_spill] sm:$0xff] }
 0x184   : > { %2866 = vmatmul.mubr.f32.gmra.mrb[42].mxu1 %v7802_v46  ;;  %655 = vperm.xlu1 %6030, %v543_v4   ;;  %v10994_v41 = vand.u32 4294901760, %v10993_v53  ;;  %v11007_v4 = vld [vmem:[#allocation125_spill] sm:$0xff]  ;;  %v11010_v42 = vand.u32 4294901760, %v11009_v31  ;;  %v11021_v53 = vld [vmem:[#allocation135_spill] sm:$0xff] }
 0x185   : > { %2180 = vmatmul.mubr.f32.gmra.mrb[16].mxu0 %v10981_v38  ;;  %2872 = vmatprep.mubr.f32.mxu1 %v7816_v19  ;;  %v5346_v13 = vpack.c.bf16 %v10990_v9, %v10988_v23  ;;  %v11014_v23 = vand.u32 4294901760, %v11013_v40  ;;  %v11015_v47 = vld [vmem:[#allocation129_spill] sm:$0xff]  ;;  %v11023_v51 = vld [vmem:[#allocation75_spill] sm:$0xff] }
 0x186   : > { %5341 = vmatpush1.bf16.msra.mxu0 %v5340_v8  ;;  %2188 = vmatprep.mubr.f32.mxu0 %v10982_v21  ;;  %v5348_v61 = vpack.c.bf16 %v10996_v37, %v10994_v41  ;;  %v5350_v8 = vpack.c.bf16 %v11000_v11, %v10998_v35  ;;  %v11008_v21 = vand.u32 4294901760, %v11007_v4  ;;  %v11016_v9 = vand.u32 4294901760, %v11015_v47  ;;  %v553_v37 = vld [vmem:[%s6549_s8] sm:$0x1]  ;;  %v11026_v35 = vld [vmem:[#allocation76_spill] sm:$0xff]  ;;  %v551_v55 = vld [vmem:[%s6534_s22 + $0x78] sm:$0xff] }
 0x187   : > { %5343 = vmatprep.subr.bf16.mxu0 %v5342_v0  ;;  %670 = vperm.xlu0 %6029, %v546_v50   ;;  %v11005_v0 = vld [vmem:[#allocation123_spill] sm:$0xff]  ;;  %v11022_v41 = vand.u32 4294901760, %v11021_v53  ;;  %v11027_v11 = vld [vmem:[#allocation92_spill] sm:$0xff]  ;;  %v11038_v31 = vld [vmem:[#allocation93_spill] sm:$0xff] }
 0x188   : > { %2874 = vmatmul.mubr.f32.gmra.mrb[44].mxu1 %v7836_v29  ;;  %665 = vperm.xlu1 %6030, %v545_v54   ;;  %v11006_v1 = vand.u32 4294901760, %v11005_v0  ;;  %v5354_v56 = vpack.c.bf16 %v11010_v42, %v11008_v21  ;;  %v11019_v54 = vld [vmem:[#allocation132_spill] sm:$0xff]  ;;  %v11037_v21 = vld [vmem:[#allocation79_spill] sm:$0xff]  ;;  %v11039_v42 = vand.u32 4294901760, %v11038_v31 }
 0x189   : > { %2192 = vmatmul.mubr.f32.gmra.mrb[18].mxu0 %v10991_v30  ;;  %2880 = vmatprep.mubr.f32.mxu1 %v7850_v48  ;;  %v11044_v40 = vld [vmem:[#allocation147_spill] sm:$0xff] }
 0x18a   : > { %5345 = vmatpush1.bf16.msra.mxu0 %v5344_v28  ;;  %2200 = vmatprep.mubr.f32.mxu0 %v10992_v32  ;;  %v5352_v38 = vpack.c.bf16 %v11006_v1, %v11004_v7  ;;  %v549_v28 = vld [vmem:[%s6534_s22 + $0x68] sm:$0xff]  ;;  %v11020_v32 = vand.u32 4294901760, %v11019_v54  ;;  %v11035_v1 = vld [vmem:[#allocation143_spill] sm:$0xff] }
 0x18b   : > { %5347 = vmatprep.subr.bf16.mxu0 %v5346_v13  ;;  %680 = vperm.xlu0 %6029, %v548_v45   ;;  %v11017_v13 = vld [vmem:[#allocation131_spill] sm:$0xff]  ;;  %v11029_v45 = vld [vmem:[#allocation136_spill] sm:$0xff]  ;;  %v11033_v7 = vld [vmem:[#allocation141_spill] sm:$0xff] }
 0x18c   : > { %2882 = vmatmul.mubr.f32.gmra.mrb[46].mxu1 %v7870_v2  ;;  %675 = vperm.xlu1 %6030, %v547_v33   ;;  %v11018_v50 = vand.u32 4294901760, %v11017_v13  ;;  %v5358_v24 = vpack.c.bf16 %v11022_v41, %v11020_v32  ;;  %v11031_v33 = vld [vmem:[#allocation139_spill] sm:$0xff]  ;;  %v11034_v0 = vand.u32 4294901760, %v11033_v7  ;;  %v11050_v32 = vld [vmem:[#allocation97_spill] sm:$0xff]  ;;  %v11052_v41 = vand.u32 4294901760, %v8265_v6 }
 0x18d   : > { %2204 = vmatmul.mubr.f32.gmra.mrb[20].mxu0 %v11001_v57  ;;  %2888 = vmatprep.mubr.f32.mxu1 %v7884_v62  ;;  %v11030_v57 = vand.u32 4294901760, %v11029_v45  ;;  %v11051_v53 = vand.u32 4294901760, %v11050_v32  ;;  %v11059_v45 = vld [vmem:[#allocation25_spill] sm:$0xff]  ;;  %v11065_v7 = vld [vmem:[#allocation31_spill] sm:$0xff] }
 0x18e   : > { %5349 = vmatpush1.bf16.msra.mxu0 %v5348_v61  ;;  %2212 = vmatprep.mubr.f32.mxu0 %v11002_v18  ;;  %v5356_v30 = vpack.c.bf16 %v11018_v50, %v11016_v9  ;;  %v11024_v61 = vld [vmem:[#allocation91_spill] sm:$0xff]  ;;  %v11032_v18 = vand.u32 4294901760, %v11031_v33  ;;  %v11046_v9 = vld [vmem:[#allocation148_spill] sm:$0xff]  ;;  %v11048_v50 = vld [vmem:[#allocation150_spill] sm:$0xff] }
 0x18f   : > { %5351 = vmatprep.subr.bf16.mxu0 %v5350_v8  ;;  %690 = vperm.xlu0 %6029, %v550_v26   ;;  %v11025_v12 = vand.u32 4294901760, %v11024_v61  ;;  %v11028_v8 = vand.u32 4294901760, %v11027_v11  ;;  %v11047_v13 = vand.u32 4294901760, %v11046_v9  ;;  %v11055_v61 = vld [vmem:[#allocation153_spill] sm:$0xff]  ;;  %v11057_v11 = vand.u32 4294901760, %v8279_v39  ;;  %v11061_v33 = vld [vmem:[#allocation27_spill] sm:$0xff] }
 0x190   : > { %2890 = vmatmul.mubr.f32.gmra.mrb[48].mxu1 %v7904_v5  ;;  %685 = vperm.xlu1 %6030, %v549_v28   ;;  %v5360_v52 = vpack.c.bf16 %v11032_v18, %v11030_v57  ;;  %v11060_v57 = vld [vmem:[#allocation156_spill] sm:$0xff]  ;;  %v11062_v6 = vld [vmem:[#allocation157_spill] sm:$0xff]  ;;  %v11071_v31 = vld [vmem:[#allocation107_spill] sm:$0xff] }
 0x191   : > { %2216 = vmatmul.mubr.f32.gmra.mrb[22].mxu0 %v11011_v63  ;;  %2896 = vmatprep.mubr.f32.mxu1 %v11012_v49  ;;  %v11042_v63 = vld [vmem:[#allocation145_spill] sm:$0xff]  ;;  %v11080_v9 = vld [vmem:[#allocation138_spill] sm:$0xff] }
 0x192   : > { %5353 = vmatpush1.bf16.msra.mxu0 %v5352_v38  ;;  %2224 = vmatprep.mubr.f32.mxu0 %v11014_v23  ;;  %v11036_v38 = vand.u32 4294901760, %v11035_v1  ;;  %v11043_v28 = vand.u32 4294901760, %v11042_v63  ;;  %v11045_v23 = vand.u32 4294901760, %v11044_v40  ;;  %v11063_v18 = vld [vmem:[#allocation29_spill] sm:$0xff]  ;;  %v11068_v1 = vld [vmem:[#allocation164_spill] sm:$0xff]  ;;  %v11077_v40 = vld [vmem:[#allocation130_spill] sm:$0xff] }
 0x193   : > { %5355 = vmatprep.subr.bf16.mxu0 %v5354_v56  ;;  %2946 = vperm.xlu0 %6029, %v553_v37   ;;  %v11040_v56 = vld [vmem:[#allocation96_spill] sm:$0xff]  ;;  %v11067_v39 = vld [vmem:[#allocation41_spill] sm:$0xff] }
 0x194   : > { %2898 = vmatmul.mubr.f32.gmra.mrb[50].mxu1 %v11023_v51  ;;  %v5362_v4 = vpack.c.bf16 %v11036_v38, %v11034_v0  ;;  %695 = vperm.xlu1 %6030, %v551_v55   ;;  %v11041_v26 = vand.u32 4294901760, %v11040_v56  ;;  %v5364_v47 = vpack.c.bf16 %v11045_v23, %v11043_v28  ;;  %v11066_v0 = vld [vmem:[#allocation161_spill] sm:$0xff]  ;;  %v11069_v38 = vld [vmem:[#allocation43_spill] sm:$0xff]  ;;  %v11073_v56 = vld [vmem:[#allocation46_spill] sm:$0xff] }
 0x195   : > { %2228 = vmatmul.mubr.f32.gmra.mrb[24].mxu0 %v11025_v12  ;;  %2904 = vmatprep.mubr.f32.mxu1 %v11026_v35  ;;  %v11056_v12 = vand.u32 4294901760, %v11055_v61  ;;  %v11075_v63 = vld [vmem:[#allocation124_spill] sm:$0xff]  ;;  %v11078_v23 = vld [vmem:[#allocation133_spill] sm:$0xff] }
 0x196   : > { %5357 = vmatpush1.bf16.msra.mxu0 %v5356_v30  ;;  %2236 = vmatprep.mubr.f32.mxu0 %v11028_v8  ;;  %v11049_v30 = vand.u32 4294901760, %v11048_v50  ;;  %v11058_v8 = vld [vmem:[#allocation152_spill] sm:$0xff]  ;;  %v11082_v50 = vld [vmem:[#allocation142_spill] sm:$0xff] }
 0x197   : > { %5359 = vmatprep.subr.bf16.mxu0 %v5358_v24  ;;  %v11053_v24 = vld [vmem:[#allocation151_spill] sm:$0xff]  ;;  %v11076_v28 = vld [vmem:[#allocation28_spill] sm:$0xff] }
 0x198   : > { %2906 = vmatmul.mubr.f32.gmra.mrb[52].mxu1 %v11037_v21  ;;  %v5366_v54 = vpack.c.bf16 %v11049_v30, %v11047_v13  ;;  %v11054_v37 = vand.u32 4294901760, %v11053_v24  ;;  %v11081_v13 = vld [vmem:[#allocation58_spill] sm:$0xff] }
 0x199   : > { %2240 = vmatmul.mubr.f32.gmra.mrb[26].mxu0 %v11039_v42  ;;  %v11072_v42 = vld [vmem:[#allocation168_spill] sm:$0xff] }
 0x19a   : > { %5361 = vmatpush1.bf16.msra.mxu0 %v5360_v52  ;;  %2248 = vmatprep.mubr.f32.mxu0 %v11041_v26  ;;  %v5368_v55 = vpack.c.bf16 %v11056_v12, %v11054_v37  ;;  %v11064_v52 = vld [vmem:[#allocation160_spill] sm:$0xff]  ;;  %v11074_v26 = vld [vmem:[#allocation169_spill] sm:$0xff] }
 0x19b   : > { %5363 = vmatprep.subr.bf16.mxu0 %v5362_v4  ;;  %v11070_v4 = vld [vmem:[#allocation165_spill] sm:$0xff] }
 0x19d   : > { %2252 = vmatmul.mubr.f32.gmra.mrb[28].mxu0 %v11051_v53 }
 0x19e   : > { %5365 = vmatpush1.bf16.msra.mxu0 %v5364_v47  ;;  %2260 = vmatprep.mubr.f32.mxu0 %v11052_v41  ;;  %v11079_v47 = vld [vmem:[#allocation137_spill] sm:$0xff] }
 0x19f   : > { %5367 = vmatprep.subr.bf16.mxu0 %v5366_v54 }
 0x1a1   : > { %2264 = vmatmul.mubr.f32.gmra.mrb[30].mxu0 %v11057_v11 }
 0x1a2   : > { %5369 = vmatpush1.bf16.msra.mxu0 %v5368_v55  ;;  %2527 = vmatprep.mubr.f32.mxu0 %v11058_v8 }
 0x1a3   : > { %5371 = vmatprep.subr.bf16.mxu0 %v11059_v45 }
 0x1a5   : > { %2529 = vmatmul.mubr.f32.vlgmr.msra.gmra.mrb[0].mxu0 %v11060_v57 }
 0x1a6   : > { %5373 = vmatpush1.bf16.msra.mxu0 %v11061_v33  ;;  %2535 = vmatprep.mubr.f32.mxu0 %v11062_v6 }
 0x1a7   : > { %5375 = vmatprep.subr.bf16.mxu0 %v11063_v18 }
 0x1a9   : > { %2537 = vmatmul.mubr.f32.gmra.mrb[2].mxu0 %v11064_v52 }
 0x1aa   : > { %5377 = vmatpush1.bf16.msra.mxu0 %v11065_v7  ;;  %2543 = vmatprep.mubr.f32.mxu0 %v11066_v0 }
 0x1ab   : > { %5379 = vmatprep.subr.bf16.mxu0 %v11067_v39 }
 0x1ad   : > { %2545 = vmatmul.mubr.f32.gmra.mrb[4].mxu0 %v11068_v1 }
 0x1ae   : > { %5381 = vmatpush1.bf16.msra.mxu0 %v11069_v38  ;;  %2551 = vmatprep.mubr.f32.mxu0 %v11070_v4 }
 0x1af   : > { %5383 = vmatprep.subr.bf16.mxu0 %v11071_v31 }
 0x1b1   : > { %2553 = vmatmul.mubr.f32.gmra.mrb[6].mxu0 %v11072_v42 }
 0x1b2   : > { %5385 = vmatpush1.bf16.msra.mxu0 %v11073_v56  ;;  %2559 = vmatprep.mubr.f32.mxu0 %v11074_v26 }
 0x1b3   : > { %5387 = vmatprep.subr.bf16.mxu0 %v11075_v63 }
 0x1b5   : > { %2561 = vmatmul.mubr.f32.gmra.mrb[8].mxu0 %v11076_v28 }
 0x1b6   : > { %5389 = vmatpush1.bf16.msra.mxu0 %v11077_v40  ;;  %2567 = vmatprep.mubr.f32.mxu0 %v10929_v43  ;;  %v11083_v43 = vld [vmem:[#allocation149_spill] sm:$0xff] }
 0x1b7   : > { %5391 = vmatprep.subr.bf16.mxu0 %v11078_v23 }
 0x1b9   : > { %2569 = vmatmul.mubr.f32.gmra.mrb[10].mxu0 %v10847_v27  ;;  %v11084_v27 = vld [vmem:[#allocation59_spill] sm:$0xff] }
 0x1ba   : > { %5393 = vmatpush1.bf16.msra.mxu0 %v11079_v47  ;;  %2575 = vmatprep.mubr.f32.mxu0 %v10931_v14  ;;  %v11085_v14 = vld [vmem:[#allocation60_spill] sm:$0xff] }
 0x1bb   : > { %5395 = vmatprep.subr.bf16.mxu0 %v11080_v9 }
 0x1bd   : > { %2577 = vmatmul.mubr.f32.gmra.mrb[12].mxu0 %v7607_v3  ;;  %v11086_v3 = vld [vmem:[#allocation61_spill] sm:$0xff] }
 0x1be   : > { %5397 = vmatpush1.bf16.msra.mxu0 %v11081_v13  ;;  %2583 = vmatprep.mubr.f32.mxu0 %v7624_v44  ;;  %v11087_v44 = vld [vmem:[#allocation64_spill] sm:$0xff] }
 0x1bf   : > { %5399 = vmatprep.subr.bf16.mxu0 %v11082_v50 }
 0x1c1   : > { %2585 = vmatmul.mubr.f32.gmra.mrb[14].mxu0 %v7680_v20  ;;  %v11088_v20 = vld [vmem:[#allocation44_spill] sm:$0xff] }
 0x1c2   : > { %5401 = vmatpush1.bf16.msra.mxu0 %v11083_v43  ;;  %2591 = vmatprep.mubr.f32.mxu0 %v7704_v60  ;;  %v11089_v60 = vld [vmem:[#allocation102_spill] sm:$0xff] }
 0x1c3   : > { %5403 = vmatprep.subr.bf16.mxu0 %v11084_v27  ;;  %v10342_v27 = vmov 0.0  }
 0x1c4   : > { %3049 = vmatprep.mubr.f32.mxu1 %v10342_v27 }
 0x1c5   : > { %2593 = vmatmul.mubr.f32.gmra.mrb[16].mxu0 %v7731_v34  ;;  %v11090_v34 = vld [vmem:[#allocation105_spill] sm:$0xff] }
 0x1c6   : > { %5405 = vmatpush1.bf16.msra.mxu0 %v11085_v14  ;;  %2599 = vmatprep.mubr.f32.mxu0 %v7748_v17  ;;  %v11091_v17 = vld [vmem:[#allocation108_spill] sm:$0xff] }
 0x1c7   : > { %5407 = vmatprep.subr.bf16.mxu0 %v11086_v3 }
 0x1c9   : > { %2601 = vmatmul.mubr.f32.gmra.mrb[18].mxu0 %v7768_v16  ;;  %v11092_v16 = vld [vmem:[#allocation109_spill] sm:$0xff] }
 0x1ca   : > { %5409 = vmatpush1.bf16.msra.mxu0 %v11087_v44  ;;  %2607 = vmatprep.mubr.f32.mxu0 %v7782_v59  ;;  %v11093_v59 = vld [vmem:[#allocation112_spill] sm:$0xff] }
 0x1cb   : > { %5411 = vmatprep.subr.bf16.mxu0 %v11088_v20 }
 0x1cd   : > { %2609 = vmatmul.mubr.f32.gmra.mrb[20].mxu0 %v7802_v46 }
 0x1ce   : > { %5413 = vmatpush1.bf16.msra.mxu0 %v11089_v60  ;;  %2615 = vmatprep.mubr.f32.mxu0 %v7816_v19 }
 0x1cf   : > { %5415 = vmatprep.subr.bf16.mxu0 %v11090_v34 }
 0x1d1   : > { %2617 = vmatmul.mubr.f32.gmra.mrb[22].mxu0 %v7836_v29 }
 0x1d2   : > { %5417 = vmatpush1.bf16.msra.mxu0 %v11091_v17  ;;  %2623 = vmatprep.mubr.f32.mxu0 %v7850_v48 }
 0x1d3   : > { %5419 = vmatprep.subr.bf16.mxu0 %v11092_v16 }
 0x1d5   : > { %2625 = vmatmul.mubr.f32.gmra.mrb[24].mxu0 %v7870_v2 }
 0x1d6   : > { %5421 = vmatpush1.bf16.msra.mxu0 %v11093_v59  ;;  %2631 = vmatprep.mubr.f32.mxu0 %v7884_v62 }
 0x1d7   : > { %5423 = vmatprep.subr.bf16.mxu0 %v10868_v22 }
 0x1d9   : > { %2633 = vmatmul.mubr.f32.gmra.mrb[26].mxu0 %v7904_v5 }
 0x1da   : > { %5425 = vmatpush1.bf16.msra.mxu0 %v10872_v25  ;;  %2639 = vmatprep.mubr.f32.mxu0 %v11012_v49 }
 0x1db   : > { %5427 = vmatprep.subr.bf16.mxu0 %v10875_v58 }
 0x1dd   : > { %2641 = vmatmul.mubr.f32.gmra.mrb[28].mxu0 %v11023_v51 }
 0x1de   : > { %5429 = vmatpush1.bf16.msra.mxu0 %v10878_v36  ;;  %2647 = vmatprep.mubr.f32.mxu0 %v11026_v35 }
 0x1df   : > { %5431 = vmatprep.subr.bf16.mxu0 %v10879_v15 }
 0x1e1   : > { %2649 = vmatmul.mubr.f32.gmra.mrb[30].mxu0 %v11037_v21 }
 0x1e2   : > { %5433 = vmatpush1.bf16.msra.mxu0 %v10884_v10  ;;  %2784 = vmatprep.mubr.f32.mxu0 %v11058_v8 }
 0x1e5   : > { %2786 = vmatmul.mubr.f32.vlgmr.msra.gmra.mrb[0].mxu0 %v11060_v57 }
 0x1e6   : > { %2792 = vmatprep.mubr.f32.mxu0 %v11062_v6 }
 0x1e9   : > { %2794 = vmatmul.mubr.f32.gmra.mrb[2].mxu0 %v11064_v52 }
 0x1ea   : > { %2800 = vmatprep.mubr.f32.mxu0 %v11066_v0 }
 0x1ed   : > { %2802 = vmatmul.mubr.f32.gmra.mrb[4].mxu0 %v11068_v1 }
 0x1ee   : > { %2808 = vmatprep.mubr.f32.mxu0 %v11070_v4 }
 0x1f1   : > { %2810 = vmatmul.mubr.f32.gmra.mrb[6].mxu0 %v11072_v42 }
 0x1f2   : > { %2816 = vmatprep.mubr.f32.mxu0 %v11074_v26  ;;  %v621_v14 = vpop.permute.xlu0 %620 }
 0x1f5   : > { %2818 = vmatmul.mubr.f32.gmra.mrb[8].mxu0 %v11076_v28 }
 0x1f6   : > { %v626_v44 = vpop.permute.xlu0 %625 }
 0x1f7   : > { %v631_v3 = vpop.permute.xlu1 %630 }
 0x1fa   : > { %v646_v60 = vpop.permute.xlu0 %645 }
 0x1fb   : > { %v636_v20 = vpop.permute.xlu1 %635 }
 0x1fe   : > { %v651_v16 = vpop.permute.xlu0 %650 }
 0x1ff   : > { %v641_v34 = vpop.permute.xlu1 %640 }
 0x203   : > { %v8616_v46 = vpop.f32.mrb[0].mxu1 }
 0x204   : > { %v8618_v58 = vpop.f32.mrb[1].mxu1 }
 0x207   : > { %v8620_v19 = vpop.f32.mrb[2].mxu1 }
 0x208   : > { %v8622_v29 = vpop.f32.mrb[3].mxu1 }
 0x20b   : > { %v8624_v48 = vpop.f32.mrb[4].mxu1 }
 0x20c   : > { %v8626_v2 = vpop.f32.mrb[5].mxu1 }
 0x20f   : > { %v8628_v62 = vpop.f32.mrb[6].mxu1 }
 0x210   : > { %v8630_v5 = vpop.f32.mrb[7].mxu1 }
 0x213   : > { %v8632_v22 = vpop.f32.mrb[8].mxu1 }
 0x214   : > { %v8634_v25 = vpop.f32.mrb[9].mxu1 }
 0x217   : > { %v918_v36 = vpop.f32.mrb[10].mxu1 }
 0x218   : > { %v920_v15 = vpop.f32.mrb[11].mxu1  ;;  %v919_v17 = vadd.f32 %v918_v36, %v646_v60 }
 0x219   : > { %v921_v59 = vadd.f32 %v920_v15, %v646_v60 }
 0x21b   : > { %v934_v10 = vpop.f32.mrb[12].mxu1 }
 0x21c   : > { %v936_v49 = vpop.f32.mrb[13].mxu1 }
 0x21f   : > { %v8636_v51 = vpop.f32.mrb[14].mxu1 }
 0x220   : > { %v8638_v35 = vpop.f32.mrb[15].mxu1 }
 0x223   : > { %v8640_v21 = vpop.f32.mrb[16].mxu1 }
 0x224   : > { %v8642_v30 = vpop.f32.mrb[17].mxu1 }
 0x227   : > { %v8644_v54 = vpop.f32.mrb[18].mxu1 }
 0x228   : > { %v8646_v32 = vpop.f32.mrb[19].mxu1 }
 0x22b   : > { %v8648_v53 = vpop.f32.mrb[20].mxu1 }
 0x22c   : > { %v8650_v41 = vpop.f32.mrb[21].mxu1 }
 0x22f   : > { %v8652_v24 = vpop.f32.mrb[22].mxu1 }
 0x230   : > { %v8654_v37 = vpop.f32.mrb[23].mxu1 }
 0x233   : > { %v8656_v61 = vpop.f32.mrb[24].mxu1 }
 0x234   : > { %v8658_v12 = vpop.f32.mrb[25].mxu1 }
 0x237   : > { %v8660_v55 = vpop.f32.mrb[26].mxu1 }
 0x238   : > { %v8662_v11 = vpop.f32.mrb[27].mxu1 }
 0x23b   : > { %v8664_v8 = vpop.f32.mrb[28].mxu1 }
 0x23c   : > { %v8666_v45 = vpop.f32.mrb[29].mxu1 }
 0x23f   : > { %v8668_v57 = vpop.f32.mrb[30].mxu1 }
 0x240   : > { %v8670_v33 = vpop.f32.mrb[31].mxu1 }
 0x241   : > { %11094 = vst [vmem:[#allocation100_spill] sm:$0xff] %v8670_v33 }
 0x243   : > { %v2827_v6 = vpop.f32.mrb[32].mxu1 }
 0x244   : > { %v2829_v18 = vpop.f32.mrb[33].mxu1 }
 0x247   : > { %v2835_v52 = vpop.f32.mrb[34].mxu1 }
 0x248   : > { %v2837_v7 = vpop.f32.mrb[35].mxu1 }
 0x24b   : > { %v8672_v0 = vpop.f32.mrb[36].mxu1 }
 0x24c   : > { %v8674_v39 = vpop.f32.mrb[37].mxu1 }
 0x24f   : > { %v8676_v1 = vpop.f32.mrb[38].mxu1 }
 0x250   : > { %v8678_v38 = vpop.f32.mrb[39].mxu1 }
 0x253   : > { %v8680_v4 = vpop.f32.mrb[40].mxu1 }
 0x254   : > { %v8682_v31 = vpop.f32.mrb[41].mxu1 }
 0x255   : > { %11095 = vst [vmem:[#allocation154_spill] sm:$0xff] %v8682_v31 }
 0x257   : > { %v8684_v42 = vpop.f32.mrb[42].mxu1 }
 0x258   : > { %11096 = vst [vmem:[#allocation155_spill] sm:$0xff] %v8684_v42  ;;  %v8686_v56 = vpop.f32.mrb[43].mxu1 }
 0x259   : > { %11097 = vst [vmem:[#allocation158_spill] sm:$0xff] %v8686_v56 }
 0x25b   : > { %v8688_v26 = vpop.f32.mrb[44].mxu1 }
 0x25c   : > { %11098 = vst [vmem:[#allocation159_spill] sm:$0xff] %v8688_v26  ;;  %v8690_v63 = vpop.f32.mrb[45].mxu1 }
 0x25d   : > { %11099 = vst [vmem:[#allocation162_spill] sm:$0xff] %v8690_v63  ;;  %v937_v63 = vadd.f32 %v936_v49, %v651_v16 }
 0x25f   : > { %v8692_v28 = vpop.f32.mrb[46].mxu1 }
 0x260   : > { %11100 = vst [vmem:[#allocation163_spill] sm:$0xff] %v8692_v28  ;;  %v8694_v40 = vpop.f32.mrb[47].mxu1 }
 0x261   : > { %11101 = vst [vmem:[#allocation166_spill] sm:$0xff] %v8694_v40 }
 0x263   : > { %v8696_v23 = vpop.f32.mrb[48].mxu1 }
 0x264   : > { %11102 = vst [vmem:[#allocation167_spill] sm:$0xff] %v8696_v23  ;;  %v8698_v47 = vpop.f32.mrb[49].mxu1 }
 0x265   : > { %11103 = vst [vmem:[#allocation170_spill] sm:$0xff] %v8698_v47 }
 0x267   : > { %v8700_v9 = vpop.f32.mrb[50].mxu1 }
 0x268   : > { %11104 = vst [vmem:[#allocation26_spill] sm:$0xff] %v8700_v9  ;;  %v8702_v13 = vpop.f32.mrb[51].mxu1  ;;  %v656_v9 = vpop.permute.xlu1 %655 }
 0x269   : > { %11105 = vst [vmem:[#allocation32_spill] sm:$0xff] %v8702_v13  ;;  %v951_v36 = vadd.f32 %v8636_v51, %v656_v9  ;;  %v953_v49 = vadd.f32 %v8638_v35, %v656_v9 }
 0x26b   : > { %v8704_v50 = vpop.f32.mrb[52].mxu1 }
 0x26c   : > { %11106 = vst [vmem:[#allocation171_spill] sm:$0xff] %v8704_v50  ;;  %v8706_v43 = vpop.f32.mrb[53].mxu1  ;;  %v935_v50 = vadd.f32 %v934_v10, %v651_v16  ;;  %v666_v56 = vpop.permute.xlu1 %665  ;;  %v8714_v10 = vadd.f32 %v8618_v58, %v621_v14  ;;  %v8727_v58 = vadd.f32 %v8626_v2, %v631_v3 }
 0x26d   : > { %11107 = vst [vmem:[#allocation172_spill] sm:$0xff] %v8706_v43  ;;  %v661_v43 = vpop.permute.xlu0 %660 }
 0x26e   : > { %v969_v2 = vadd.f32 %v8642_v30, %v661_v43 }
 0x271   : > { %v671_v60 = vpop.permute.xlu0 %670 }
 0x28c   : > { %v2570_v47 = vpop.f32.mrb[10].mxu0 }
 0x28d   : > { %v5727_v23 = vadd.f32 %v2570_v47, %v919_v17  ;;  %v2572_v13 = vpop.f32.mrb[11].mxu0  ;;  %v8711_v47 = vadd.f32 %v8616_v46, %v621_v14  ;;  %v8724_v46 = vadd.f32 %v8624_v48, %v631_v3  ;;  %v8741_v48 = vadd.f32 %v8634_v25, %v641_v34 }
 0x28e   : > { %v5730_v40 = vadd.f32 %v2572_v13, %v921_v59  ;;  %v1001_v25 = vadd.f32 %v8650_v41, %v671_v60  ;;  %v11108_v59 = vld [vmem:[#allocation154_spill] sm:$0xff] }
 0x28f   : > { %v5728_v28 = vadd.f32 %v5727_v23, %v2827_v6 }
 0x290   : > { %v5731_v26 = vadd.f32 %v5730_v40, %v2829_v18  ;;  %v2578_v27 = vpop.f32.mrb[12].mxu0  ;;  %v676_v40 = vpop.permute.xlu1 %675 }
 0x291   : > { %6031 = vtanh.f32 %v5728_v28  ;;  %v5733_v42 = vadd.f32 %v2578_v27, %v935_v50  ;;  %v2580_v33 = vpop.f32.mrb[13].mxu0  ;;  %v8718_v28 = vadd.f32 %v8620_v19, %v626_v44  ;;  %v8733_v19 = vadd.f32 %v8630_v5, %v636_v20 }
 0x292   : > { %6033 = vtanh.f32 %v5731_v26  ;;  %v5736_v31 = vadd.f32 %v2580_v33, %v937_v63  ;;  %v8721_v33 = vadd.f32 %v8622_v29, %v626_v44  ;;  %v967_v29 = vadd.f32 %v8640_v21, %v661_v43 }
 0x293   : > { %v5734_v15 = vadd.f32 %v5733_v42, %v2835_v52  ;;  %v681_v42 = vpop.permute.xlu0 %680  ;;  %v8738_v26 = vadd.f32 %v8632_v22, %v641_v34  ;;  %v983_v21 = vadd.f32 %v8644_v54, %v666_v56  ;;  %v999_v22 = vadd.f32 %v8648_v53, %v671_v60  ;;  %v11109_v60 = vld [vmem:[#allocation100_spill] sm:$0xff] }
 0x294   : > { %v5737_v6 = vadd.f32 %v5736_v31, %v2837_v7  ;;  %v2586_v18 = vpop.f32.mrb[14].mxu0  ;;  %v8730_v7 = vadd.f32 %v8628_v62, %v636_v20  ;;  %v686_v23 = vpop.permute.xlu1 %685  ;;  %v1017_v43 = vadd.f32 %v8654_v37, %v676_v40  ;;  %v8755_v27 = vadd.f32 %v8656_v61, %v681_v42 }
 0x295   : > { %6035 = vtanh.f32 %v5734_v15  ;;  %v5739_v51 = vadd.f32 %v2586_v18, %v951_v36  ;;  %v2588_v52 = vpop.f32.mrb[15].mxu0  ;;  %v8761_v53 = vadd.f32 %v8658_v12, %v681_v42  ;;  %v8764_v41 = vadd.f32 %v8660_v55, %v686_v23  ;;  %v11110_v42 = vld [vmem:[#allocation155_spill] sm:$0xff] }
 0x296   : > { %6037 = vtanh.f32 %v5737_v6  ;;  %v5742_v35 = vadd.f32 %v2588_v52, %v953_v49  ;;  %v8768_v61 = vadd.f32 %v8662_v11, %v686_v23 }
 0x297   : > { %v5740_v31 = vadd.f32 %v5739_v51, %v8672_v0  ;;  %v985_v0 = vadd.f32 %v8646_v32, %v666_v56  ;;  %v691_v54 = vpop.permute.xlu0 %690 }
 0x298   : > { %v5743_v63 = vadd.f32 %v5742_v35, %v8674_v39  ;;  %v2594_v62 = vpop.f32.mrb[16].mxu0  ;;  %v1015_v39 = vadd.f32 %v8652_v24, %v676_v40  ;;  %v8772_v12 = vadd.f32 %v8664_v8, %v691_v54  ;;  %v8781_v17 = vadd.f32 %v8666_v45, %v691_v54  ;;  %v8800_v45 = vld [vmem:[%s457_s0] sm:$0x1] }
 0x299   : > { %6039 = vtanh.f32 %v5740_v31  ;;  %v5745_v5 = vadd.f32 %v2594_v62, %v967_v29  ;;  %v2596_v9 = vpop.f32.mrb[17].mxu0  ;;  %v8815_v62 = vand.u32 4294901760, %v8800_v45 }
 0x29a   : > { %6041 = vtanh.f32 %v5743_v63  ;;  %v5748_v13 = vadd.f32 %v2596_v9, %v969_v2  ;;  %v11111_v9 = vld [vmem:[#allocation158_spill] sm:$0xff] }
 0x29b   : > { %v8749_v50 = vpop.eup %6031  ;;  %v5746_v30 = vadd.f32 %v5745_v5, %v8676_v1  ;;  %v696_v1 = vpop.permute.xlu1 %695 }
 0x29c   : > { %v8757_v14 = vpop.eup %6033  ;;  %v5749_v32 = vadd.f32 %v5748_v13, %v8678_v38  ;;  %v2602_v56 = vpop.f32.mrb[18].mxu0  ;;  %v10359_v24 = vand.u32 4294901760, %v8749_v50  ;;  %v8784_v11 = vadd.f32 %v8668_v57, %v696_v1  ;;  %v8793_v49 = vadd.f32 %v11109_v60, %v696_v1 }
 0x29d   : > { %6043 = vtanh.f32 %v5746_v30  ;;  %v5751_v37 = vadd.f32 %v2602_v56, %v983_v21  ;;  %v2604_v3 = vpop.f32.mrb[19].mxu0  ;;  %v10357_v44 = vand.u32 4294901760, %v8757_v14 }
 0x29e   : > { %6045 = vtanh.f32 %v5749_v32  ;;  %v5754_v38 = vadd.f32 %v2604_v3, %v985_v0  ;;  %v8777_v55 = vsub.f32 %v8749_v50, %v10359_v24 }
 0x29f   : > { %v6036_v20 = vpop.eup %6035  ;;  %v5752_v34 = vadd.f32 %v5751_v37, %v8680_v4  ;;  %v8789_v16 = vsub.f32 %v8757_v14, %v10357_v44 }
 0x2a0   : > { %v6038_v8 = vpop.eup %6037  ;;  %v5755_v36 = vadd.f32 %v5754_v38, %v11108_v59  ;;  %v2610_v15 = vpop.f32.mrb[20].mxu0  ;;  %v2979_v6 = vand.u32 4294901760, %v6036_v20  ;;  %v10344_v57 = vand.u32 4294901760, %v8777_v55 }
 0x2a1   : > { %6047 = vtanh.f32 %v5752_v34  ;;  %v5757_v4 = vadd.f32 %v2610_v15, %v999_v22  ;;  %v2612_v18 = vpop.f32.mrb[21].mxu0  ;;  %v2977_v40 = vand.u32 4294901760, %v6038_v8  ;;  %v10350_v51 = vand.u32 4294901760, %v8789_v16  ;;  %v11113_v15 = vld [vmem:[#allocation162_spill] sm:$0xff] }
 0x2a2   : > { %6049 = vtanh.f32 %v5755_v36  ;;  %v5760_v52 = vadd.f32 %v2612_v18, %v1001_v25  ;;  %v8804_v35 = vsub.f32 %v6036_v20, %v2979_v6  ;;  %v8809_v29 = vsub.f32 %v8777_v55, %v10344_v57  ;;  %v11112_v20 = vld [vmem:[#allocation159_spill] sm:$0xff] }
 0x2a3   : > { %v6040_v31 = vpop.eup %6039  ;;  %v5758_v2 = vadd.f32 %v5757_v4, %v11110_v42  ;;  %v8812_v63 = vsub.f32 %v6038_v8, %v2977_v40  ;;  %v8820_v23 = vsub.f32 %v8789_v16, %v10350_v51  ;;  %v11125_v51 = vld [vmem:[#allocation172_spill] sm:$0xff] }
 0x2a4   : > { %v6042_v5 = vpop.eup %6041  ;;  %v5761_v21 = vadd.f32 %v5760_v52, %v11111_v9  ;;  %v2618_v0 = vpop.f32.mrb[22].mxu0  ;;  %v2983_v13 = vand.u32 4294901760, %v6040_v31  ;;  %v10346_v25 = vand.u32 4294901760, %v8804_v35 }
 0x2a5   : > { %6051 = vtanh.f32 %v5758_v2  ;;  %v5763_v30 = vadd.f32 %v2618_v0, %v1015_v39  ;;  %v2620_v54 = vpop.f32.mrb[23].mxu0  ;;  %v2981_v32 = vand.u32 4294901760, %v6042_v5  ;;  %v10348_v36 = vand.u32 4294901760, %v8812_v63  ;;  %v11114_v0 = vld [vmem:[#allocation163_spill] sm:$0xff] }
 0x2a6   : > { %6053 = vtanh.f32 %v5761_v21  ;;  %v5766_v1 = vadd.f32 %v2620_v54, %v1017_v43  ;;  %v8826_v37 = vpack.c.bf16 %v2983_v13, %v2979_v6  ;;  %v8828_v3 = vsub.f32 %v6040_v31, %v2983_v13 }
 0x2a7   : > { %v6044_v38 = vpop.eup %6043  ;;  %v5764_v34 = vadd.f32 %v5763_v30, %v11112_v20  ;;  %v8831_v8 = vpack.c.bf16 %v2981_v32, %v2977_v40  ;;  %v8833_v59 = vsub.f32 %v6042_v5, %v2981_v32  ;;  %v3142_v43 = vsub.f32 %v8804_v35, %v10346_v25 }
 0x2a8   : > { %v6046_v39 = vpop.eup %6045  ;;  %v5767_v60 = vadd.f32 %v5766_v1, %v11113_v15  ;;  %v2626_v4 = vpop.f32.mrb[24].mxu0  ;;  %v2987_v18 = vand.u32 4294901760, %v6044_v38  ;;  %v10345_v6 = vand.u32 4294901760, %v8828_v3  ;;  %v3136_v42 = vsub.f32 %v8812_v63, %v10348_v36  ;;  %v11115_v1 = vld [vmem:[#allocation166_spill] sm:$0xff] }
 0x2a9   : > { %6055 = vtanh.f32 %v5764_v34  ;;  %v5769_v52 = vadd.f32 %v2626_v4, %v8755_v27  ;;  %v2628_v40 = vpop.f32.mrb[25].mxu0  ;;  %v2985_v31 = vand.u32 4294901760, %v6046_v39  ;;  %v10347_v9 = vand.u32 4294901760, %v8833_v59 }
 0x2aa   : > { %6057 = vtanh.f32 %v5767_v60  ;;  %v5772_v2 = vadd.f32 %v2628_v40, %v8761_v53  ;;  %v8846_v5 = vsub.f32 %v6044_v38, %v2987_v18  ;;  %v3137_v54 = vand.u32 4294901760, %v3136_v42 }
 0x2ab   : > { %v6048_v21 = vpop.eup %6047  ;;  %v5770_v13 = vadd.f32 %v5769_v52, %v11114_v0  ;;  %v8850_v30 = vsub.f32 %v6046_v39, %v2985_v31  ;;  %v3143_v27 = vand.u32 4294901760, %v3142_v43  ;;  %v3148_v53 = vsub.f32 %v8833_v59, %v10347_v9  ;;  %v11116_v0 = vld [vmem:[#allocation167_spill] sm:$0xff] }
 0x2ac   : > { %v6050_v32 = vpop.eup %6049  ;;  %v5773_v20 = vadd.f32 %v5772_v2, %v11115_v1  ;;  %v2634_v34 = vpop.f32.mrb[26].mxu0  ;;  %v2991_v15 = vand.u32 4294901760, %v6048_v21  ;;  %v3154_v38 = vsub.f32 %v8828_v3, %v10345_v6 }
 0x2ad   : > { %6059 = vtanh.f32 %v5770_v13  ;;  %v5775_v60 = vadd.f32 %v2634_v34, %v8764_v41  ;;  %v2636_v39 = vpop.f32.mrb[27].mxu0  ;;  %v2989_v4 = vand.u32 4294901760, %v6050_v32  ;;  %v10349_v43 = vand.u32 4294901760, %v8850_v30  ;;  %v11118_v34 = vld [vmem:[#allocation170_spill] sm:$0xff] }
 0x2ae   : > { %6061 = vtanh.f32 %v5773_v20  ;;  %v5778_v52 = vadd.f32 %v2636_v39, %v8768_v61  ;;  %v8862_v40 = vpack.c.bf16 %v2991_v15, %v2987_v18  ;;  %v8864_v42 = vsub.f32 %v6048_v21, %v2991_v15 }
 0x2af   : > { %v6052_v2 = vpop.eup %6051  ;;  %v5776_v1 = vadd.f32 %v5775_v60, %v11116_v0  ;;  %v8867_v57 = vpack.c.bf16 %v2989_v4, %v2985_v31  ;;  %v8869_v6 = vsub.f32 %v6050_v32, %v2989_v4  ;;  %v3149_v13 = vand.u32 4294901760, %v3148_v53 }
 0x2b0   : > { %v6054_v41 = vpop.eup %6053  ;;  %v5779_v25 = vadd.f32 %v5778_v52, %v11118_v34  ;;  %v2642_v9 = vpop.f32.mrb[28].mxu0  ;;  %v2995_v36 = vand.u32 4294901760, %v6052_v2  ;;  %v3155_v20 = vand.u32 4294901760, %v3154_v38  ;;  %v3160_v61 = vsub.f32 %v8850_v30, %v10349_v43  ;;  %v11121_v38 = vld [vmem:[#allocation26_spill] sm:$0xff] }
 0x2b1   : > { %11117 = vst [vmem:[#allocation173_spill] sm:$0xff] %v8867_v57  ;;  %6063 = vtanh.f32 %v5776_v1  ;;  %v5781_v18 = vadd.f32 %v2642_v9, %v8772_v12  ;;  %v2644_v21 = vpop.f32.mrb[29].mxu0  ;;  %v2993_v15 = vand.u32 4294901760, %v6054_v41  ;;  %v8876_v31 = vpack.c.bf16 %v3149_v13, %v3137_v54  ;;  %v11122_v9 = vld [vmem:[#allocation32_spill] sm:$0xff] }
 0x2b2   : > { %6065 = vtanh.f32 %v5779_v25  ;;  %v5784_v32 = vadd.f32 %v2644_v21, %v8781_v17  ;;  %v8879_v53 = vsub.f32 %v6052_v2, %v2995_v36  ;;  %v8881_v60 = vpack.c.bf16 %v3155_v20, %v3143_v27 }
 0x2b3   : > { %11119 = vst [vmem:[#allocation174_spill] sm:$0xff] %v8876_v31  ;;  %v6056_v39 = vpop.eup %6055  ;;  %v5782_v4 = vadd.f32 %v5781_v18, %v11121_v38  ;;  %v8884_v52 = vsub.f32 %v6054_v41, %v2993_v15  ;;  %v3161_v0 = vand.u32 4294901760, %v3160_v61  ;;  %v10351_v1 = vand.u32 4294901760, %v8869_v6  ;;  %v11124_v38 = vld [vmem:[#allocation171_spill] sm:$0xff] }
 0x2b4   : > { %11120 = vst [vmem:[#allocation45_spill] sm:$0xff] %v8881_v60  ;;  %v6058_v12 = vpop.eup %6057  ;;  %v5785_v34 = vadd.f32 %v5784_v32, %v11122_v9  ;;  %v2650_v54 = vpop.f32.mrb[30].mxu0  ;;  %v2999_v13 = vand.u32 4294901760, %v6056_v39  ;;  %v10356_v25 = vand.u32 4294901760, %v8846_v5  ;;  %v10353_v17 = vand.u32 4294901760, %v8864_v42 }
 0x2b5   : > { %6067 = vtanh.f32 %v5782_v4  ;;  %v5787_v27 = vadd.f32 %v2650_v54, %v8784_v11  ;;  %v2652_v2 = vpop.f32.mrb[31].mxu0  ;;  %v2997_v20 = vand.u32 4294901760, %v6058_v12  ;;  %v3172_v41 = vsub.f32 %v8869_v6, %v10351_v1 }
 0x2b6   : > { %6069 = vtanh.f32 %v5785_v34  ;;  %v5790_v61 = vadd.f32 %v2652_v2, %v8793_v49  ;;  %v8895_v18 = vpack.c.bf16 %v2999_v13, %v2995_v36  ;;  %v8897_v21 = vsub.f32 %v6056_v39, %v2999_v13 }
 0x2b7   : > { %v6060_v32 = vpop.eup %6059  ;;  %v5788_v9 = vadd.f32 %v5787_v27, %v11124_v38  ;;  %v8900_v43 = vpack.c.bf16 %v2997_v20, %v2993_v15  ;;  %v8902_v4 = vsub.f32 %v6058_v12, %v2997_v20  ;;  %v3173_v11 = vand.u32 4294901760, %v3172_v41 }
 0x2b8   : > { %11123 = vst [vmem:[#allocation50_spill] sm:$0xff] %v8895_v18  ;;  %v6062_v54 = vpop.eup %6061  ;;  %v5791_v56 = vadd.f32 %v5790_v61, %v11125_v51  ;;  %v2787_v22 = vpop.f32.mrb[0].mxu0  ;;  %v3003_v1 = vand.u32 4294901760, %v6060_v32  ;;  %v3166_v49 = vsub.f32 %v8846_v5, %v10356_v25  ;;  %v3178_v36 = vsub.f32 %v8864_v42, %v10353_v17 }
 0x2b9   : > { %6071 = vtanh.f32 %v5788_v9  ;;  %v5707_v15 = vadd.f32 %v2787_v22, %v8711_v47  ;;  %v2789_v39 = vpop.f32.mrb[1].mxu0  ;;  %v3001_v12 = vand.u32 4294901760, %v6062_v54  ;;  %v8912_v34 = vpack.c.bf16 %v3173_v11, %v3161_v0 }
 0x2ba   : > { %6073 = vtanh.f32 %v5791_v56  ;;  %v5709_v51 = vadd.f32 %v2789_v39, %v8714_v10  ;;  %v8915_v13 = vsub.f32 %v6060_v32, %v3003_v1  ;;  %v3167_v27 = vand.u32 4294901760, %v3166_v49 }
 0x2bb   : > { %11126 = vst [vmem:[#allocation128_spill] sm:$0xff] %v8912_v34  ;;  %v6064_v2 = vpop.eup %6063  ;;  %6075 = vtanh.f32 %v5707_v15  ;;  %v8917_v20 = vsub.f32 %v6062_v54, %v3001_v12  ;;  %v3179_v41 = vand.u32 4294901760, %v3178_v36  ;;  %v10352_v61 = vand.u32 4294901760, %v8884_v52 }
 0x2bc   : > { %v6066_v38 = vpop.eup %6065  ;;  %6077 = vtanh.f32 %v5709_v51  ;;  %v2795_v47 = vpop.f32.mrb[2].mxu0  ;;  %v3007_v22 = vand.u32 4294901760, %v6064_v2  ;;  %v10354_v0 = vand.u32 4294901760, %v8902_v4  ;;  %v10355_v56 = vand.u32 4294901760, %v8879_v53 }
 0x2bd   : > { %v5711_v10 = vadd.f32 %v2795_v47, %v8718_v28  ;;  %v2797_v32 = vpop.f32.mrb[3].mxu0  ;;  %v3005_v9 = vand.u32 4294901760, %v6066_v38  ;;  %v8923_v11 = vpack.c.bf16 %v3179_v41, %v3167_v27  ;;  %v3184_v54 = vsub.f32 %v8884_v52, %v10352_v61 }
 0x2be   : > { %v5713_v49 = vadd.f32 %v2797_v32, %v8721_v33  ;;  %v8929_v36 = vpack.c.bf16 %v3007_v22, %v3003_v1  ;;  %v8931_v15 = vsub.f32 %v6064_v2, %v3007_v22  ;;  %v3196_v39 = vsub.f32 %v8902_v4, %v10354_v0 }
 0x2bf   : > { %11127 = vst [vmem:[#allocation134_spill] sm:$0xff] %v8923_v11  ;;  %v6068_v51 = vpop.eup %6067  ;;  %6079 = vtanh.f32 %v5711_v10  ;;  %v8936_v28 = vpack.c.bf16 %v3005_v9, %v3001_v12  ;;  %v8938_v27 = vsub.f32 %v6066_v38, %v3005_v9  ;;  %v3185_v41 = vand.u32 4294901760, %v3184_v54 }
 0x2c0   : > { %11128 = vst [vmem:[#allocation140_spill] sm:$0xff] %v8929_v36  ;;  %v6070_v47 = vpop.eup %6069  ;;  %6081 = vtanh.f32 %v5713_v49  ;;  %v2803_v61 = vpop.f32.mrb[4].mxu0  ;;  %v3011_v17 = vand.u32 4294901760, %v6068_v51  ;;  %v3197_v33 = vand.u32 4294901760, %v3196_v39  ;;  %v3190_v1 = vsub.f32 %v8879_v53, %v10355_v56 }
 0x2c1   : > { %11129 = vst [vmem:[#allocation57_spill] sm:$0xff] %v8936_v28  ;;  %v5715_v2 = vadd.f32 %v2803_v61, %v8724_v46  ;;  %v2805_v22 = vpop.f32.mrb[5].mxu0  ;;  %v3009_v32 = vand.u32 4294901760, %v6070_v47  ;;  %v10358_v10 = vand.u32 4294901760, %v8897_v21  ;;  %v10360_v12 = vand.u32 4294901760, %v8917_v20 }
 0x2c2   : > { %v5717_v38 = vadd.f32 %v2805_v22, %v8727_v58  ;;  %v8947_v9 = vsub.f32 %v6068_v51, %v3011_v17  ;;  %v8949_v54 = vpack.c.bf16 %v3197_v33, %v3185_v41  ;;  %v3191_v49 = vand.u32 4294901760, %v3190_v1 }
 0x2c3   : > { %v6072_v39 = vpop.eup %6071  ;;  %6083 = vtanh.f32 %v5715_v2  ;;  %v8951_v0 = vsub.f32 %v6070_v47, %v3009_v32  ;;  %v3202_v46 = vsub.f32 %v8897_v21, %v10358_v10  ;;  %v3208_v61 = vsub.f32 %v8917_v20, %v10360_v12 }
 0x2c4   : > { %11130 = vst [vmem:[#allocation144_spill] sm:$0xff] %v8949_v54  ;;  %v6074_v56 = vpop.eup %6073  ;;  %6085 = vtanh.f32 %v5717_v38  ;;  %v2811_v58 = vpop.f32.mrb[6].mxu0  ;;  %v3015_v51 = vand.u32 4294901760, %v6072_v39 }
 0x2c5   : > { %v6076_v1 = vpop.eup %6075  ;;  %v5719_v47 = vadd.f32 %v2811_v58, %v8730_v7  ;;  %v2813_v2 = vpop.f32.mrb[7].mxu0  ;;  %v3013_v22 = vand.u32 4294901760, %v6074_v56  ;;  %v3203_v25 = vand.u32 4294901760, %v3202_v46  ;;  %v3209_v44 = vand.u32 4294901760, %v3208_v61 }
 0x2c6   : > { %v6078_v10 = vpop.eup %6077  ;;  %v5721_v24 = vadd.f32 %v2813_v2, %v8733_v19  ;;  %v2955_v54 = vand.u32 4294901760, %v6076_v1  ;;  %v8963_v12 = vpack.c.bf16 %v3015_v51, %v3011_v17  ;;  %v8965_v38 = vsub.f32 %v6072_v39, %v3015_v51 }
 0x2c7   : > { %6087 = vtanh.f32 %v5719_v47  ;;  %v2953_v11 = vand.u32 4294901760, %v6078_v10  ;;  %v8967_v41 = vpack.c.bf16 %v3013_v22, %v3009_v32  ;;  %v8969_v33 = vsub.f32 %v6074_v56, %v3013_v22 }
 0x2c8   : > { %11131 = vst [vmem:[#allocation146_spill] sm:$0xff] %v8963_v12  ;;  %6089 = vtanh.f32 %v5721_v24  ;;  %v2819_v7 = vpop.f32.mrb[8].mxu0  ;;  %v8971_v58 = vsub.f32 %v6076_v1, %v2955_v54  ;;  %v8973_v46 = vpack.c.bf16 %v3203_v25, %v3191_v49  ;;  %v11134_v61 = vand.u32 4294901760, %v8938_v27 }
 0x2c9   : > { %11132 = vst [vmem:[#allocation62_spill] sm:$0xff] %v8967_v41  ;;  %v6080_v17 = vpop.eup %6079  ;;  %v5723_v39 = vadd.f32 %v2819_v7, %v8738_v26  ;;  %v2821_v51 = vpop.f32.mrb[9].mxu0  ;;  %v8979_v47 = vsub.f32 %v6078_v10, %v2953_v11  ;;  %v11135_v32 = vand.u32 4294901760, %v8915_v13  ;;  %v10373_v34 = vand.u32 4294901760, %v8951_v0 }
 0x2ca   : > { %11133 = vst [vmem:[#allocation114_spill] sm:$0xff] %v8973_v46  ;;  %v3220_v19 = vsub.f32 %v8938_v27, %v11134_v61  ;;  %v6082_v1 = vpop.eup %6081  ;;  %v5725_v25 = vadd.f32 %v2821_v51, %v8741_v48  ;;  %v2959_v49 = vand.u32 4294901760, %v6080_v17  ;;  %v10361_v2 = vand.u32 4294901760, %v8971_v58 }
 0x2cb   : > { %v3214_v56 = vsub.f32 %v8915_v13, %v11135_v32  ;;  %6091 = vtanh.f32 %v5723_v39  ;;  %v2957_v61 = vand.u32 4294901760, %v6082_v1  ;;  %v10362_v26 = vand.u32 4294901760, %v8979_v47 }
 0x2cc   : > { %v3221_v22 = vand.u32 4294901760, %v3220_v19  ;;  %6093 = vtanh.f32 %v5725_v25  ;;  %v8988_v10 = vpack.c.bf16 %v2959_v49, %v2955_v54  ;;  %v8990_v46 = vsub.f32 %v6080_v17, %v2959_v49 }
 0x2cd   : > { %v3215_v7 = vand.u32 4294901760, %v3214_v56  ;;  %v3070_v32 = vsub.f32 %v8971_v58, %v10361_v2  ;;  %v6084_v24 = vpop.eup %6083  ;;  %v8995_v48 = vpack.c.bf16 %v2957_v61, %v2953_v11  ;;  %v8997_v51 = vsub.f32 %v6082_v1, %v2957_v61 }
 0x2ce   : > { %11136 = vst [vmem:[#allocation72_spill] sm:$0xff] %v8988_v10  ;;  %v3064_v19 = vsub.f32 %v8979_v47, %v10362_v26  ;;  %v9002_v39 = vpack.c.bf16 %v3221_v22, %v3209_v44  ;;  %v6086_v56 = vpop.eup %6085  ;;  %v2963_v54 = vand.u32 4294901760, %v6084_v24  ;;  %v10367_v17 = vand.u32 4294901760, %v8990_v46 }
 0x2cf   : > { %11137 = vst [vmem:[#allocation117_spill] sm:$0xff] %v8995_v48  ;;  %v3071_v25 = vand.u32 4294901760, %v3070_v32  ;;  %v11139_v49 = vand.u32 4294901760, %v8931_v15  ;;  %5435 = vmatprep.subr.bf16.mxu1 %v8995_v48  ;;  %v2961_v11 = vand.u32 4294901760, %v6086_v56  ;;  %v10371_v61 = vand.u32 4294901760, %v8997_v51 }
 0x2d0   : > { %11138 = vst [vmem:[#allocation74_spill] sm:$0xff] %v9002_v39  ;;  %v3065_v1 = vand.u32 4294901760, %v3064_v19  ;;  %5437 = vmatpush1.bf16.msra.mxu1 %v8988_v10  ;;  %v9012_v44 = vsub.f32 %v6084_v24, %v2963_v54  ;;  %v3082_v22 = vsub.f32 %v8990_v46, %v10367_v17  ;;  %v3232_v10 = vsub.f32 %v8951_v0, %v10373_v34 }
 0x2d1   : > { %v3226_v2 = vsub.f32 %v8931_v15, %v11139_v49  ;;  %v6088_v49 = vpop.eup %6087  ;;  %v9018_v39 = vsub.f32 %v6086_v56, %v2961_v11  ;;  %v3076_v19 = vsub.f32 %v8997_v51, %v10371_v61 }
 0x2d2   : > { %v6090_v48 = vpop.eup %6089  ;;  %v2967_v60 = vand.u32 4294901760, %v6088_v49  ;;  %v3083_v31 = vand.u32 4294901760, %v3082_v22  ;;  %v3233_v41 = vand.u32 4294901760, %v3232_v10 }
 0x2d3   : > { %v3227_v32 = vand.u32 4294901760, %v3226_v2  ;;  %v10374_v2 = vand.u32 4294901760, %v9012_v44  ;;  %v2965_v26 = vand.u32 4294901760, %v6090_v48  ;;  %v3077_v56 = vand.u32 4294901760, %v3076_v19 }
 0x2d4   : > { %v10375_v12 = vand.u32 4294901760, %v9018_v39  ;;  %v9031_v36 = vpack.c.bf16 %v2967_v60, %v2963_v54  ;;  %v9033_v61 = vsub.f32 %v6088_v49, %v2967_v60  ;;  %v9035_v28 = vpack.c.bf16 %v3083_v31, %v3071_v25 }
 0x2d5   : > { %v9028_v17 = vpack.c.bf16 %v3227_v32, %v3215_v7  ;;  %v3094_v34 = vsub.f32 %v9012_v44, %v10374_v2  ;;  %v6092_v22 = vpop.eup %6091  ;;  %v9040_v24 = vpack.c.bf16 %v2965_v26, %v2961_v11  ;;  %v9042_v7 = vsub.f32 %v6090_v48, %v2965_v26 }
 0x2d6   : > { %11141 = vst [vmem:[#allocation77_spill] sm:$0xff] %v9031_v36  ;;  %11142 = vst [vmem:[#allocation121_spill] sm:$0xff] %v9035_v28  ;;  %v9044_v32 = vpack.c.bf16 %v3077_v56, %v3065_v1  ;;  %v3088_v10 = vsub.f32 %v9018_v39, %v10375_v12  ;;  %v6094_v54 = vpop.eup %6093  ;;  %v2971_v60 = vand.u32 4294901760, %v6092_v22  ;;  %v3105_v31 = vand.u32 4294901760, %v9033_v61 }
 0x2d7   : > { %11140 = vst [vmem:[#allocation118_spill] sm:$0xff] %v9028_v17  ;;  %11143 = vst [vmem:[#allocation47_spill] sm:$0xff] %v9040_v24  ;;  %v3095_v49 = vand.u32 4294901760, %v3094_v34  ;;  %v11145_v25 = vand.u32 4294901760, %v8969_v33  ;;  %5439 = vmatprep.subr.bf16.mxu1 %v9040_v24  ;;  %v2969_v11 = vand.u32 4294901760, %v6094_v54  ;;  %v3099_v48 = vand.u32 4294901760, %v9042_v7 }
 0x2d8   : > { %11144 = vst [vmem:[#allocation33_spill] sm:$0xff] %v9044_v32  ;;  %v3089_v26 = vand.u32 4294901760, %v3088_v10  ;;  %v11146_v1 = vand.u32 4294901760, %v8947_v9  ;;  %5441 = vmatpush1.bf16.msra.mxu1 %v9031_v36  ;;  %v11147_v34 = vand.u32 4294901760, %v8749_v50  ;;  %v9063_v12 = vsub.f32 %v6092_v22, %v2971_v60 }
 0x2d9   : > { %v3244_v19 = vsub.f32 %v8969_v33, %v11145_v25  ;;  %v3106_v25 = vsub.f32 %v9033_v61, %v3105_v31  ;;  %v11148_v24 = vand.u32 4294901760, %v8757_v14  ;;  %v9070_v28 = vsub.f32 %v6094_v54, %v2969_v11 }
 0x2da   : > { %v3238_v56 = vsub.f32 %v8947_v9, %v11146_v1  ;;  %v9061_v2 = vpack.c.bf16 %v11147_v34, %v2971_v60  ;;  %v3100_v32 = vsub.f32 %v9042_v7, %v3099_v48  ;;  %v10381_v36 = vand.u32 4294901760, %v9063_v12 }
 0x2db   : > { %v3245_v17 = vand.u32 4294901760, %v3244_v19  ;;  %v9068_v10 = vpack.c.bf16 %v11148_v24, %v2969_v11  ;;  %v3107_v18 = vand.u32 4294901760, %v3106_v25  ;;  %v3249_v22 = vand.u32 4294901760, %v8965_v38 }
 0x2dc   : > { %v3239_v1 = vand.u32 4294901760, %v3238_v56  ;;  %v3101_v60 = vand.u32 4294901760, %v3100_v32  ;;  %v3111_v19 = vand.u32 4294901760, %v9070_v28  ;;  %v5522_v34 = vpack.c.bf16 %v8938_v27, %v8917_v20 }
 0x2dd   : > { %v9074_v50 = vpack.c.bf16 %v3245_v17, %v3233_v41  ;;  %5443 = vmatprep.subr.bf16.mxu1 %v9068_v10  ;;  %v5472_v54 = vpack.c.bf16 %v3107_v18, %v3095_v49  ;;  %v3118_v41 = vsub.f32 %v9063_v12, %v10381_v36  ;;  %v3250_v17 = vsub.f32 %v8965_v38, %v3249_v22 }
 0x2de   : > { %5445 = vmatpush1.bf16.msra.mxu1 %v9061_v2  ;;  %v5470_v11 = vpack.c.bf16 %v3101_v60, %v3089_v26  ;;  %v3112_v56 = vsub.f32 %v9070_v28, %v3111_v19  ;;  %v11150_v26 = vand.u32 4294901760, %v8820_v23  ;;  %v5524_v24 = vpack.c.bf16 %v8931_v15, %v8915_v13 }
 0x2df   : > { %5447 = vmatprep.subr.bf16.mxu1 %v8831_v8  ;;  %v3119_v49 = vand.u32 4294901760, %v3118_v41  ;;  %v3251_v25 = vand.u32 4294901760, %v3250_v17  ;;  %v11149_v41 = vand.u32 4294901760, %v8809_v29  ;;  %v5526_v29 = vpack.c.bf16 %v8969_v33, %v8951_v0 }
 0x2e0   : > { %v3113_v32 = vand.u32 4294901760, %v3112_v56  ;;  %v11154_v23 = vand.u32 4294901760, %v8971_v58  ;;  %v11156_v56 = vand.u32 4294901760, %v9018_v39  ;;  %v9142_v14 = vsub.f32 %v8800_v45, %v8815_v62 }
 0x2e1   : > { %v5476_v17 = vpack.c.bf16 %v11149_v41, %v3119_v49  ;;  %v5496_v18 = vpack.c.bf16 %v3251_v25, %v3239_v1  ;;  %v5528_v1 = vpack.c.bf16 %v8965_v38, %v8947_v9  ;;  %v11151_v49 = vand.u32 4294901760, %v8979_v47 }
 0x2e2   : > { %5449 = vmatpush1.bf16.msra.mxu1 %v8826_v37  ;;  %v5474_v60 = vpack.c.bf16 %v11150_v26, %v3113_v32  ;;  %v11152_v25 = vand.u32 4294901760, %v8997_v51  ;;  %v11155_v32 = vand.u32 4294901760, %v8990_v46  ;;  %v9138_v36 = vpack.c.bf16 %v3099_v48, %v11156_v56 }
 0x2e3   : > { %5451 = vmatprep.subr.bf16.mxu1 %v8867_v57  ;;  %v11157_v38 = vand.u32 4294901760, %v9012_v44  ;;  %v11164_v48 = vand.u32 4294901760, %v8804_v35  ;;  %v11165_v45 = vand.u32 4294901760, %v8828_v3 }
 0x2e4   : > { %v9128_v41 = vpack.c.bf16 %v11152_v25, %v11151_v49  ;;  %v9134_v26 = vpack.c.bf16 %v11155_v32, %v11154_v23  ;;  %v11159_v49 = vand.u32 4294901760, %v8789_v16  ;;  %v11162_v23 = vand.u32 4294901760, %v8833_v59 }
 0x2e5   : > { %v9146_v57 = vpack.c.bf16 %v3105_v31, %v11157_v38  ;;  %v9163_v56 = vpack.c.bf16 %v11165_v45, %v11164_v48  ;;  %v11167_v31 = vand.u32 4294901760, %v8850_v30  ;;  %v11168_v38 = vand.u32 4294901760, %v8869_v6 }
 0x2e6   : > { %11153 = vst [vmem:[#allocation34_spill] sm:$0xff] %v9128_v41  ;;  %v9150_v25 = vpack.c.bf16 %v11159_v49, %v3111_v19  ;;  %v11161_v41 = vand.u32 4294901760, %v8812_v63  ;;  %5453 = vmatpush1.bf16.msra.mxu1 %v8862_v40  ;;  %v11170_v49 = vand.u32 4294901760, %v8846_v5  ;;  %v11176_v48 = vand.u32 4294901760, %v8879_v53 }
 0x2e7   : > { %11158 = vst [vmem:[#allocation126_spill] sm:$0xff] %v9146_v57  ;;  %11166 = vst [vmem:[#allocation36_spill] sm:$0xff] %v9163_v56  ;;  %v9169_v19 = vpack.c.bf16 %v11168_v38, %v11167_v31  ;;  %5455 = vmatprep.subr.bf16.mxu1 %v8900_v43  ;;  %v11177_v45 = vand.u32 4294901760, %v8897_v21  ;;  %v11178_v38 = vand.u32 4294901760, %v8917_v20  ;;  %v3052_v20 = vand.u32 4294901760, %v9142_v14 }
 0x2e8   : > { %11160 = vst [vmem:[#allocation122_spill] sm:$0xff] %v9150_v25  ;;  %v9156_v32 = vpack.c.bf16 %v11162_v23, %v11161_v41  ;;  %v11171_v25 = vand.u32 4294901760, %v8864_v42  ;;  %v11173_v23 = vand.u32 4294901760, %v8884_v52 }
 0x2e9   : > { %11169 = vst [vmem:[#allocation37_spill] sm:$0xff] %v9169_v19  ;;  %v9188_v31 = vpack.c.bf16 %v11177_v45, %v11176_v48  ;;  %v11179_v19 = vand.u32 4294901760, %v8938_v27  ;;  %v11184_v48 = vand.u32 4294901760, %v8947_v9  ;;  %v11185_v27 = vld [vmem:[#allocation50_spill] sm:$0xff]  ;;  %v11191_v9 = vld [vmem:[#allocation121_spill] sm:$0xff] }
 0x2ea   : > { %11163 = vst [vmem:[#allocation35_spill] sm:$0xff] %v9156_v32  ;;  %v9175_v41 = vpack.c.bf16 %v11171_v25, %v11170_v49  ;;  %v11174_v32 = vand.u32 4294901760, %v8902_v4  ;;  %v11180_v49 = vand.u32 4294901760, %v8915_v13  ;;  %5457 = vmatpush1.bf16.msra.mxu1 %v11185_v27  ;;  %v3053_v13 = vsub.f32 %v9142_v14, %v3052_v20 }
 0x2eb   : > { %v9194_v25 = vpack.c.bf16 %v11179_v19, %v11178_v38  ;;  %v9210_v45 = vpack.c.bf16 %v3249_v22, %v11184_v48  ;;  %v11186_v19 = vld [vmem:[#allocation57_spill] sm:$0xff]  ;;  %v11192_v22 = vmov 0.0   ;;  %v11193_v38 = vld [vmem:[#allocation174_spill] sm:$0xff] }
 0x2ec   : > { %11172 = vst [vmem:[#allocation38_spill] sm:$0xff] %v9175_v41  ;;  %v9181_v57 = vpack.c.bf16 %v11174_v32, %v11173_v23  ;;  %v11181_v41 = vand.u32 4294901760, %v8931_v15  ;;  %v11182_v23 = vand.u32 4294901760, %v8951_v0  ;;  %5459 = vmatprep.subr.bf16.mxu1 %v11186_v19  ;;  %v11187_v15 = vld [vmem:[#allocation140_spill] sm:$0xff]  ;;  %v3054_v0 = vand.u32 4294901760, %v3053_v13  ;;  %v11196_v48 = vld [vmem:[#allocation134_spill] sm:$0xff] }
 0x2ed   : > { %v11197_v13 = vld [vmem:[#allocation144_spill] sm:$0xff] }
 0x2ee   : > { %11175 = vst [vmem:[#allocation80_spill] sm:$0xff] %v9181_v57  ;;  %v9200_v32 = vpack.c.bf16 %v11181_v41, %v11180_v49  ;;  %v11183_v57 = vand.u32 4294901760, %v8969_v33  ;;  %5461 = vmatpush1.bf16.msra.mxu1 %v11187_v15  ;;  %v11188_v41 = vld [vmem:[#allocation62_spill] sm:$0xff]  ;;  %v11194_v49 = vld [vmem:[#allocation45_spill] sm:$0xff] }
 0x2ef   : > { %5463 = vmatprep.subr.bf16.mxu1 %v11188_v41  ;;  %v11189_v33 = vld [vmem:[#allocation146_spill] sm:$0xff] }
 0x2f0   : > { %v9206_v56 = vpack.c.bf16 %v11183_v57, %v11182_v23  ;;  %v11190_v57 = vld [vmem:[#allocation33_spill] sm:$0xff]  ;;  %v11195_v23 = vld [vmem:[#allocation128_spill] sm:$0xff] }
 0x2f2   : > { %5465 = vmatpush1.bf16.msra.mxu1 %v11189_v33 }
 0x2f3   : > { %5467 = vmatprep.subr.bf16.mxu1 %v11190_v57  ;;  %v11198_v57 = vld [vmem:[#allocation114_spill] sm:$0xff] }
 0x2f5   : > { %3055 = vmatmul.mubr.f32.vlgmr.msra.gmra.mrb[54].mxu1 %v3054_v0  ;;  %v11199_v0 = vld [vmem:[#allocation74_spill] sm:$0xff] }
 0x2f6   : > { %5469 = vmatpush1.bf16.msra.mxu1 %v11191_v9  ;;  %3285 = vmatprep.mubr.f32.mxu1 %v11192_v22  ;;  %v11200_v9 = vld [vmem:[#allocation118_spill] sm:$0xff] }
 0x2f7   : > { %5471 = vmatprep.subr.bf16.mxu1 %v5470_v11  ;;  %v11202_v11 = vpack.c.bf16 %v8990_v46, %v8971_v58  ;;  %v11207_v58 = vpack.c.bf16 %v8833_v59, %v8812_v63  ;;  %v11208_v46 = vpack.c.bf16 %v8828_v3, %v8804_v35  ;;  %v11212_v63 = vpack.c.bf16 %v8897_v21, %v8879_v53  ;;  %v11213_v35 = vld [vmem:[#allocation117_spill] sm:$0xff]  ;;  %v11214_v3 = vld [vmem:[#allocation72_spill] sm:$0xff]  ;;  %v11215_v59 = vld [vmem:[#allocation47_spill] sm:$0xff] }
 0x2f8   : > { %v11220_v53 = vld [vmem:[#allocation122_spill] sm:$0xff]  ;;  %v11222_v21 = vand.u32 4294901760, %v8777_v55 }
 0x2fa   : > { %5473 = vmatpush1.bf16.msra.mxu1 %v5472_v54  ;;  %v11201_v54 = vpack.c.bf16 %v8997_v51, %v8979_v47  ;;  %v11205_v47 = vpack.c.bf16 %v8789_v16, %v9070_v28  ;;  %v11206_v51 = vpack.c.bf16 %v8777_v55, %v9063_v12  ;;  %v11210_v16 = vpack.c.bf16 %v8864_v42, %v8846_v5  ;;  %v11217_v5 = vld [vmem:[#allocation173_spill] sm:$0xff]  ;;  %v11219_v42 = vld [vmem:[#allocation126_spill] sm:$0xff] }
 0x2fb   : > { %5475 = vmatprep.subr.bf16.mxu1 %v5474_v60  ;;  %v11203_v60 = vpack.c.bf16 %v9042_v7, %v9018_v39  ;;  %v11209_v39 = vpack.c.bf16 %v8869_v6, %v8850_v30  ;;  %v11211_v28 = vpack.c.bf16 %v8902_v4, %v8884_v52  ;;  %v11216_v6 = vld [vmem:[#allocation77_spill] sm:$0xff]  ;;  %v11218_v30 = vld [vmem:[#allocation34_spill] sm:$0xff]  ;;  %v11221_v52 = vand.u32 4294901760, %v9063_v12 }
 0x2fc   : > { %v11225_v7 = vld [vmem:[#allocation37_spill] sm:$0xff]  ;;  %v2949_v55 = vlaneseq }
 0x2fd   : > { %v5572_v4 = vpack.c.bf16 %v11222_v21, %v11221_v52  ;;  %v3943_v52 = vld [vmem:[%s11232_s20 + $0x30] sm:$0xff] (!%p4998_p2)  ;;  %v3946_v21 = vld [vmem:[%s11232_s20 + $0x48] sm:$0xff] (!%p4998_p2) }
 0x2fe   : > { %5477 = vmatpush1.bf16.msra.mxu1 %v5476_v17  ;;  %vm9341_vm0 = vcmp.lt.s32.totalorder %v2949_v55, 256 }
 0x2ff   : > { %5479 = vmatprep.subr.bf16.mxu1 %v11193_v38  ;;  %v3855_v38 = vld [vmem:[%s11231_s24 + $0xa0] sm:$0xff] (!%p4998_p2) }
 0x302   : > { %5481 = vmatpush1.bf16.msra.mxu1 %v11194_v49  ;;  %v3856_v49 = vld [vmem:[%s11231_s24 + $0xa8] sm:$0xff] (!%p4998_p2) }
 0x303   : > { %5483 = vmatprep.subr.bf16.mxu1 %v11195_v23 }
 0x306   : > { %5485 = vmatpush1.bf16.msra.mxu1 %v11196_v48  ;;  %v5634_v48 = vpack.c.bf16 (!%p4998_p2), %v3856_v49, %v3855_v38  ;;  %v3949_v38 = vld [vmem:[%s11232_s20 + $0x60] sm:$0xff] (!%p4998_p2)  ;;  %v3951_v49 = vld [vmem:[%s11232_s20 + $0x70] sm:$0xff] (!%p4998_p2) }
 0x307   : > { %5487 = vmatprep.subr.bf16.mxu1 %v11197_v13  ;;  %v3839_v13 = vld [vmem:[%s11231_s24 + $0x20] sm:$0xff] (!%p4998_p2) }
 0x30a   : > { %5489 = vmatpush1.bf16.msra.mxu1 %v11198_v57  ;;  %v3840_v57 = vld [vmem:[%s11231_s24 + $0x28] sm:$0xff] (!%p4998_p2) }
 0x30b   : > { %5491 = vmatprep.subr.bf16.mxu1 %v11199_v0  ;;  %v3857_v0 = vld [vmem:[%s11231_s24 + $0xb0] sm:$0xff] (!%p4998_p2) }
 0x30e   : > { %5493 = vmatpush1.bf16.msra.mxu1 %v11200_v9  ;;  %v3858_v9 = vld [vmem:[%s11231_s24 + $0xb8] sm:$0xff] (!%p4998_p2) }
 0x30f   : > { %5495 = vmatprep.subr.bf16.mxu1 %v9074_v50  ;;  %v11204_v50 = vpack.c.bf16 %v9033_v61, %v9012_v44  ;;  %v11223_v61 = vld [vmem:[#allocation35_spill] sm:$0xff]  ;;  %v11224_v44 = vld [vmem:[#allocation36_spill] sm:$0xff] }
 0x312   : > { %5497 = vmatpush1.bf16.msra.mxu1 %v5496_v18 }
 0x313   : > { %5499 = vmatprep.subr.bf16.mxu1 %v11201_v54  ;;  %v5636_v54 = vpack.c.bf16 (!%p4998_p2), %v3840_v57, %v3839_v13 }
 0x315   : > { %3287 = vmatmul.mubr.f32.vlgmr.msra.gmra.mrb[54].mxu1 %v8815_v62 }
 0x316   : > { %5501 = vmatpush1.bf16.msra.mxu1 %v11202_v11  ;;  %3421 = vmatprep.mubr.f32.mxu1 %v11192_v22  ;;  %v5638_v11 = vpack.c.bf16 (!%p4998_p2), %v3858_v9, %v3857_v0 }
 0x317   : > { %5503 = vmatprep.subr.bf16.mxu1 %v11203_v60  ;;  %v3841_v60 = vld [vmem:[%s11231_s24 + $0x30] sm:$0xff] (!%p4998_p2) }
 0x31a   : > { %5505 = vmatpush1.bf16.msra.mxu1 %v11204_v50  ;;  %v3842_v50 = vld [vmem:[%s11231_s24 + $0x38] sm:$0xff] (!%p4998_p2) }
 0x31b   : > { %5507 = vmatprep.subr.bf16.mxu1 %v11205_v47  ;;  %v3859_v47 = vld [vmem:[%s11231_s24 + $0xc0] sm:$0xff] (!%p4998_p2) }
 0x31e   : > { %5509 = vmatpush1.bf16.msra.mxu1 %v11206_v51  ;;  %v3860_v51 = vld [vmem:[%s11231_s24 + $0xc8] sm:$0xff] (!%p4998_p2) }
 0x31f   : > { %5511 = vmatprep.subr.bf16.mxu1 %v11207_v58  ;;  %v3938_v58 = vld [vmem:[%s11232_s20 + $0x8] sm:$0xff] (!%p4998_p2) }
 0x322   : > { %5513 = vmatpush1.bf16.msra.mxu1 %v11208_v46  ;;  %v3843_v46 = vld [vmem:[%s11231_s24 + $0x40] sm:$0xff] (!%p4998_p2) }
 0x323   : > { %5515 = vmatprep.subr.bf16.mxu1 %v11209_v39  ;;  %v3844_v39 = vld [vmem:[%s11231_s24 + $0x48] sm:$0xff] (!%p4998_p2) }
 0x326   : > { %5517 = vmatpush1.bf16.msra.mxu1 %v11210_v16  ;;  %v3940_v16 = vld [vmem:[%s11232_s20 + $0x18] sm:$0xff] (!%p4998_p2) }
 0x327   : > { %5519 = vmatprep.subr.bf16.mxu1 %v11211_v28  ;;  %v3937_v28 = vld [vmem:[%s11232_s20] sm:$0xff] (!%p4998_p2) }
 0x32a   : > { %5521 = vmatpush1.bf16.msra.mxu1 %v11212_v63  ;;  %v3939_v63 = vld [vmem:[%s11232_s20 + $0x10] sm:$0xff] (!%p4998_p2) }
 0x32b   : > { %5523 = vmatprep.subr.bf16.mxu1 %v5522_v34 }
 0x32e   : > { %5525 = vmatpush1.bf16.msra.mxu1 %v5524_v24  ;;  %v11227_v24 = vld [vmem:[#allocation80_spill] sm:$0xff] }
 0x32f   : > { %5527 = vmatprep.subr.bf16.mxu1 %v5526_v29 }
 0x332   : > { %5529 = vmatpush1.bf16.msra.mxu1 %v5528_v1 }
 0x333   : > { %5531 = vmatprep.subr.bf16.mxu1 %v11213_v35 }
 0x335   : > { %3424 = vmatmul.mubr.f32.vlgmr.msra.gmra.mrb[54].mxu1 %v9142_v14  ;;  %v11226_v14 = vld [vmem:[#allocation38_spill] sm:$0xff] }
 0x336   : > { %5533 = vmatpush1.bf16.msra.mxu1 %v11214_v3  ;;  %3526 = vmatprep.mubr.f32.mxu1 %v11192_v22 }
 0x337   : > { %5535 = vmatprep.subr.bf16.mxu1 %v11215_v59 }
 0x33a   : > { %5537 = vmatpush1.bf16.msra.mxu1 %v11216_v6 }
 0x33b   : > { %5539 = vmatprep.subr.bf16.mxu1 %v9068_v10 }
 0x33e   : > { %5541 = vmatpush1.bf16.msra.mxu1 %v9061_v2 }
 0x33f   : > { %5543 = vmatprep.subr.bf16.mxu1 %v8831_v8 }
 0x342   : > { %5545 = vmatpush1.bf16.msra.mxu1 %v8826_v37 }
 0x343   : > { %5547 = vmatprep.subr.bf16.mxu1 %v11217_v5 }
 0x346   : > { %5549 = vmatpush1.bf16.msra.mxu1 %v8862_v40 }
 0x347   : > { %5551 = vmatprep.subr.bf16.mxu1 %v8900_v43 }
 0x34a   : > { %5553 = vmatpush1.bf16.msra.mxu1 %v11185_v27 }
 0x34b   : > { %5555 = vmatprep.subr.bf16.mxu1 %v11186_v19 }
 0x34e   : > { %5557 = vmatpush1.bf16.msra.mxu1 %v11187_v15 }
 0x34f   : > { %5559 = vmatprep.subr.bf16.mxu1 %v11188_v41 }
 0x352   : > { %5561 = vmatpush1.bf16.msra.mxu1 %v11189_v33 }
 0x353   : > { %5563 = vmatprep.subr.bf16.mxu1 %v11218_v30  ;;  %v3941_v30 = vld [vmem:[%s11232_s20 + $0x20] sm:$0xff] (!%p4998_p2) }
 0x355   : > { %3530 = vmatmul.mubr.f32.vlgmr.msra.gmra.mrb[54].mxu1 %v3052_v20  ;;  %v3836_v20 = vld [vmem:[%s11231_s24 + $0x8] sm:$0xff] (!%p4998_p2) }
 0x356   : > { %5565 = vmatpush1.bf16.msra.mxu1 %v9134_v26  ;;  %3696 = vmatprep.mubr.f32.mxu1 %v11192_v22 }
 0x357   : > { %5567 = vmatprep.subr.bf16.mxu1 %v9138_v36  ;;  %v2947_v36 = vpop.permute.xlu0 %2946 }
 0x35a   : > { %5569 = vmatpush1.bf16.msra.mxu1 %v11219_v42  ;;  %v5642_v42 = vpack.c.bf16 (!%p4998_p2), %v3860_v51, %v3859_v47 }
 0x35b   : > { %5571 = vmatprep.subr.bf16.mxu1 %v11220_v53 }
 0x35e   : > { %5573 = vmatpush1.bf16.msra.mxu1 %v5572_v4  ;;  %v3948_v4 = vld [vmem:[%s11232_s20 + $0x58] sm:$0xff] (!%p4998_p2) }
 0x35f   : > { %5575 = vmatprep.subr.bf16.mxu1 %v11223_v61  ;;  %v3861_v61 = vld [vmem:[%s11231_s24 + $0xd0] sm:$0xff] (!%p4998_p2) }
 0x362   : > { %5577 = vmatpush1.bf16.msra.mxu1 %v11224_v44  ;;  %v3862_v44 = vld [vmem:[%s11231_s24 + $0xd8] sm:$0xff] (!%p4998_p2) }
 0x363   : > { %5579 = vmatprep.subr.bf16.mxu1 %v11225_v7  ;;  %v5664_v7 = vpack.c.bf16 (!%p4998_p2), %v3943_v52, %v3941_v30 }
 0x366   : > { %5581 = vmatpush1.bf16.msra.mxu1 %v11226_v14  ;;  %v5644_v14 = vpack.c.bf16 (!%p4998_p2), %v3844_v39, %v3843_v46 }
 0x367   : > { %5583 = vmatprep.subr.bf16.mxu1 %v11227_v24  ;;  %v5666_v24 = vpack.c.bf16 (!%p4998_p2), %v3948_v4, %v3946_v21 }
 0x36a   : > { %5585 = vmatpush1.bf16.msra.mxu1 %v9188_v31  ;;  %v3851_v31 = vld [vmem:[%s11230_s18 + $0x80] sm:$0xff] (!%p4998_p2) }
 0x36b   : > { %5587 = vmatprep.subr.bf16.mxu1 %v9194_v25  ;;  %v3852_v25 = vld [vmem:[%s11231_s24 + $0x88] sm:$0xff] (!%p4998_p2) }
 0x36e   : > { %5589 = vmatpush1.bf16.msra.mxu1 %v9200_v32  ;;  %v3835_v32 = vld [vmem:[%s11231_s24] sm:$0xff] (!%p4998_p2) }
 0x36f   : > { %5591 = vmatprep.subr.bf16.mxu1 %v9206_v56 }
 0x372   : > { %5593 = vmatpush1.bf16.msra.mxu1 %v9210_v45  ;;  %v5626_v45 = vpack.c.bf16 (!%p4998_p2), %v3852_v25, %v3851_v31  ;;  %v3848_v31 = vld [vmem:[%s11231_s24 + $0x68] sm:$0xff] (!%p4998_p2)  ;;  %v3865_v25 = vld [vmem:[%s11231_s24 + $0xf0] sm:$0xff] (!%p4998_p2) }
 0x373   : > { %5595 = vmatprep.subr.bf16.mxu1 %v11213_v35  ;;  %v5640_v35 = vpack.c.bf16 (!%p4998_p2), %v3842_v50, %v3841_v60 }
 0x374   : > { %5627 = vmatprep.subr.bf16.mxu0 (!%p4998_p2), %v5626_v45 }
 0x375   : > { %3698 = vmatmul.mubr.f32.vlgmr.msra.gmra.mrb[54].mxu1 %v8815_v62 }
 0x376   : > { %5597 = vmatpush1.bf16.msra.mxu1 %v11214_v3  ;;  %3800 = vmatprep.mubr.f32.mxu1 %v11192_v22  ;;  %v3838_v22 = vld [vmem:[%s11231_s24 + $0x18] sm:$0xff] (!%p4998_p2)  ;;  %v5658_v3 = vpack.c.bf16 (!%p4998_p2), %v3940_v16, %v3938_v58 }
 0x377   : > { %5599 = vmatprep.subr.bf16.mxu1 %v11215_v59  ;;  %v5660_v59 = vpack.c.bf16 (!%p4998_p2), %v3939_v63, %v3937_v28 }
 0x37a   : > { %5601 = vmatpush1.bf16.msra.mxu1 %v11216_v6  ;;  %v3942_v6 = vld [vmem:[%s11232_s20 + $0x28] sm:$0xff] (!%p4998_p2) }
 0x37b   : > { %5603 = vmatprep.subr.bf16.mxu1 %v9068_v10 }
 0x37e   : > { %5605 = vmatpush1.bf16.msra.mxu1 %v9061_v2 }
 0x37f   : > { %5607 = vmatprep.subr.bf16.mxu1 %v8831_v8  ;;  %v6305_v8 = vmov 1966171168  }
 0x382   : > { %5609 = vmatpush1.bf16.msra.mxu1 %v8826_v37  ;;  %v9327_v37 = vshrl.u32 %v2949_v55, 7 }
 0x383   : > { %5611 = vmatprep.subr.bf16.mxu1 %v11217_v5  ;;  %v3944_v5 = vld [vmem:[%s11232_s20 + $0x38] sm:$0xff] (!%p4998_p2) }
 0x384   : > { %v5662_v53 = vpack.c.bf16 (!%p4998_p2), %v3944_v5, %v3942_v6 }
 0x386   : > { %5613 = vmatpush1.bf16.msra.mxu1 %v8862_v40  ;;  %v3812_v40 = vunpack.c.l.s4 %v6305_v8  ;;  %v3945_v8 = vld [vmem:[%s11232_s20 + $0x40] sm:$0xff] (!%p4998_p2) }
 0x387   : > { %5615 = vmatprep.subr.bf16.mxu1 %v8900_v43  ;;  %v9330_v43 = vsub.s32 0, %v9327_v37 }
 0x388   : > { %v3813_v12 = vunpack.c.0.s8 %v3812_v40  ;;  %v3947_v40 = vld [vmem:[%s11232_s20 + $0x50] sm:$0xff] (!%p4998_p2) }
 0x389   : > { %v2952_v2 = vrot.slane %v2947_v36, %v9330_v43  ;;  %v5646_v36 = vpack.c.bf16 (!%p4998_p2), %v3862_v44, %v3861_v61 }
 0x38a   : > { %5617 = vmatpush1.bf16.msra.mxu1 %v11185_v27  ;;  %v3853_v27 = vld [vmem:[%s11231_s24 + $0x90] sm:$0xff] (!%p4998_p2) }
 0x38b   : > { %5619 = vmatprep.subr.bf16.mxu1 %v11186_v19  ;;  %v3854_v19 = vld [vmem:[%s11231_s24 + $0x98] sm:$0xff] (!%p4998_p2) }
 0x38e   : > { %5621 = vmatpush1.bf16.msra.mxu1 %v11187_v15  ;;  %v5628_v15 = vpack.c.bf16 (!%p4998_p2), %v3836_v20, %v3835_v32  ;;  %v3866_v32 = vld [vmem:[%s11231_s24 + $0xf8] sm:$0xff] (!%p4998_p2) }
 0x38f   : > { %5623 = vmatprep.subr.bf16.mxu1 %v11188_v41  ;;  %v5630_v41 = vpack.c.bf16 (!%p4998_p2), %v3854_v19, %v3853_v27  ;;  %v5654_v20 = vpack.c.bf16 (!%p4998_p2), %v3866_v32, %v3865_v25  ;;  %v3849_v27 = vld [vmem:[%s11231_s24 + $0x70] sm:$0xff] (!%p4998_p2)  ;;  %v3850_v19 = vld [vmem:[%s11231_s24 + $0x78] sm:$0xff] (!%p4998_p2) }
 0x390   : > { %5629 = vmatpush3.bf16.msra.mxu0 (!%p4998_p2), %v5628_v15  ;;  %v5656_v15 = vpack.c.bf16 (!%p4998_p2), %v3850_v19, %v3849_v27 }
 0x391   : > { %5631 = vmatprep.subr.bf16.mxu0 (!%p4998_p2), %v5630_v41  ;;  %v3950_v41 = vld [vmem:[%s11232_s20 + $0x68] sm:$0xff] (!%p4998_p2) }
 0x392   : > { %5625 = vmatpush1.bf16.msra.mxu1 %v11189_v33  ;;  %v3837_v33 = vld [vmem:[%s11231_s24 + $0x10] sm:$0xff] (!%p4998_p2) }
 0x393   : > { %v5632_v23 = vpack.c.bf16 (!%p4998_p2), %v3838_v22, %v3837_v33  ;;  %5659 = vmatprep.subr.bf16.mxu1 (!%p4998_p2), %v5658_v3  ;;  %v3952_v33 = vld [vmem:[%s11232_s20 + $0x78] sm:$0xff] (!%p4998_p2) }
 0x394   : > { %v5670_v22 = vpack.c.bf16 (!%p4998_p2), %v3952_v33, %v3950_v41 }
 0x395   : > { %3802 = vmatmul.mubr.f32.vlgmr.msra.gmra.mrb[54].mxu1 %v8815_v62  ;;  %v9336_v62 = vsub.s32 %v3813_v12, %v9327_v37  ;;  %5633 = vmatpush3.bf16.msra.mxu0 (!%p4998_p2), %v5632_v23  ;;  %v3845_v12 = vld [vmem:[%s11231_s24 + $0x50] sm:$0xff] (!%p4998_p2)  ;;  %v5672_v23 = vpack.c.bf16 (!%p4998_p2), %v3951_v49, %v3949_v38 }
 0x396   : > { %5635 = vmatprep.subr.bf16.mxu0 (!%p4998_p2), %v5634_v48  ;;  %5661 = vmatpush1.bf16.msra.mxu1 (!%p4998_p2), %v5660_v59 }
 0x397   : > { %5663 = vmatprep.subr.bf16.mxu1 (!%p4998_p2), %v5662_v53 }
 0x399   : > { %5637 = vmatpush3.bf16.msra.mxu0 (!%p4998_p2), %v5636_v54 }
 0x39a   : > { %5639 = vmatprep.subr.bf16.mxu0 (!%p4998_p2), %v5638_v11  ;;  %5665 = vmatpush1.bf16.msra.mxu1 (!%p4998_p2), %v5664_v7 }
 0x39b   : > { %5667 = vmatprep.subr.bf16.mxu1 (!%p4998_p2), %v5666_v24 }
 0x39d   : > { %5641 = vmatpush3.bf16.msra.mxu0 (!%p4998_p2), %v5640_v35 }
 0x39e   : > { %5643 = vmatprep.subr.bf16.mxu0 (!%p4998_p2), %v5642_v42 }
 0x3a1   : > { %5645 = vmatpush3.bf16.msra.mxu0 (!%p4998_p2), %v5644_v14 }
 0x3a2   : > { %5647 = vmatprep.subr.bf16.mxu0 (!%p4998_p2), %v5646_v36 }
 0x468   : > { %v3803_v10 = vpop.f32.mrb[54].mxu1 }
 0x469   : > { %v9333_v34 = vadd.f32 %v3803_v10, %v2952_v2  ;;  %v3805_v18 = vpop.f32.mrb[55].mxu1  ;;  %v3863_v10 = vld [vmem:[%s11231_s24 + $0xe0] sm:$0xff] (!%p4998_p2) }
 0x46a   : > { %v5793_v17 = vadd.f32 %v3805_v18, %v2952_v2  ;;  %v3846_v2 = vld [vmem:[%s11231_s24 + $0x58] sm:$0xff] (!%p4998_p2)  ;;  %v3864_v18 = vld [vmem:[%s11231_s24 + $0xe8] sm:$0xff] (!%p4998_p2) }
 0x46c   : > { %v3810_v29 = vcombine.low %v9333_v34, %v5793_v17  ;;  %3834 = sbr.rel (%p4998_p2) target bundleno = 1585 (0x631), region = 64  ;;  %3931 = vmatprep.mubr.f32.mxu0 (!%p4998_p2), %v5793_v17  ;;  %v5668_v17 = vpack.c.bf16 (!%p4998_p2), %v3947_v40, %v3945_v8 }
 0x46e   : > { %v3817_v1 = vrot.slane %v3810_v29, %v9336_v62  ;;  %v5648_v29 = vpack.c.bf16 (!%p4998_p2), %v3846_v2, %v3845_v12  ;;  %5669 = vmatpush1.bf16.msra.mxu1 (!%p4998_p2), %v5668_v17 }
 0x46f   : > { %5671 = vmatprep.subr.bf16.mxu1 (!%p4998_p2), %v5670_v22 }
 0x470   : > { %v3824_v56 = vrot.slane %v3817_v1, %v9336_v62  ;;  %v5650_v1 = vpack.c.bf16 (!%p4998_p2), %v3864_v18, %v3863_v10  ;;  %5649 = vmatpush3.bf16.msra.mxu0 (!%p4998_p2), %v5648_v29 }
 0x472   : > { %3830 = vst.msk [vmem:[#allocation5] sm:$0x3] %vm9341_vm0, %v3824_v56  ;;  %v3847_v56 = vld [vmem:[%s11231_s24 + $0x60] sm:$0xff] (!%p4998_p2)  ;;  %5651 = vmatprep.subr.bf16.mxu0 (!%p4998_p2), %v5650_v1  ;;  %5673 = vmatpush1.bf16.msra.mxu1 (!%p4998_p2), %v5672_v23 }
 0x473   : > { %v5652_v45 = vpack.c.bf16 %v3848_v31, %v3847_v56 }
 0x475   : > { %5653 = vmatpush3.bf16.msra.mxu0 %v5652_v45 }
 0x476   : > { %5655 = vmatprep.subr.bf16.mxu0 %v5654_v20 }
 0x479   : > { %5657 = vmatpush3.bf16.msra.mxu0 %v5656_v15 }
 0x47c   : > { %3932 = vmatmul.mubr.f32.vlgmr.msra.gmra.mrb[0].mxu0 %v9333_v34  ;;  %v6306_v34 = vmov 0.0  }
 0x47d   : > { %4021 = vmatprep.mubr.f32.mxu1 %v6306_v34 }
 0x54f   : > { %v5047_v48 = vpop.f32.mrb[0].mxu0 }
 0x550   : > { %v5048_v13 = vpop.f32.mrb[1].mxu0 }
 0x551   : > { %v5049_v57 = vadd.f32 %v5048_v13, %v5047_v48 }
 0x553   : > { %4999 = vmatmul.mubr.msk.f32.vlgmr.msra.gmra.mrb[0].mxu1 %vm3953_vm1, %v5049_v57 }
 0x626   : > { %v4023_v0 = vpop.f32.mrb[0].mxu1 }
 0x627   : > { %v4028_v9 = vmul.f32 0.25, %v4023_v0  ;;  %v4025_v54 = vpop.f32.mrb[1].mxu1 }
 0x628   : > { %v4029_v11 = vmul.f32 0.25, %v4025_v54 }
 0x62a   : > { %v4032_v60 = vcombine.low %v4028_v9, %v4029_v11 }
 0x62c   : > { %v4039_v50 = vrot.slane %v4032_v60, %v9336_v62 }
 0x62e   : > { %v4046_v47 = vrot.slane %v4039_v50, %v9336_v62 }
 0x630   : > { %4048 = vst.msk [vmem:[#allocation5] sm:$0x3] %vm9341_vm0, %v4046_v47 }
 0x631 PF: > { %p4049_p4 = scmp.eq.s32.totalorder %s6283_s16, 0  ;;  %s5000_s23 = sshll.u32 %s6279_s15, 8  ;;  %v9501_v51 = vand.u32 127, %v2949_v55  ;;  %v4069_v46 = vsub.s32 1, %v9327_v37  ;;  %v4098_v5 = vld [vmem:[#allocation2] sm:$0x1] }
 0x632   : > { %v4055_v39 = vstv %s5000_s23  ;;  %s4093_s12 = sshra.s32 %s5000_s23, 7  ;;  %v4109_v24 = vld [vmem:[#allocation3] sm:$0x1]  ;;  %v4115_v8 = vld [vmem:[#allocation4] sm:$0xff]  ;;  %v4205_v36 = vld [vmem:[%s6510_s27 + $0x8] sm:$0xff]  ;;  %p5001_p0 = scmp.ne.s32.totalorder %s6279_s15, 1 }
 0x633   : > { %s4050_s21 = scalar_select %p4049_p4, 300, 296  ;;  %v4054_v16 = vadd.s32 128, %v9501_v51  ;;  %v4056_v28 = vadd.s32 %v4055_v39, %v9501_v51  ;;  %v4153_v40 = vld [vmem:[%s6510_s27] sm:$0xff]  ;;  %v4154_v12 = vld [vmem:[%s6510_s27 + $0x10] sm:$0xff]  ;;  %v4206_v10 = vld [vmem:[%s6510_s27 + $0x18] sm:$0xff] }
 0x634   : > { %s4095_s26 = scalar_lea.vmem %s6551_s28, %s4093_s12 [#allocation9]  ;;  %v4155_v18 = vld [vmem:[%s6510_s27 + $0x20] sm:$0xff]  ;;  %v4207_v17 = vld [vmem:[%s6510_s27 + $0x28] sm:$0xff]  ;;  %v4118_v25 = vld [vmem:[#allocation4 + $0x18] sm:$0xff]  ;;  %vm4422_vm4 = vcmask (!%p5001_p0), 1040384   ;;  %s6307_s15 = smov (!%p5001_p0), 127   ;;  %vm4671_vm5 = vcmask (!%p5001_p0), 7168  }
 0x635   : > { %v4057_v3 = vadd.s32 %v4055_v39, %v4054_v16  ;;  %v4058_v59 = vstv %s4050_s21  ;;  %v4116_v56 = vld [vmem:[#allocation4 + $0x8] sm:$0xff]  ;;  %v4117_v31 = vld [vmem:[#allocation4 + $0x10] sm:$0xff]  ;;  %v4208_v15 = vld [vmem:[%s6510_s27 + $0x38] sm:$0xff]  ;;  %vm4759_vm7 = vcmp.eq.s32.totalorder (!%p5001_p0), %v9501_v51, 0  ;;  %vm4766_vm8 = vcmp.eq.s32.totalorder (!%p5001_p0), %v9501_v51, 1 }
 0x636   : > { %vm4059_vm2 = vcmp.lt.s32.totalorder %v4056_v28, %v4058_v59  ;;  %v4156_v19 = vld [vmem:[%s6510_s27 + $0x30] sm:$0xff]  ;;  %v4119_v41 = vld [vmem:[#allocation4 + $0x20] sm:$0xff]  ;;  %v4209_v0 = vld [vmem:[%s6510_s27 + $0x48] sm:$0xff]  ;;  %vm4774_vm9 = vcmp.eq.s32.totalorder (!%p5001_p0), %v9501_v51, 2  ;;  %vm4777_vm10 = vcmp.eq.s32.totalorder (!%p5001_p0), %v9501_v51, 3 }
 0x637   : > { %v4061_v58 = vld [vmem:[#allocation5] sm:$0x3]  ;;  %vm4060_vm3 = vcmp.lt.s32.totalorder %v4057_v3, %v4058_v59  ;;  %v4157_v57 = vld [vmem:[%s6510_s27 + $0x40] sm:$0xff]  ;;  %v4158_v47 = vld [vmem:[%s6510_s27 + $0x50] sm:$0xff] }
 0x638   : > { %v4066_v63 = vrot.slane %v4061_v58, %v9330_v43  ;;  %v4070_v35 = vrot.slane %v4061_v58, %v4069_v46  ;;  %v4120_v9 = vld [vmem:[#allocation4 + $0x28] sm:$0xff]  ;;  %v4210_v28 = vld [vmem:[%s6510_s27 + $0x58] sm:$0xff] }
 0x63a   : > { %v4073_v6 = vsel %vm4059_vm2, %v4066_v63, -1e+30  ;;  %v4074_v55 = vsel %vm4060_vm3, %v4070_v35, -1e+30  ;;  %v4121_v63 = vld [vmem:[#allocation4 + $0x30] sm:$0xff] }
 0x63b   : > { %v4077_v30 = vcombine.low %v4073_v6, %v4074_v55  ;;  %v4097_v37 = vmax.f32 %v4073_v6, %v4074_v55 }
 0x63d   : > { %v4084_v42 = vrot.slane %v4077_v30, %v9336_v62  ;;  %v4099_v53 = vmax.f32 %v4098_v5, %v4097_v37  ;;  %v4122_v30 = vld [vmem:[#allocation4 + $0x38] sm:$0xff] }
 0x63f   : > { %v4091_v52 = vrot.slane %v4084_v42, %v9336_v62  ;;  %v4103_v21 = vsub.f32 %v4073_v6, %v4099_v53  ;;  %v4106_v4 = vsub.f32 %v4074_v55, %v4099_v53  ;;  %4114 = vst [vmem:[#allocation2] sm:$0x1] %v4099_v53  ;;  %v4100_v61 = vsub.f32 %v4098_v5, %v4099_v53  ;;  %v4159_v55 = vld [vmem:[%s6510_s27 + $0x60] sm:$0xff]  ;;  %v4211_v5 = vld [vmem:[%s6510_s27 + $0x68] sm:$0xff] }
 0x641   : > { %4096 = vst.msk [vmem:[%s4095_s26] sm:$0x3] %vm9341_vm0, %v4091_v52  ;;  %v4104_v44 = vmul.f32 1.442695, %v4103_v21  ;;  %v4107_v7 = vmul.f32 1.442695, %v4106_v4 }
 0x642   : > { %v4101_v14 = vmul.f32 1.442695, %v4100_v61  ;;  %v4160_v21 = vld [vmem:[%s6510_s27 + $0x70] sm:$0xff]  ;;  %v4212_v4 = vld [vmem:[%s6510_s27 + $0x78] sm:$0xff] }
 0x643   : > { %6095 = vpow2.f32 %v4104_v44  ;;  %v4123_v61 = vld [vmem:[#allocation4 + $0x40] sm:$0xff] }
 0x644   : > { %6097 = vpow2.f32 %v4107_v7 }
 0x645   : > { %6099 = vpow2.f32 %v4101_v14 }
 0x64d   : > { %v6096_v62 = vpop.eup %6095 }
 0x64e   : > { %v6098_v2 = vpop.eup %6097  ;;  %v9516_v26 = vrot.slane %v6096_v62, %v9330_v43 }
 0x64f   : > { %v6100_v29 = vpop.eup %6099  ;;  %v9522_v1 = vrot.slane %v6098_v2, %v9330_v43 }
 0x650   : > { %v4110_v32 = vmul.f32 %v6100_v29, %v4109_v24  ;;  %v9525_v45 = vrot.slane %v6100_v29, %v9330_v43  ;;  %v4173_v20 = vmul.f32 %v9516_v26, %v4153_v40  ;;  %v4174_v27 = vmul.f32 %v9516_v26, %v4154_v12 }
 0x651   : > { %v4225_v33 = vmul.f32 %v9522_v1, %v4205_v36  ;;  %v4226_v22 = vmul.f32 %v9522_v1, %v4206_v10  ;;  %v4175_v38 = vmul.f32 %v9516_v26, %v4155_v18  ;;  %v4227_v49 = vmul.f32 %v9522_v1, %v4207_v17  ;;  %v4124_v10 = vld [vmem:[#allocation4 + $0x48] sm:$0xff]  ;;  %v4162_v18 = vld [vmem:[%s6510_s27 + $0x90] sm:$0xff]  ;;  %v4214_v17 = vld [vmem:[%s6510_s27 + $0x98] sm:$0xff] }
 0x652   : > { %v4111_v23 = vadd.f32 %v6096_v62, %v4110_v32  ;;  %v4137_v34 = vmul.f32 %v9525_v45, %v4115_v8  ;;  %v4138_v48 = vmul.f32 %v9525_v45, %v4116_v56  ;;  %v4139_v13 = vmul.f32 %v9525_v45, %v4117_v31  ;;  %v4161_v62 = vld [vmem:[%s6510_s27 + $0x80] sm:$0xff]  ;;  %v4213_v8 = vld [vmem:[%s6510_s27 + $0x88] sm:$0xff] }
 0x653   : > { %v4140_v54 = vmul.f32 %v9525_v45, %v4118_v25  ;;  %v4176_v11 = vmul.f32 %v9516_v26, %v4156_v19  ;;  %v4228_v60 = vmul.f32 %v9522_v1, %v4208_v15  ;;  %v4141_v50 = vmul.f32 %v9525_v45, %v4119_v41  ;;  %v4125_v32 = vld [vmem:[#allocation4 + $0x50] sm:$0xff] }
 0x654   : > { %v4112_v58 = vadd.f32 %v6098_v2, %v4111_v23  ;;  %v4189_v46 = vadd.f32 %v4173_v20, %v4137_v34  ;;  %v4190_v39 = vadd.f32 %v4174_v27, %v4138_v48  ;;  %v4191_v16 = vadd.f32 %v4175_v38, %v4139_v13  ;;  %v4163_v20 = vld [vmem:[%s6510_s27 + $0xa0] sm:$0xff]  ;;  %v4164_v48 = vld [vmem:[%s6510_s27 + $0xb0] sm:$0xff]  ;;  %v4216_v13 = vld [vmem:[%s6510_s27 + $0xb8] sm:$0xff] }
 0x655   : > { %v4192_v35 = vadd.f32 %v4176_v11, %v4140_v54  ;;  %v4177_v3 = vmul.f32 %v9516_v26, %v4157_v57  ;;  %v4229_v59 = vmul.f32 %v9522_v1, %v4209_v0  ;;  %v4142_v6 = vmul.f32 %v9525_v45, %v4120_v9  ;;  %v4127_v11 = vld [vmem:[#allocation4 + $0x60] sm:$0xff] }
 0x656   : > { %4113 = vst [vmem:[#allocation3] sm:$0x1] %v4112_v58  ;;  %v4241_v37 = vadd.f32 %v4225_v33, %v4189_v46  ;;  %v4242_v42 = vadd.f32 %v4226_v22, %v4190_v39  ;;  %v4243_v53 = vadd.f32 %v4227_v49, %v4191_v16  ;;  %v4178_v52 = vmul.f32 %v9516_v26, %v4158_v47  ;;  %v4215_v33 = vld [vmem:[%s6510_s27 + $0xa8] sm:$0xff]  ;;  %v4126_v22 = vld [vmem:[#allocation4 + $0x58] sm:$0xff] }
 0x657   : > { %v4244_v44 = vadd.f32 %v4228_v60, %v4192_v35  ;;  %v4193_v7 = vadd.f32 %v4177_v3, %v4141_v50  ;;  %v4230_v14 = vmul.f32 %v9522_v1, %v4210_v28  ;;  %v4143_v24 = vmul.f32 %v9525_v45, %v4121_v63  ;;  %v4165_v60 = vld [vmem:[%s6510_s27 + $0xc0] sm:$0xff]  ;;  %v4217_v50 = vld [vmem:[%s6510_s27 + $0xc8] sm:$0xff]  ;;  %v4166_v28 = vld [vmem:[%s6510_s27 + $0xd0] sm:$0xff] }
 0x658   : > { %4257 = vst [vmem:[#allocation4] sm:$0xff] %v4241_v37  ;;  %4258 = vst [vmem:[#allocation4 + $0x8] sm:$0xff] %v4242_v42  ;;  %v4194_v40 = vadd.f32 %v4178_v52, %v4142_v6  ;;  %v4179_v36 = vmul.f32 %v9516_v26, %v4159_v55  ;;  %v4231_v12 = vmul.f32 %v9522_v1, %v4211_v5  ;;  %v4128_v16 = vld [vmem:[#allocation4 + $0x68] sm:$0xff]  ;;  %v4218_v6 = vld [vmem:[%s6510_s27 + $0xd8] sm:$0xff] }
 0x659   : > { %4259 = vst [vmem:[#allocation4 + $0x10] sm:$0xff] %v4243_v53  ;;  %v4144_v2 = vmul.f32 %v9525_v45, %v4122_v30  ;;  %4260 = vst [vmem:[#allocation4 + $0x18] sm:$0xff] %v4244_v44  ;;  %v4245_v29 = vadd.f32 %v4229_v59, %v4193_v7  ;;  %v4180_v56 = vmul.f32 %v9516_v26, %v4160_v21  ;;  %v4129_v55 = vld [vmem:[#allocation4 + $0x70] sm:$0xff]  ;;  %v4167_v5 = vld [vmem:[%s6510_s27 + $0xe0] sm:$0xff] }
 0x65a   : > { %v4232_v31 = vmul.f32 %v9522_v1, %v4212_v4  ;;  %v4145_v25 = vmul.f32 %v9525_v45, %v4123_v61  ;;  %v4246_v27 = vadd.f32 %v4230_v14, %v4194_v40  ;;  %v4195_v19 = vadd.f32 %v4179_v36, %v4143_v24  ;;  %v4219_v52 = vld [vmem:[%s6510_s27 + $0xe8] sm:$0xff]  ;;  %v4130_v21 = vld [vmem:[#allocation4 + $0x78] sm:$0xff] }
 0x65b   : > { %v4181_v15 = vmul.f32 %v9516_v26, %v4161_v62  ;;  %v4233_v41 = vmul.f32 %v9522_v1, %v4213_v8  ;;  %4261 = vst [vmem:[#allocation4 + $0x20] sm:$0xff] %v4245_v29  ;;  %v4196_v38 = vadd.f32 %v4180_v56, %v4144_v2  ;;  %v4146_v49 = vmul.f32 %v9525_v45, %v4124_v10  ;;  %v4168_v14 = vld [vmem:[%s6510_s27 + $0xf0] sm:$0xff]  ;;  %v4220_v24 = vld [vmem:[%s6510_s27 + $0xf8] sm:$0xff]  ;;  %v4305_v2 = vld [vmem:[%s6510_s27 + $0x100] sm:$0xff] }
 0x65c   : > { %v4182_v23 = vmul.f32 %v9516_v26, %v4162_v18  ;;  %v4234_v34 = vmul.f32 %v9522_v1, %v4214_v17  ;;  %4262 = vst [vmem:[#allocation4 + $0x28] sm:$0xff] %v4246_v27  ;;  %v4247_v57 = vadd.f32 %v4231_v12, %v4195_v19  ;;  %v4147_v9 = vmul.f32 %v9525_v45, %v4125_v32  ;;  %v4273_v12 = vld [vmem:[#allocation4 + $0x80] sm:$0xff]  ;;  %v4353_v10 = vld [vmem:[%s6510_s27 + $0x108] sm:$0xff] }
 0x65d   : > { %v4197_v0 = vadd.f32 %v4181_v15, %v4145_v25  ;;  %v4183_v54 = vmul.f32 %v9516_v26, %v4163_v20  ;;  %v4248_v47 = vadd.f32 %v4232_v31, %v4196_v38  ;;  %v4235_v46 = vmul.f32 %v9522_v1, %v4215_v33  ;;  %v4274_v31 = vld [vmem:[#allocation4 + $0x88] sm:$0xff]  ;;  %v4306_v25 = vld [vmem:[%s6510_s27 + $0x110] sm:$0xff]  ;;  %v4354_v15 = vld [vmem:[%s6510_s27 + $0x118] sm:$0xff] }
 0x65e   : > { %v4198_v58 = vadd.f32 %v4182_v23, %v4146_v49  ;;  %v4148_v39 = vmul.f32 %v9525_v45, %v4126_v22  ;;  %4263 = vst [vmem:[#allocation4 + $0x30] sm:$0xff] %v4247_v57  ;;  %v4184_v3 = vmul.f32 %v9516_v26, %v4164_v48  ;;  %v4236_v59 = vmul.f32 %v9522_v1, %v4216_v13  ;;  %v4307_v33 = vld [vmem:[%s6510_s27 + $0x120] sm:$0xff]  ;;  %v4276_v48 = vld [vmem:[#allocation4 + $0x98] sm:$0xff] }
 0x65f   : > { %v4249_v63 = vadd.f32 %v4233_v41, %v4197_v0  ;;  %v4199_v35 = vadd.f32 %v4183_v54, %v4147_v9  ;;  %4264 = vst [vmem:[#allocation4 + $0x38] sm:$0xff] %v4248_v47  ;;  %v4149_v37 = vmul.f32 %v9525_v45, %v4127_v11  ;;  %v4185_v42 = vmul.f32 %v9516_v26, %v4165_v60  ;;  %v4275_v41 = vld [vmem:[#allocation4 + $0x90] sm:$0xff]  ;;  %v4356_v11 = vld [vmem:[%s6510_s27 + $0x138] sm:$0xff] }
 0x660   : > { %v4250_v30 = vadd.f32 %v4234_v34, %v4198_v58  ;;  %v4237_v53 = vmul.f32 %v9522_v1, %v4217_v50  ;;  %v4200_v61 = vadd.f32 %v4184_v3, %v4148_v39  ;;  %v4150_v44 = vmul.f32 %v9525_v45, %v4128_v16  ;;  %v4355_v34 = vld [vmem:[%s6510_s27 + $0x128] sm:$0xff]  ;;  %v4308_v54 = vld [vmem:[%s6510_s27 + $0x130] sm:$0xff]  ;;  %v4309_v39 = vld [vmem:[%s6510_s27 + $0x140] sm:$0xff] }
 0x661   : > { %4265 = vst [vmem:[#allocation4 + $0x40] sm:$0xff] %v4249_v63  ;;  %v4251_v4 = vadd.f32 %v4235_v46, %v4199_v35  ;;  %v4186_v7 = vmul.f32 %v9516_v26, %v4166_v28  ;;  %v4201_v62 = vadd.f32 %v4185_v42, %v4149_v37  ;;  %v4238_v8 = vmul.f32 %v9522_v1, %v4218_v6  ;;  %v4277_v46 = vld [vmem:[#allocation4 + $0xa0] sm:$0xff]  ;;  %v4357_v16 = vld [vmem:[%s6510_s27 + $0x148] sm:$0xff]  ;;  %v4310_v6 = vld [vmem:[%s6510_s27 + $0x150] sm:$0xff] }
 0x662   : > { %4266 = vst [vmem:[#allocation4 + $0x48] sm:$0xff] %v4250_v30  ;;  %v4151_v40 = vmul.f32 %v9525_v45, %v4129_v55  ;;  %v4187_v36 = vmul.f32 %v9516_v26, %v4167_v5  ;;  %v4252_v18 = vadd.f32 %v4236_v59, %v4200_v61  ;;  %v4239_v29 = vmul.f32 %v9522_v1, %v4219_v52  ;;  %v4278_v59 = vld [vmem:[#allocation4 + $0xa8] sm:$0xff]  ;;  %v4358_v42 = vld [vmem:[%s6510_s27 + $0x158] sm:$0xff] }
 0x663   : > { %4267 = vst [vmem:[#allocation4 + $0x50] sm:$0xff] %v4251_v4  ;;  %v4202_v17 = vadd.f32 %v4186_v7, %v4150_v44  ;;  %v4152_v56 = vmul.f32 %v9525_v45, %v4130_v21  ;;  %v4253_v32 = vadd.f32 %v4237_v53, %v4201_v62  ;;  %v4188_v27 = vmul.f32 %v9516_v26, %v4168_v14  ;;  %v4279_v53 = vld [vmem:[#allocation4 + $0xb0] sm:$0xff]  ;;  %v4311_v52 = vld [vmem:[%s6510_s27 + $0x160] sm:$0xff]  ;;  %v4280_v14 = vld [vmem:[#allocation4 + $0xb8] sm:$0xff] }
 0x664   : > { %v4203_v20 = vadd.f32 %v4187_v36, %v4151_v40  ;;  %v4240_v19 = vmul.f32 %v9522_v1, %v4220_v24  ;;  %4268 = vst [vmem:[#allocation4 + $0x58] sm:$0xff] %v4252_v18  ;;  %v4289_v38 = vmul.f32 %v4273_v12, %v9525_v45  ;;  %v4321_v49 = vmul.f32 %v4305_v2, %v9516_v26  ;;  %v4359_v7 = vld [vmem:[%s6510_s27 + $0x168] sm:$0xff]  ;;  %v4312_v36 = vld [vmem:[%s6510_s27 + $0x170] sm:$0xff]  ;;  %v4360_v12 = vld [vmem:[%s6510_s27 + $0x178] sm:$0xff] }
 0x665   : > { %v4254_v22 = vadd.f32 %v4238_v8, %v4202_v17  ;;  %v4369_v23 = vmul.f32 %v4353_v10, %v9522_v1  ;;  %4269 = vst [vmem:[#allocation4 + $0x60] sm:$0xff] %v4253_v32  ;;  %v4204_v57 = vadd.f32 %v4188_v27, %v4152_v56  ;;  %v4290_v0 = vmul.f32 %v4274_v31, %v9525_v45  ;;  %v4313_v56 = vld [vmem:[%s6510_s27 + $0x180] sm:$0xff]  ;;  %v4361_v31 = vld [vmem:[%s6510_s27 + $0x188] sm:$0xff] }
 0x666   : > { %v4255_v13 = vadd.f32 %v4239_v29, %v4203_v20  ;;  %v4322_v9 = vmul.f32 %v4306_v25, %v9516_v26  ;;  %v4337_v60 = vadd.f32 %v4321_v49, %v4289_v38  ;;  %v4370_v50 = vmul.f32 %v4354_v15, %v9522_v1  ;;  %v4281_v29 = vld [vmem:[#allocation4 + $0xc0] sm:$0xff]  ;;  %v4314_v15 = vld [vmem:[%s6510_s27 + $0x190] sm:$0xff] }
 0x667   : > { %4270 = vst [vmem:[#allocation4 + $0x68] sm:$0xff] %v4254_v22  ;;  %v4291_v47 = vmul.f32 %v4275_v41, %v9525_v45  ;;  %v4323_v58 = vmul.f32 %v4307_v33, %v9516_v26  ;;  %v4256_v28 = vadd.f32 %v4240_v19, %v4204_v57  ;;  %v4371_v35 = vmul.f32 %v4355_v34, %v9522_v1  ;;  %v4282_v19 = vld [vmem:[#allocation4 + $0xc8] sm:$0xff]  ;;  %v4362_v49 = vld [vmem:[%s6510_s27 + $0x198] sm:$0xff] }
 0x668   : > { %4271 = vst [vmem:[#allocation4 + $0x70] sm:$0xff] %v4255_v13  ;;  %v4338_v63 = vadd.f32 %v4322_v9, %v4290_v0  ;;  %v4292_v3 = vmul.f32 %v4276_v48, %v9525_v45  ;;  %v4385_v55 = vadd.f32 %v4369_v23, %v4337_v60  ;;  %v4324_v30 = vmul.f32 %v4308_v54, %v9516_v26  ;;  %v4283_v23 = vld [vmem:[#allocation4 + $0xd0] sm:$0xff]  ;;  %v4315_v34 = vld [vmem:[%s6510_s27 + $0x1a0] sm:$0xff]  ;;  %v4284_v54 = vld [vmem:[#allocation4 + $0xd8] sm:$0xff] }
 0x669   : > { %v4339_v5 = vadd.f32 %v4323_v58, %v4291_v47  ;;  %v4372_v37 = vmul.f32 %v4356_v11, %v9522_v1  ;;  %4272 = vst [vmem:[#allocation4 + $0x78] sm:$0xff] %v4256_v28  ;;  %v4293_v4 = vmul.f32 %v4277_v46, %v9525_v45  ;;  %v4325_v61 = vmul.f32 %v4309_v39, %v9516_v26  ;;  %v4363_v9 = vld [vmem:[%s6510_s27 + $0x1a8] sm:$0xff]  ;;  %v4316_v58 = vld [vmem:[%s6510_s27 + $0x1b0] sm:$0xff]  ;;  %v4364_v46 = vld [vmem:[%s6510_s27 + $0x1b8] sm:$0xff] }
 0x66a   : > { %v4386_v21 = vadd.f32 %v4370_v50, %v4338_v63  ;;  %v4373_v44 = vmul.f32 %v4357_v16, %v9522_v1  ;;  %4401 = vst [vmem:[#allocation4 + $0x80] sm:$0xff] %v4385_v55  ;;  %v4340_v62 = vadd.f32 %v4324_v30, %v4292_v3  ;;  %v4294_v8 = vmul.f32 %v4278_v59, %v9525_v45  ;;  %v4317_v3 = vld [vmem:[%s6510_s27 + $0x1c0] sm:$0xff]  ;;  %v4365_v59 = vld [vmem:[%s6510_s27 + $0x1c8] sm:$0xff] }
 0x66b   : > { %v4387_v24 = vadd.f32 %v4371_v35, %v4339_v5  ;;  %v4326_v40 = vmul.f32 %v4310_v6, %v9516_v26  ;;  %v4341_v2 = vadd.f32 %v4325_v61, %v4293_v4  ;;  %v4374_v10 = vmul.f32 %v4358_v42, %v9522_v1  ;;  %v4285_v35 = vld [vmem:[#allocation4 + $0xe0] sm:$0xff]  ;;  %v4318_v42 = vld [vmem:[%s6510_s27 + $0x1d0] sm:$0xff] }
 0x66c   : > { %4402 = vst [vmem:[#allocation4 + $0x88] sm:$0xff] %v4386_v21  ;;  %v4295_v18 = vmul.f32 %v4279_v53, %v9525_v45  ;;  %v4327_v17 = vmul.f32 %v4311_v52, %v9516_v26  ;;  %v4388_v25 = vadd.f32 %v4372_v37, %v4340_v62  ;;  %v4375_v20 = vmul.f32 %v4359_v7, %v9522_v1  ;;  %v4286_v37 = vld [vmem:[#allocation4 + $0xe8] sm:$0xff]  ;;  %v4366_v61 = vld [vmem:[%s6510_s27 + $0x1d8] sm:$0xff] }
 0x66d   : > { %4403 = vst [vmem:[#allocation4 + $0x90] sm:$0xff] %v4387_v24  ;;  %v4342_v32 = vadd.f32 %v4326_v40, %v4294_v8  ;;  %v4296_v27 = vmul.f32 %v4280_v14, %v9525_v45  ;;  %v4389_v41 = vadd.f32 %v4373_v44, %v4341_v2  ;;  %v4328_v22 = vmul.f32 %v4312_v36, %v9516_v26  ;;  %v4287_v44 = vld [vmem:[#allocation4 + $0xf0] sm:$0xff]  ;;  %v4319_v7 = vld [vmem:[%s6510_s27 + $0x1e0] sm:$0xff]  ;;  %v4288_v36 = vld [vmem:[#allocation4 + $0xf8] sm:$0xff] }
 0x66e   : > { %v4343_v33 = vadd.f32 %v4327_v17, %v4295_v18  ;;  %v4376_v38 = vmul.f32 %v4360_v12, %v9522_v1  ;;  %4404 = vst [vmem:[#allocation4 + $0x98] sm:$0xff] %v4388_v25  ;;  %v4297_v13 = vmul.f32 %v4281_v29, %v9525_v45  ;;  %v4329_v57 = vmul.f32 %v4313_v56, %v9516_v26  ;;  %v4367_v40 = vld [vmem:[%s6510_s27 + $0x1e8] sm:$0xff]  ;;  %v4320_v17 = vld [vmem:[%s6510_s27 + $0x1f0] sm:$0xff]  ;;  %v4368_v29 = vld [vmem:[%s6510_s27 + $0x1f8] sm:$0xff] }
 0x66f   : > { %v4390_v48 = vadd.f32 %v4374_v10, %v4342_v32  ;;  %v4377_v0 = vmul.f32 %v4361_v31, %v9522_v1  ;;  %4405 = vst [vmem:[#allocation4 + $0xa0] sm:$0xff] %v4389_v41  ;;  %v4344_v60 = vadd.f32 %v4328_v22, %v4296_v27  ;;  %v4298_v50 = vmul.f32 %v4282_v19, %v9525_v45 }
 0x670   : > { %v4391_v11 = vadd.f32 %v4375_v20, %v4343_v33  ;;  %v4330_v47 = vmul.f32 %v4314_v15, %v9516_v26  ;;  %v4345_v39 = vadd.f32 %v4329_v57, %v4297_v13  ;;  %v4378_v16 = vmul.f32 %v4362_v49, %v9522_v1  ;;  %v4421_v13 = vld [vmem:[#allocation2] sm:$0x1] (!%p5001_p0) }
 0x671   : > { %4406 = vst [vmem:[#allocation4 + $0xa8] sm:$0xff] %v4390_v48  ;;  %v4299_v28 = vmul.f32 %v4283_v23, %v9525_v45  ;;  %v4331_v63 = vmul.f32 %v4315_v34, %v9516_v26  ;;  %v4392_v6 = vadd.f32 %v4376_v38, %v4344_v60  ;;  %v4379_v5 = vmul.f32 %v4363_v9, %v9522_v1 }
 0x672   : > { %4407 = vst [vmem:[#allocation4 + $0xb0] sm:$0xff] %v4391_v11  ;;  %v4346_v55 = vadd.f32 %v4330_v47, %v4298_v50  ;;  %v4300_v30 = vmul.f32 %v4284_v54, %v9525_v45  ;;  %v4393_v53 = vadd.f32 %v4377_v0, %v4345_v39  ;;  %v4332_v21 = vmul.f32 %v4316_v58, %v9516_v26  ;;  %v4429_v0 = vld [vmem:[#allocation3] sm:$0x1] (!%p5001_p0)  ;;  %v4436_v54 = vld [vmem:[#allocation4] sm:$0xff] (!%p5001_p0)  ;;  %v4438_v58 = vld [vmem:[#allocation4 + $0x10] sm:$0xff] (!%p5001_p0) }
 0x673   : > { %v4347_v52 = vadd.f32 %v4331_v63, %v4299_v28  ;;  %v4380_v4 = vmul.f32 %v4364_v46, %v9522_v1  ;;  %4408 = vst [vmem:[#allocation4 + $0xb8] sm:$0xff] %v4392_v6  ;;  %v4301_v24 = vmul.f32 %v4285_v35, %v9525_v45  ;;  %v4333_v62 = vmul.f32 %v4317_v3, %v9516_v26  ;;  %v4437_v46 = vld [vmem:[#allocation4 + $0x8] sm:$0xff] (!%p5001_p0)  ;;  %v4440_v28 = vld [vmem:[#allocation4 + $0x20] sm:$0xff] (!%p5001_p0)  ;;  %v4439_v63 = vld [vmem:[#allocation4 + $0x18] sm:$0xff] (!%p5001_p0) }
 0x674   : > { %v4394_v14 = vadd.f32 %v4378_v16, %v4346_v55  ;;  %v4381_v8 = vmul.f32 %v4365_v59, %v9522_v1  ;;  %4409 = vst [vmem:[#allocation4 + $0xc0] sm:$0xff] %v4393_v53  ;;  %v4348_v2 = vadd.f32 %v4332_v21, %v4300_v30  ;;  %v4302_v10 = vmul.f32 %v4286_v37, %v9525_v45  ;;  %v4442_v59 = vld [vmem:[#allocation4 + $0x30] sm:$0xff] (!%p5001_p0)  ;;  %v4441_v6 = vld [vmem:[#allocation4 + $0x28] sm:$0xff] (!%p5001_p0)  ;;  %v4444_v30 = vld [vmem:[#allocation4 + $0x40] sm:$0xff] (!%p5001_p0) }
 0x675   : > { %v4395_v12 = vadd.f32 %v4379_v5, %v4347_v52  ;;  %v4334_v18 = vmul.f32 %v4318_v42, %v9516_v26  ;;  %v4349_v56 = vadd.f32 %v4333_v62, %v4301_v24  ;;  %v4382_v31 = vmul.f32 %v4366_v61, %v9522_v1  ;;  %v4443_v37 = vld [vmem:[#allocation4 + $0x38] sm:$0xff] (!%p5001_p0)  ;;  %v4446_v52 = vld [vmem:[#allocation4 + $0x50] sm:$0xff] (!%p5001_p0)  ;;  %v4445_v21 = vld [vmem:[#allocation4 + $0x48] sm:$0xff] (!%p5001_p0) }
 0x676   : > { %4410 = vst [vmem:[#allocation4 + $0xc8] sm:$0xff] %v4394_v14  ;;  %v4303_v25 = vmul.f32 %v4287_v44, %v9525_v45  ;;  %v4335_v32 = vmul.f32 %v4319_v7, %v9516_v26  ;;  %v4396_v20 = vadd.f32 %v4380_v4, %v4348_v2  ;;  %v4383_v19 = vmul.f32 %v4367_v40, %v9522_v1  ;;  %v4448_v44 = vld [vmem:[#allocation4 + $0x60] sm:$0xff] (!%p5001_p0)  ;;  %v4447_v7 = vld [vmem:[#allocation4 + $0x58] sm:$0xff] (!%p5001_p0)  ;;  %v4450_v62 = vld [vmem:[#allocation4 + $0x70] sm:$0xff] (!%p5001_p0) }
 0x677   : > { %4411 = vst [vmem:[#allocation4 + $0xd0] sm:$0xff] %v4395_v12  ;;  %v4350_v27 = vadd.f32 %v4334_v18, %v4302_v10  ;;  %v4304_v15 = vmul.f32 %v4288_v36, %v9525_v45  ;;  %v4397_v41 = vadd.f32 %v4381_v8, %v4349_v56  ;;  %v4336_v22 = vmul.f32 %v4320_v17, %v9516_v26  ;;  %4420 = sbr.rel (%p5001_p0) target bundleno = 2219 (0x8ab), region = 68  ;;  %v4449_v8 = vld [vmem:[#allocation4 + $0x68] sm:$0xff] (!%p5001_p0)  ;;  %v4452_v12 = vld [vmem:[#allocation4 + $0x80] sm:$0xff] (!%p5001_p0)  ;;  %v4451_v2 = vld [vmem:[#allocation4 + $0x78] sm:$0xff] (!%p5001_p0) }
 0x678   : > { %v4351_v33 = vadd.f32 %v4335_v32, %v4303_v25  ;;  %v4384_v38 = vmul.f32 %v4368_v29, %v9522_v1  ;;  %4412 = vst [vmem:[#allocation4 + $0xd8] sm:$0xff] %v4396_v20  ;;  %v4423_v45 = vsel (!%p5001_p0), %vm4422_vm4, %v4421_v13, -inf  ;;  %v4454_v17 = vld [vmem:[#allocation4 + $0x90] sm:$0xff] (!%p5001_p0)  ;;  %v4453_v29 = vld [vmem:[#allocation4 + $0x88] sm:$0xff] (!%p5001_p0)  ;;  %v4456_v25 = vld [vmem:[#allocation4 + $0xa0] sm:$0xff] (!%p5001_p0) }
 0x679   : > { %v4398_v49 = vadd.f32 %v4382_v31, %v4350_v27  ;;  %4413 = vst [vmem:[#allocation4 + $0xe0] sm:$0xff] %v4397_v41  ;;  %v4352_v34 = vadd.f32 %v4336_v22, %v4304_v15  ;;  %4424 = vmax.xlane.f32.xlu0 (!%p5001_p0), %v4423_v45  ;;  %v4455_v32 = vld [vmem:[#allocation4 + $0x98] sm:$0xff] (!%p5001_p0)  ;;  %v4457_v15 = vld [vmem:[#allocation4 + $0xa8] sm:$0xff] (!%p5001_p0) }
 0x67a   : > { %v4399_v23 = vadd.f32 %v4383_v19, %v4351_v33  ;;  %v4458_v19 = vld [vmem:[#allocation4 + $0xb0] sm:$0xff] (!%p5001_p0) }
 0x67b   : > { %4414 = vst [vmem:[#allocation4 + $0xe8] sm:$0xff] %v4398_v49  ;;  %v4400_v48 = vadd.f32 %v4384_v38, %v4352_v34  ;;  %v4460_v22 = vld [vmem:[#allocation4 + $0xc0] sm:$0xff] (!%p5001_p0)  ;;  %v4459_v38 = vld [vmem:[#allocation4 + $0xb8] sm:$0xff] (!%p5001_p0) }
 0x67c   : > { %4415 = vst [vmem:[#allocation4 + $0xf0] sm:$0xff] %v4399_v23 }
 0x67d   : > { %4416 = vst [vmem:[#allocation4 + $0xf8] sm:$0xff] %v4400_v48  ;;  %v4461_v48 = vld [vmem:[#allocation4 + $0xc8] sm:$0xff] (!%p5001_p0) }
 0x67e   : > { %v4462_v34 = vld [vmem:[#allocation4 + $0xd0] sm:$0xff] }
 0x706   : > { %v9682_v57 = vpop.xlane.xlu0 %4424 }
 0x707   : > { %v4426_v26 = vsub.f32 %v4421_v13, %v9682_v57 }
 0x709   : > { %v4427_v1 = vmul.f32 1.442695, %v4426_v26  ;;  %v4464_v26 = vld [vmem:[#allocation4 + $0xe0] sm:$0xff] }
 0x70b   : > { %6103 = vpow2.f32 %v4427_v1  ;;  %v4463_v1 = vld [vmem:[#allocation4 + $0xd8] sm:$0xff] }
 0x715   : > { %v6104_v9 = vpop.eup %6103 }
 0x716   : > { %v9686_v11 = vrot.slane %v6104_v9, %v9330_v43  ;;  %v4430_v60 = vmul.f32 %v6104_v9, %v4429_v0 }
 0x718   : > { %v4431_v50 = vsel %vm4422_vm4, %v4430_v60, 0.0  ;;  %v4474_v47 = vmul.f32 %v9686_v11, %v4436_v54  ;;  %v4476_v39 = vmul.f32 %v9686_v11, %v4438_v58  ;;  %v4475_v16 = vmul.f32 %v9686_v11, %v4437_v46  ;;  %v4466_v54 = vld [vmem:[#allocation4 + $0xf0] sm:$0xff]  ;;  %v4465_v60 = vld [vmem:[#allocation4 + $0xe8] sm:$0xff]  ;;  %v4467_v58 = vld [vmem:[#allocation4 + $0xf8] sm:$0xff] }
 0x719   : > { %4432 = vadd.xlane.f32.xlu0 %v4431_v50  ;;  %v4478_v35 = vmul.f32 %v9686_v11, %v4440_v28  ;;  %v4477_v3 = vmul.f32 %v9686_v11, %v4439_v63  ;;  %v4480_v55 = vmul.f32 %v9686_v11, %v4442_v59  ;;  %v4479_v5 = vmul.f32 %v9686_v11, %v4441_v6 }
 0x71a   : > { %4506 = vadd.xlane.f32.xlu1 %v4474_v47  ;;  %v4482_v42 = vmul.f32 %v9686_v11, %v4444_v30  ;;  %v4481_v53 = vmul.f32 %v9686_v11, %v4443_v37  ;;  %v4484_v4 = vmul.f32 %v9686_v11, %v4446_v52  ;;  %v4483_v61 = vmul.f32 %v9686_v11, %v4445_v21  ;;  %v4606_v30 = vld [vmem:[%s6543_s13] sm:$0xff]  ;;  %v4608_v37 = vld [vmem:[%s6543_s13 + $0x10] sm:$0xff] }
 0x71b   : > { %v4486_v14 = vmul.f32 %v9686_v11, %v4448_v44  ;;  %v4485_v24 = vmul.f32 %v9686_v11, %v4447_v7  ;;  %v4488_v40 = vmul.f32 %v9686_v11, %v4450_v62  ;;  %v4487_v36 = vmul.f32 %v9686_v11, %v4449_v8  ;;  %v4610_v8 = vld [vmem:[%s6543_s13 + $0x20] sm:$0xff] }
 0x71c   : > { %v4490_v10 = vmul.f32 %v9686_v11, %v4452_v12  ;;  %v4489_v18 = vmul.f32 %v9686_v11, %v4451_v2  ;;  %v4492_v56 = vmul.f32 %v9686_v11, %v4454_v17  ;;  %v4491_v31 = vmul.f32 %v9686_v11, %v4453_v29  ;;  %v4611_v17 = vld [vmem:[%s6543_s13 + $0x28] sm:$0xff] }
 0x71d   : > { %4510 = vadd.xlane.f32.xlu0 %v4476_v39  ;;  %v4494_v20 = vmul.f32 %v9686_v11, %v4456_v25  ;;  %v4493_v27 = vmul.f32 %v9686_v11, %v4455_v32  ;;  %v4496_v41 = vmul.f32 %v9686_v11, %v4458_v19  ;;  %v4495_v33 = vmul.f32 %v9686_v11, %v4457_v15  ;;  %v5002_v39 = vld [vmem:[%s6549_s8] ss:$0 sm:$0xff] }
 0x71e   : > { %4508 = vadd.xlane.f32.xlu1 %v4475_v16  ;;  %v4498_v49 = vmul.f32 %v9686_v11, %v4460_v22  ;;  %v4497_v23 = vmul.f32 %v9686_v11, %v4459_v38  ;;  %v4500_v13 = vmul.f32 %v9686_v11, %v4462_v34  ;;  %v4499_v45 = vmul.f32 %v9686_v11, %v4461_v48  ;;  %v4613_v22 = vld [vmem:[%s6543_s13 + $0x38] sm:$0xff] }
 0x71f   : > { %v4502_v0 = vmul.f32 %v9686_v11, %v4464_v26  ;;  %v4501_v9 = vmul.f32 %v9686_v11, %v4463_v1  ;;  %v4504_v50 = vmul.f32 %v9686_v11, %v4466_v54  ;;  %v4503_v47 = vmul.f32 %v9686_v11, %v4465_v60  ;;  %v4615_v54 = vld [vmem:[%s6543_s13 + $0x48] sm:$0xff] }
 0x720   : > { %v4505_v46 = vmul.f32 %v9686_v11, %v4467_v58  ;;  %v6308_v16 = vmov 0  }
 0x721   : > { %4514 = vadd.xlane.f32.xlu0 %v4478_v35  ;;  %6101 = vset.pattern.permute.xlu1 %v6308_v16 }
 0x722   : > { %4512 = vadd.xlane.f32.xlu1 %v4477_v3  ;;  %6102 = vset.pattern.permute.xlu0 %v6308_v16 }
 0x725   : > { %4518 = vadd.xlane.f32.xlu0 %v4480_v55 }
 0x726   : > { %4516 = vadd.xlane.f32.xlu1 %v4479_v5 }
 0x729   : > { %4522 = vadd.xlane.f32.xlu0 %v4482_v42  ;;  %v4607_v42 = vld [vmem:[%s6543_s13 + $0x8] sm:$0xff] }
 0x72a   : > { %4520 = vadd.xlane.f32.xlu1 %v4481_v53 }
 0x72d   : > { %4526 = vadd.xlane.f32.xlu0 %v4484_v4 }
 0x72e   : > { %4524 = vadd.xlane.f32.xlu1 %v4483_v61  ;;  %v4609_v61 = vld [vmem:[%s6543_s13 + $0x18] sm:$0xff] }
 0x731   : > { %4530 = vadd.xlane.f32.xlu0 %v4486_v14 }
 0x732   : > { %4528 = vadd.xlane.f32.xlu1 %v4485_v24 }
 0x735   : > { %4534 = vadd.xlane.f32.xlu0 %v4488_v40 }
 0x736   : > { %4532 = vadd.xlane.f32.xlu1 %v4487_v36 }
 0x739   : > { %4538 = vadd.xlane.f32.xlu0 %v4490_v10 }
 0x73a   : > { %4536 = vadd.xlane.f32.xlu1 %v4489_v18 }
 0x73d   : > { %4542 = vadd.xlane.f32.xlu0 %v4492_v56 }
 0x73e   : > { %4540 = vadd.xlane.f32.xlu1 %v4491_v31 }
 0x741   : > { %4546 = vadd.xlane.f32.xlu0 %v4494_v20  ;;  %v4612_v20 = vld [vmem:[%s6543_s13 + $0x30] sm:$0xff] }
 0x742   : > { %4544 = vadd.xlane.f32.xlu1 %v4493_v27 }
 0x745   : > { %4550 = vadd.xlane.f32.xlu0 %v4496_v41 }
 0x746   : > { %4548 = vadd.xlane.f32.xlu1 %v4495_v33 }
 0x749   : > { %4554 = vadd.xlane.f32.xlu0 %v4498_v49 }
 0x74a   : > { %4552 = vadd.xlane.f32.xlu1 %v4497_v23 }
 0x74d   : > { %4558 = vadd.xlane.f32.xlu0 %v4500_v13  ;;  %v4614_v13 = vld [vmem:[%s6543_s13 + $0x40] sm:$0xff] }
 0x74e   : > { %4556 = vadd.xlane.f32.xlu1 %v4499_v45 }
 0x751   : > { %4562 = vadd.xlane.f32.xlu0 %v4502_v0 }
 0x752   : > { %4560 = vadd.xlane.f32.xlu1 %v4501_v9 }
 0x755   : > { %4566 = vadd.xlane.f32.xlu0 %v4504_v50 }
 0x756   : > { %4564 = vadd.xlane.f32.xlu1 %v4503_v47 }
 0x75a   : > { %4568 = vadd.xlane.f32.xlu1 %v4505_v46 }
 0x76b   : > { %4746 = vrot.lane.b32.xlu0 %v5002_v39, %s6307_s15  ;;  %v4616_v39 = vld [vmem:[%s6543_s13 + $0x50] sm:$0xff] }
 0x7a6   : > { %v9721_v28 = vpop.xlane.xlu0 %4432 }
 0x7a7   : > { %6105 = vrcp.f32 %v9721_v28  ;;  %v4507_v63 = vpop.xlane.xlu1 %4506 }
 0x7aa   : > { %v4511_v35 = vpop.xlane.xlu0 %4510 }
 0x7ab   : > { %v4509_v3 = vpop.xlane.xlu1 %4508 }
 0x7ae   : > { %v4515_v59 = vpop.xlane.xlu0 %4514 }
 0x7af   : > { %v4513_v11 = vpop.xlane.xlu1 %4512 }
 0x7b1   : > { %v6106_v6 = vpop.eup %6105 }
 0x7b2   : > { %v9725_v55 = vrot.slane %v6106_v6, %v9330_v43  ;;  %v4519_v5 = vpop.xlane.xlu0 %4518 }
 0x7b3   : > { %v4517_v53 = vpop.xlane.xlu1 %4516 }
 0x7b4   : > { %v4574_v52 = vmul.f32 %v9725_v55, %v4507_v63  ;;  %v4576_v21 = vmul.f32 %v9725_v55, %v4511_v35  ;;  %v4575_v4 = vmul.f32 %v9725_v55, %v4509_v3  ;;  %v4577_v44 = vmul.f32 %v9725_v55, %v4513_v11  ;;  %v4617_v11 = vld [vmem:[%s6543_s13 + $0x58] sm:$0xff] }
 0x7b5   : > { %v4578_v24 = vmul.f32 %v9725_v55, %v4515_v59  ;;  %v4579_v10 = vmul.f32 %v9725_v55, %v4517_v53  ;;  %v4580_v31 = vmul.f32 %v9725_v55, %v4519_v5  ;;  %v4618_v53 = vld [vmem:[%s6543_s13 + $0x60] sm:$0xff] }
 0x7b6   : > { %v4639_v7 = vmul.f32 %v4606_v30, %v4574_v52  ;;  %v4641_v43 = vmul.f32 %v4608_v37, %v4576_v21  ;;  %v4640_v14 = vmul.f32 %v4607_v42, %v4575_v4  ;;  %v4523_v62 = vpop.xlane.xlu0 %4522  ;;  %v4642_v2 = vmul.f32 %v4609_v61, %v4577_v44 }
 0x7b7   : > { %v4521_v40 = vpop.xlane.xlu1 %4520  ;;  %v4643_v56 = vmul.f32 %v4610_v8, %v4578_v24  ;;  %v4644_v15 = vmul.f32 %v4611_v17, %v4579_v10  ;;  %v4645_v49 = vmul.f32 %v4612_v20, %v4580_v31  ;;  %v4582_v23 = vmul.f32 %v9725_v55, %v4523_v62  ;;  %v4621_v17 = vld [vmem:[%s6543_s13 + $0x78] sm:$0xff]  ;;  %v4622_v20 = vld [vmem:[%s6543_s13 + $0x80] sm:$0xff] }
 0x7b8   : > { %v4672_v36 = vsel %vm4671_vm5, %v4639_v7, 0.0  ;;  %v4673_v12 = vsel %vm4671_vm5, %v4640_v14, 0.0  ;;  %v4675_v29 = vsel %vm4671_vm5, %v4641_v43, 0.0  ;;  %v4677_v19 = vsel %vm4671_vm5, %v4642_v2, 0.0  ;;  %v4619_v7 = vld [vmem:[%s6543_s13 + $0x68] sm:$0xff] }
 0x7b9   : > { %v4674_v18 = vadd.f32 %v4673_v12, %v4672_v36  ;;  %v4581_v41 = vmul.f32 %v9725_v55, %v4521_v40  ;;  %v4679_v38 = vsel %vm4671_vm5, %v4643_v56, 0.0  ;;  %v4681_v26 = vsel %vm4671_vm5, %v4644_v15, 0.0  ;;  %v4620_v40 = vld [vmem:[%s6543_s13 + $0x70] sm:$0xff] }
 0x7ba   : > { %v4527_v25 = vpop.xlane.xlu0 %4526  ;;  %v4683_v60 = vsel %vm4671_vm5, %v4645_v49, 0.0  ;;  %v4647_v50 = vmul.f32 %v4614_v13, %v4582_v23  ;;  %v4624_v13 = vld [vmem:[%s6543_s13 + $0x90] sm:$0xff] }
 0x7bb   : > { %v4676_v32 = vadd.f32 %v4675_v29, %v4674_v18  ;;  %v4525_v27 = vpop.xlane.xlu1 %4524  ;;  %v4646_v1 = vmul.f32 %v4613_v22, %v4581_v41  ;;  %v4584_v47 = vmul.f32 %v9725_v55, %v4527_v25  ;;  %v4623_v22 = vld [vmem:[%s6543_s13 + $0x88] sm:$0xff] }
 0x7bc   : > { %v4583_v0 = vmul.f32 %v9725_v55, %v4525_v27  ;;  %v4687_v6 = vsel %vm4671_vm5, %v4647_v50, 0.0 }
 0x7bd   : > { %v4678_v33 = vadd.f32 %v4677_v19, %v4676_v32  ;;  %v4685_v63 = vsel %vm4671_vm5, %v4646_v1, 0.0  ;;  %v4649_v5 = vmul.f32 %v4616_v39, %v4584_v47  ;;  %v4626_v39 = vld [vmem:[%s6543_s13 + $0xa0] sm:$0xff] }
 0x7be   : > { %v4531_v34 = vpop.xlane.xlu0 %4530  ;;  %v4648_v35 = vmul.f32 %v4615_v54, %v4583_v0  ;;  %v4625_v54 = vld [vmem:[%s6543_s13 + $0x98] sm:$0xff] }
 0x7bf   : > { %v4680_v48 = vadd.f32 %v4679_v38, %v4678_v33  ;;  %v4529_v45 = vpop.xlane.xlu1 %4528  ;;  %v4586_v30 = vmul.f32 %v9725_v55, %v4531_v34  ;;  %v4691_v43 = vsel %vm4671_vm5, %v4649_v5, 0.0 }
 0x7c0   : > { %v4585_v3 = vmul.f32 %v9725_v55, %v4529_v45  ;;  %v4689_v21 = vsel %vm4671_vm5, %v4648_v35, 0.0 }
 0x7c1   : > { %v4682_v9 = vadd.f32 %v4681_v26, %v4680_v48  ;;  %v4651_v14 = vmul.f32 %v4618_v53, %v4586_v30 }
 0x7c2   : > { %v4535_v58 = vpop.xlane.xlu0 %4534  ;;  %v4650_v4 = vmul.f32 %v4617_v11, %v4585_v3  ;;  %v4627_v11 = vld [vmem:[%s6543_s13 + $0xa8] sm:$0xff] }
 0x7c3   : > { %v4684_v46 = vadd.f32 %v4683_v60, %v4682_v9  ;;  %v4533_v16 = vpop.xlane.xlu1 %4532  ;;  %v4588_v24 = vmul.f32 %v9725_v55, %v4535_v58  ;;  %v4695_v29 = vsel %vm4671_vm5, %v4651_v14, 0.0 }
 0x7c4   : > { %v4587_v61 = vmul.f32 %v9725_v55, %v4533_v16  ;;  %v4693_v12 = vsel %vm4671_vm5, %v4650_v4, 0.0 }
 0x7c5   : > { %v4686_v59 = vadd.f32 %v4685_v63, %v4684_v46  ;;  %v4653_v56 = vmul.f32 %v4620_v40, %v4588_v24 }
 0x7c6   : > { %v4539_v37 = vpop.xlane.xlu0 %4538  ;;  %v4652_v2 = vmul.f32 %v4619_v7, %v4587_v61  ;;  %v4629_v7 = vld [vmem:[%s6543_s13 + $0xb8] sm:$0xff] }
 0x7c7   : > { %v4688_v42 = vadd.f32 %v4687_v6, %v4686_v59  ;;  %v4537_v52 = vpop.xlane.xlu1 %4536  ;;  %v4590_v31 = vmul.f32 %v9725_v55, %v4539_v37  ;;  %v4699_v38 = vsel %vm4671_vm5, %v4653_v56, 0.0 }
 0x7c8   : > { %v4589_v10 = vmul.f32 %v9725_v55, %v4537_v52  ;;  %v4697_v19 = vsel %vm4671_vm5, %v4652_v2, 0.0 }
 0x7c9   : > { %v4690_v44 = vadd.f32 %v4689_v21, %v4688_v42  ;;  %v4655_v49 = vmul.f32 %v4622_v20, %v4590_v31  ;;  %v4628_v42 = vld [vmem:[%s6543_s13 + $0xb0] sm:$0xff] }
 0x7ca   : > { %v4543_v62 = vpop.xlane.xlu0 %4542  ;;  %v4654_v15 = vmul.f32 %v4621_v17, %v4589_v10 }
 0x7cb   : > { %v4692_v8 = vadd.f32 %v4691_v43, %v4690_v44  ;;  %v4541_v36 = vpop.xlane.xlu1 %4540  ;;  %v4592_v23 = vmul.f32 %v9725_v55, %v4543_v62  ;;  %v4703_v60 = vsel %vm4671_vm5, %v4655_v49, 0.0 }
 0x7cc   : > { %v4591_v41 = vmul.f32 %v9725_v55, %v4541_v36  ;;  %v4701_v26 = vsel %vm4671_vm5, %v4654_v15, 0.0 }
 0x7cd   : > { %v4694_v18 = vadd.f32 %v4693_v12, %v4692_v8  ;;  %v4657_v50 = vmul.f32 %v4624_v13, %v4592_v23  ;;  %v4630_v8 = vld [vmem:[%s6543_s13 + $0xc0] sm:$0xff] }
 0x7ce   : > { %v4547_v25 = vpop.xlane.xlu0 %4546  ;;  %v4656_v1 = vmul.f32 %v4623_v22, %v4591_v41 }
 0x7cf   : > { %v4696_v32 = vadd.f32 %v4695_v29, %v4694_v18  ;;  %v4545_v27 = vpop.xlane.xlu1 %4544  ;;  %v4594_v47 = vmul.f32 %v9725_v55, %v4547_v25  ;;  %v4707_v6 = vsel %vm4671_vm5, %v4657_v50, 0.0  ;;  %v4631_v18 = vld [vmem:[%s6543_s13 + $0xc8] sm:$0xff] }
 0x7d0   : > { %v4593_v0 = vmul.f32 %v9725_v55, %v4545_v27  ;;  %v4705_v63 = vsel %vm4671_vm5, %v4656_v1, 0.0 }
 0x7d1   : > { %v4698_v33 = vadd.f32 %v4697_v19, %v4696_v32  ;;  %v4659_v5 = vmul.f32 %v4626_v39, %v4594_v47  ;;  %v4632_v32 = vld [vmem:[%s6543_s13 + $0xd0] sm:$0xff] }
 0x7d2   : > { %v4551_v34 = vpop.xlane.xlu0 %4550  ;;  %v4658_v35 = vmul.f32 %v4625_v54, %v4593_v0  ;;  %v4635_v0 = vld [vmem:[%s6543_s13 + $0xe8] sm:$0xff] }
 0x7d3   : > { %v4700_v48 = vadd.f32 %v4699_v38, %v4698_v33  ;;  %v4549_v45 = vpop.xlane.xlu1 %4548  ;;  %v4596_v30 = vmul.f32 %v9725_v55, %v4551_v34  ;;  %v4711_v43 = vsel %vm4671_vm5, %v4659_v5, 0.0  ;;  %v4633_v33 = vld [vmem:[%s6543_s13 + $0xd8] sm:$0xff]  ;;  %v4634_v34 = vld [vmem:[%s6543_s13 + $0xe0] sm:$0xff] }
 0x7d4   : > { %v4595_v3 = vmul.f32 %v9725_v55, %v4549_v45  ;;  %v4709_v21 = vsel %vm4671_vm5, %v4658_v35, 0.0  ;;  %v4637_v35 = vld [vmem:[%s6543_s13 + $0xf8] sm:$0xff] }
 0x7d5   : > { %v4702_v9 = vadd.f32 %v4701_v26, %v4700_v48  ;;  %v4661_v14 = vmul.f32 %v4628_v42, %v4596_v30 }
 0x7d6   : > { %v4555_v58 = vpop.xlane.xlu0 %4554  ;;  %v4660_v4 = vmul.f32 %v4627_v11, %v4595_v3 }
 0x7d7   : > { %v4704_v46 = vadd.f32 %v4703_v60, %v4702_v9  ;;  %v4553_v16 = vpop.xlane.xlu1 %4552  ;;  %v4598_v24 = vmul.f32 %v9725_v55, %v4555_v58  ;;  %v4715_v29 = vsel %vm4671_vm5, %v4661_v14, 0.0  ;;  %v4636_v58 = vld [vmem:[%s6543_s13 + $0xf0] sm:$0xff] }
 0x7d8   : > { %v4597_v61 = vmul.f32 %v9725_v55, %v4553_v16  ;;  %v4713_v36 = vsel %vm4671_vm5, %v4660_v4, 0.0 }
 0x7d9   : > { %v4706_v59 = vadd.f32 %v4705_v63, %v4704_v46  ;;  %v4663_v56 = vmul.f32 %v4630_v8, %v4598_v24 }
 0x7da   : > { %v4559_v53 = vpop.xlane.xlu0 %4558  ;;  %v4662_v12 = vmul.f32 %v4629_v7, %v4597_v61 }
 0x7db   : > { %v4708_v37 = vadd.f32 %v4707_v6, %v4706_v59  ;;  %v4557_v52 = vpop.xlane.xlu1 %4556  ;;  %v4600_v31 = vmul.f32 %v9725_v55, %v4559_v53  ;;  %v4719_v22 = vsel %vm4671_vm5, %v4663_v56, 0.0  ;;  %v4775_v56 = vsel %vm4774_vm9, %v9682_v57, 0.0 }
 0x7dc   : > { %v4599_v2 = vmul.f32 %v9725_v55, %v4557_v52  ;;  %v4717_v27 = vsel %vm4671_vm5, %v4662_v12, 0.0 }
 0x7dd   : > { %v4710_v44 = vadd.f32 %v4709_v21, %v4708_v37  ;;  %v4665_v38 = vmul.f32 %v4632_v32, %v4600_v31 }
 0x7de   : > { %v4563_v17 = vpop.xlane.xlu0 %4562  ;;  %v4664_v19 = vmul.f32 %v4631_v18, %v4599_v2 }
 0x7df   : > { %v4712_v62 = vadd.f32 %v4711_v43, %v4710_v44  ;;  %v4561_v40 = vpop.xlane.xlu1 %4560  ;;  %v4602_v49 = vmul.f32 %v9725_v55, %v4563_v17  ;;  %v4723_v54 = vsel %vm4671_vm5, %v4665_v38, 0.0 }
 0x7e0   : > { %v4601_v15 = vmul.f32 %v9725_v55, %v4561_v40  ;;  %v4721_v13 = vsel %vm4671_vm5, %v4664_v19, 0.0 }
 0x7e1   : > { %v4714_v10 = vadd.f32 %v4713_v36, %v4712_v62  ;;  %v4667_v60 = vmul.f32 %v4634_v34, %v4602_v49  ;;  %v6309_v36 = vmov 0.0  }
 0x7e2   : > { %v4567_v48 = vpop.xlane.xlu0 %4566  ;;  %v4666_v45 = vmul.f32 %v4633_v33, %v4601_v15 }
 0x7e3   : > { %v4716_v25 = vadd.f32 %v4715_v29, %v4714_v10  ;;  %v4565_v20 = vpop.xlane.xlu1 %4564  ;;  %v4604_v50 = vmul.f32 %v9725_v55, %v4567_v48  ;;  %v4727_v3 = vsel %vm4671_vm5, %v4667_v60, 0.0 }
 0x7e4   : > { %v4603_v26 = vmul.f32 %v9725_v55, %v4565_v20  ;;  %v4725_v46 = vsel %vm4671_vm5, %v4666_v45, 0.0 }
 0x7e5   : > { %v4718_v41 = vadd.f32 %v4717_v27, %v4716_v25  ;;  %v4669_v59 = vmul.f32 %v4636_v58, %v4604_v50  ;;  %v4778_v25 = vsel %vm4777_vm10, %v9721_v28, 0.0 }
 0x7e6   : > { %v4668_v39 = vmul.f32 %v4635_v0, %v4603_v26  ;;  %v4747_v7 = vpop.permute.xlu0 %4746 }
 0x7e7   : > { %v4720_v23 = vadd.f32 %v4719_v22, %v4718_v41  ;;  %v4569_v9 = vpop.xlane.xlu1 %4568  ;;  %v4731_v37 = vsel %vm4671_vm5, %v4669_v59, 0.0 }
 0x7e8   : > { %v4605_v16 = vmul.f32 %v9725_v55, %v4569_v9  ;;  %v4729_v6 = vsel %vm4671_vm5, %v4668_v39, 0.0 }
 0x7e9   : > { %v4722_v1 = vadd.f32 %v4721_v13, %v4720_v23 }
 0x7ea   : > { %v4670_v5 = vmul.f32 %v4637_v35, %v4605_v16 }
 0x7eb   : > { %v4724_v47 = vadd.f32 %v4723_v54, %v4722_v1 }
 0x7ec   : > { %v4733_v53 = vsel %vm4671_vm5, %v4670_v5, 0.0 }
 0x7ed   : > { %v4726_v63 = vadd.f32 %v4725_v46, %v4724_v47 }
 0x7ef   : > { %v4728_v11 = vadd.f32 %v4727_v3, %v4726_v63 }
 0x7f1   : > { %v4730_v30 = vadd.f32 %v4729_v6, %v4728_v11 }
 0x7f3   : > { %v4732_v42 = vadd.f32 %v4731_v37, %v4730_v30 }
 0x7f5   : > { %v4734_v52 = vadd.f32 %v4733_v53, %v4732_v42 }
 0x7f7   : > { %v4735_v21 = vrot.slane %v4734_v52, 4 }
 0x7f9   : > { %v4736_v4 = vadd.f32 %v4735_v21, %v4734_v52 }
 0x7fb   : > { %v4737_v61 = vrot.slane %v4736_v4, 2 }
 0x7fd   : > { %v4738_v55 = vadd.f32 %v4737_v61, %v4736_v4 }
 0x7ff   : > { %v4739_v44 = vrot.slane %v4738_v55, 1 }
 0x801   : > { %v4740_v43 = vadd.f32 %v4739_v44, %v4738_v55 }
 0x803   : > { %v4749_v14 = vadd.f32 %v4747_v7, %v4740_v43 }
 0x805   : > { %v5003_v24 = vmul.f32 -1.442695, %v4749_v14 }
 0x807   : > { %6107 = vpow2.f32 %v5003_v24 }
 0x811   : > { %v6108_v62 = vpop.eup %6107 }
 0x812   : > { %v4753_v8 = vadd.f32 1.0, %v6108_v62 }
 0x814   : > { %6109 = vrcp.f32 %v4753_v8 }
 0x81e   : > { %v6110_v40 = vpop.eup %6109 }
 0x81f   : > { %4762 = vperm.xlu1 %6101, %v6110_v40   ;;  %vm4756_vm6 = vcmp.ge.f32.partialorder %v6110_v40, 0.5 }
 0x820   : > { %v5004_v12 = vsel %vm4756_vm6, 1.0, %v6309_v36 }
 0x823   : > { %4769 = vperm.xlu1 %6101, %v5004_v12  }
 0x89e   : > { %v4763_v2 = vpop.permute.xlu1 %4762 }
 0x89f   : > { %v4765_v18 = vsel %vm4759_vm7, %v4763_v2, 0.0 }
 0x8a2   : > { %v4770_v10 = vpop.permute.xlu1 %4769 }
 0x8a3   : > { %v4772_v17 = vsel %vm4766_vm8, %v4770_v10, 0.0 }
 0x8a4   : > { %v4773_v29 = vadd.f32 %v4772_v17, %v4765_v18 }
 0x8a6   : > { %v4776_v31 = vadd.f32 %v4775_v56, %v4773_v29 }
 0x8a8   : > { %v4779_v32 = vadd.f32 %v4778_v25, %v4776_v31 }
 0x8aa   : > { %4780 = vst [vmem:[%s443_s1] sm:$0x1] %v4779_v32 }
 0x8ab PF: > { %s11233_s13 = sld [smem:[#allocation22_spill]]  ;;  %s5014_s27 = sshll.u32 %s6283_s16, 6 }
 0x8ac   : > { %s11234_s22 = sld [smem:[#allocation179_spill]]  ;;  %s4800_s9 = sshll.u32 %s6551_s28, 4  ;;  %s4801_s9 = int_to_ptr.vmem [resolvable:$true] %s4800_s9 }
 0x8ad   : > { %s4782_s11 = scalar_lea.sflag [#allocation8], %s6517_s6  ;;  %s6141_s0 = scalar_lea.vmem %s4801_s9, 64 }
 0x8ae   : > { %p6142_p1 = scmp.ne.s32.totalorder %s4801_s9, %s6141_s0  ;;  %s6310_s17 = smov [#allocation9]  }
 0x8af   : > { %s6145_s18 = sshll.u32 %s6310_s17, 4  ;;  %s6146_s18 = int_to_ptr.vmem [resolvable:$false] %s6145_s18 }
 0x8b0   : > { %s6147_s14 = scalar_lea.vmem %s6146_s18, 128  ;;  %p6148_p11 = scmp.lt.s32.totalorder %s4801_s9, %s6146_s18 }
 0x8b1   : > { %p11235_p6 = scmp.ne.s32.totalorder %s11233_s13, 0  ;;  %p6149_p13 = scmp.lt.s32.totalorder %s6147_s14, %s6141_s0 }
 0x8b2   : > { %s9835_s29 = scalar_lea.hbm %s11234_s22, %s5014_s27 }
 0x8b3   : > { %p6143_p8 = pnand %p6142_p1, %p11235_p6  ;;  %p6150_p5 = por %p6149_p13, %p6148_p11 }
 0x8b5   : > { %p6144_p10 = pneg %p6143_p8 }
 0x8b7   : > { %p6151_p3 = pnand %p6150_p5, %p6144_p10 }
 0x8b9   : > { %6154 = shalt.err (!%p6151_p3)
}
 0x8ba   : > { %s6155_s28 = scalar_lea.hbm %s9835_s29, 64  ;;  %s6159_s12 = scalar_lea.hbm %s11234_s22, 128 }
 0x8bb   : > { %p6156_p9 = scmp.ne.s32.totalorder %s9835_s29, %s6155_s28  ;;  %p6160_p2 = scmp.lt.u32.totalorder %s9835_s29, %s11234_s22 }
 0x8bc   : > { %p6161_p4 = scmp.lt.u32.totalorder %s6159_s12, %s6155_s28  ;;  %p6163_p1 = scmp.lt.u32.totalorder %s6155_s28, %s9835_s29 }
 0x8bd   : > { %p6157_p12 = pnand %p6156_p9, %p11235_p6 }
 0x8be   : > { %p6162_p0 = por %p6161_p4, %p6160_p2 }
 0x8bf   : > { %p6158_p7 = pneg %p6157_p12 }
 0x8c0   : > { %p6164_p8 = por %p6163_p1, %p6162_p0 }
 0x8c2   : > { %p6165_p10 = pnand %p6164_p8, %p6158_p7 }
 0x8c4   : > { %6168 = shalt.err (!%p6165_p10)
}
 0x8c5   : > { %5912 = dma.vmem_to_hbm [thread:$0]  (%p11235_p6), %s4801_s9, 64, %s9835_s29, %s4782_s11  }
 0x8c6   : > { %s5008_s27 = sshll.u32 %s6283_s16, 4  ;;  %s4813_s8 = sshll.u32 %s443_s1, 4  ;;  %s4814_s8 = int_to_ptr.vmem [resolvable:$true] %s4813_s8 }
 0x8c7   : > { %s11236_s17 = sld [smem:[#allocation180_spill]]  ;;  %s4787_s14 = scalar_lea.sflag [#allocation11], %s6517_s6 }
 0x8c8   : > { %s6169_s28 = scalar_lea.vmem %s4814_s8, 16  ;;  %s6311_s21 = smov [#allocation10]  }
 0x8c9   : > { %p6170_p11 = scmp.ne.s32.totalorder %s4814_s8, %s6169_s28  ;;  %s6173_s12 = sshll.u32 %s6311_s21, 4  ;;  %s6174_s12 = int_to_ptr.vmem [resolvable:$false] %s6173_s12 }
 0x8ca   : > { %s6175_s26 = scalar_lea.vmem %s6174_s12, 32  ;;  %p6176_p3 = scmp.lt.s32.totalorder %s4814_s8, %s6174_s12 }
 0x8cb   : > { %p6171_p13 = pnand %p6170_p11, %p11235_p6  ;;  %p6177_p9 = scmp.lt.s32.totalorder %s6175_s26, %s6169_s28 }
 0x8cd   : > { %s11237_s23 = smov %s11236_s17  ;;  %s9862_s18 = scalar_lea.hbm %s11236_s17, %s5008_s27 }
 0x8ce   : > { %p6172_p5 = pneg %p6171_p13  ;;  %p6178_p12 = por %p6177_p9, %p6176_p3 }
 0x8d0   : > { %p6179_p7 = pnand %p6178_p12, %p6172_p5 }
 0x8d2   : > { %6182 = shalt.err (!%p6179_p7)
}
 0x8d3   : > { %s6183_s1 = scalar_lea.hbm %s9862_s18, 16  ;;  %s6187_s29 = scalar_lea.hbm %s11237_s23, 32 }
 0x8d4   : > { %p6184_p2 = scmp.ne.s32.totalorder %s9862_s18, %s6183_s1  ;;  %p6188_p1 = scmp.lt.u32.totalorder %s9862_s18, %s11237_s23 }
 0x8d5   : > { %p6189_p8 = scmp.lt.u32.totalorder %s6187_s29, %s6183_s1  ;;  %p6191_p11 = scmp.lt.u32.totalorder %s6183_s1, %s9862_s18 }
 0x8d6   : > { %p6185_p4 = pnand %p6184_p2, %p11235_p6 }
 0x8d7   : > { %p6190_p10 = por %p6189_p8, %p6188_p1 }
 0x8d8   : > { %p6186_p0 = pneg %p6185_p4 }
 0x8d9   : > { %p6192_p13 = por %p6191_p11, %p6190_p10 }
 0x8db   : > { %p6193_p5 = pnand %p6192_p13, %p6186_p0 }
 0x8dd   : > { %6196 = shalt.err (!%p6193_p5)
}
 0x8de   : > { %5913 = dma.vmem_to_hbm [thread:$0]  (%p11235_p6), %s4814_s8, 16, %s9862_s18, %s4787_s14  }
 0x8df PF: > { %p5928_p3 = scmp.ge.s32.totalorder %s6295_s19, 2  ;;  %s4825_s15 = sand.u32 1, %s6255_s30  }
 0x8e0   : > { %p11238_p9 = scmp.ne.s32.totalorder %s10403_s7, 0  ;;  %s4826_s27 = scalar_lea.sflag [#allocation8], %s4825_s15 }
 0x8e2   : > { %p5921_p12 = pnand %p5928_p3, %p11238_p9 }
 0x8e4   : > { %6246 = dma.done.wait (!%p5921_p12), %s4826_s27, 64  }
 0x8e5   : > { %6248 = vsyncadd (!%p5921_p12), %s4826_s27, 4294967232  ;;  %s4835_s25 = scalar_lea.sflag [#allocation11], %s4825_s15 }
 0x8e6   : > { %6250 = dma.done.wait (!%p5921_p12), %s4835_s25, 16  }
 0x8e7   : > { %6252 = vsyncadd (!%p5921_p12), %s4835_s25, 4294967280  ;;  %s29_s19 = sadd.s32 1, %s6295_s19   ;;  %s11239_s13 = sld [smem:[#allocation15_spill]] }
 0x8e8   : > { %p26_p7 = scmp.ge.s32.totalorder %s29_s19, 6   ;;  %s11240_s11 = sld [smem:[#allocation23_spill]] }
 0x8e9   : > { %s11241_s12 = sld [smem:[#allocation16_spill]]  ;;  %s11242_s8 = sld [smem:[#allocation17_spill]] }
 0x8ea   : > { %s11243_s14 = sld [smem:[#allocation24_spill]]  ;;  %s11244_s15 = sld [smem:[#allocation18_spill]] }
 0x8eb   : > { %s11245_s16 = sld [smem:[#allocation19_spill]]  ;;  %s11246_s17 = sld [smem:[#allocation20_spill]] }
 0x8ec   : > { %s11247_s18 = sld [smem:[#allocation21_spill]]  ;;  %s11248_s30 = smov %s6259_s10 }
 0x8ed   : > { %s11249_s10 = smov %s11239_s13  ;;  %28 = sbr.rel (!%p26_p7) target bundleno = 18 (0x12), region = 142 }
 0x8ef   : > { %s11250_s13 = smov %s11242_s8 }
 0x8f4   :  { %4839 = vsyncpa [#allocation7], 1 }
 0x8f5   :  { %4841 = vsyncpa [#allocation7 + $0x1], 1 }
 0x8f6   :  { %4842 = vsyncpa [#allocation8], 1 }
 0x8f7   :  { %4844 = vsyncpa [#allocation8 + $0x1], 1 }
 0x8f8   :  { %4845 = vsyncpa [#allocation11], 1 }
 0x8f9   :  { %4847 = vsyncpa [#allocation11 + $0x1], 1 }

</bundles_post_ra>
